<compile_context>
chip_gen: v7x
topology: tpu7x:2x2x1
jax: 0.10.0
libtpu: 0.0.40
codegen_flags: <defaults>
</compile_context>

<pallas_src>
import functools
import math

import jax
import jax.numpy as jnp
import numpy as np
from jax.experimental import pallas as pl
from jax.experimental.pallas import tpu as pltpu


# ------------------------------------------------------------------
# Kernel A: fused self-attention block
#   out = LayerNorm1( x + MHA(q = x+qp, k = x+qp, v = x) )
# grid = (B,) -- one batch element per grid step, marked "parallel"
# ------------------------------------------------------------------
def _self_attn_ln_kernel(x_ref, qp_ref, wqk_ref, bqk_ref, wv_ref, bv_ref,
                         wo_ref, bo_ref, g_ref, beta_ref, o_ref,
                         *, n_head, eps):
    x = x_ref[0]                       # (L, E) original tgt (also the value input)
    xq = x + qp_ref[0]                 # (L, E) query/key input (pos-add fused here)
    L, E = x.shape
    D = E // n_head
    scale = 1.0 / math.sqrt(D)

    # Fused Q/K projection: one lane-dense (L, 2E) matmul. V uses x (no pos-add).
    qk = jnp.dot(xq, wqk_ref[...], preferred_element_type=jnp.float32) + bqk_ref[...]
    v = jnp.dot(x, wv_ref[...], preferred_element_type=jnp.float32) + bv_ref[...]

    # Per-head attention; the output projection is accumulated head-by-head so
    # no head-concat / transpose ever leaves VMEM (and never touches HBM).
    attn = jnp.zeros_like(x)
    for h in range(n_head):            # static unroll (n_head is small & fixed)
        lo = h * D
        q_h = qk[:, lo:lo + D]                       # (L, D)
        k_h = qk[:, E + lo:E + lo + D]               # (L, D)
        v_h = v[:, lo:lo + D]                        # (L, D)
        # q_h @ k_h^T contracted in place -- no transposed K copy materialized.
        s = jax.lax.dot_general(q_h, k_h, (((1,), (1,)), ((), ())),
                                preferred_element_type=jnp.float32) * scale
        m = jnp.max(s, axis=-1, keepdims=True)
        p = jnp.exp(s - m)
        p = p * pl.reciprocal(jnp.sum(p, axis=-1, keepdims=True), approx=True)
        o_h = jnp.dot(p, v_h, preferred_element_type=jnp.float32)    # (L, D)
        # Fold head h straight into the output projection (rows lo:lo+D of Wo^T).
        attn = attn + jnp.dot(o_h, wo_ref[lo:lo + D, :],
                              preferred_element_type=jnp.float32)

    y = x + attn + bo_ref[...]          # residual (dropout1 identity in eval)
    mean = jnp.mean(y, axis=-1, keepdims=True)
    c = y - mean
    var = jnp.mean(c * c, axis=-1, keepdims=True)
    o_ref[0] = c * jax.lax.rsqrt(var + eps) * g_ref[...] + beta_ref[...]


def fused_self_attn_ln(x_bf, qp_bf, p, n_head, eps=1e-5):
    B, L, E = x_bf.shape
    kernel = functools.partial(_self_attn_ln_kernel, n_head=n_head, eps=eps)

    def resident(shape):                # same block every grid step -> stays in VMEM
        return pl.BlockSpec(shape, lambda b: (0, 0))

    return pl.pallas_call(
        kernel,
        out_shape=jax.ShapeDtypeStruct((B, L, E), jnp.float32),
        grid=(B,),
        in_specs=[
            pl.BlockSpec((1, L, E), lambda b: (b, 0, 0)),      # tgt
            pl.BlockSpec((1, L, E), lambda b: (b, 0, 0)),      # query_pos
            resident((E, 2 * E)), resident((1, 2 * E)),        # fused Wqk, bqk
            resident((E, E)), resident((1, E)),                # Wv, bv
            resident((E, E)), resident((1, E)),                # Wo, bo
            resident((1, E)), resident((1, E)),                # ln1 gamma, beta
        ],
        out_specs=pl.BlockSpec((1, L, E), lambda b: (b, 0, 0)),
        compiler_params=pltpu.CompilerParams(
            dimension_semantics=("parallel",),
            vmem_limit_bytes=32 * 1024 * 1024),
    )(x_bf, qp_bf, p["w_qk"], p["b_qk"], p["w_v"], p["b_v"],
      p["w_o"], p["b_o"], p["ln1_g"], p["ln1_b"])


# ------------------------------------------------------------------
# Kernel B: fused LayerNorm2 + FFN + residual
#   out = LN2(x + x) + linear2(relu(linear1(LN2(x + x))))
# grid over rows of the (B*L, E) slab, weights resident in VMEM.
# ------------------------------------------------------------------
def _ffn_ln_kernel(x_ref, g_ref, beta_ref, w1_ref, b1_ref, w2_ref, b2_ref,
                   o_ref, *, eps):
    x = x_ref[...]                      # (tm, E) post-norm1 tgt
    z = x + x                           # tgt + dropout2(tgt)  (eval: identity)
    mean = jnp.mean(z, axis=-1, keepdims=True)
    c = z - mean
    var = jnp.mean(c * c, axis=-1, keepdims=True)
    xn = c * jax.lax.rsqrt(var + eps) * g_ref[...] + beta_ref[...]   # norm2
    h = jnp.dot(xn, w1_ref[...], preferred_element_type=jnp.float32) + b1_ref[...]
    h = jnp.maximum(h, 0.0)             # ReLU (self.dropout identity in eval)
    y = jnp.dot(h, w2_ref[...], preferred_element_type=jnp.float32) + b2_ref[...]
    o_ref[...] = xn + y                 # residual (dropout3 identity in eval)


def _pick_row_block(m):
    for tm in (512, 256, 128, 64, 32, 16, 8):
        if m % tm == 0:
            return tm
    return m


def fused_ln_ffn(x2d, p, eps=1e-5):
    M, E = x2d.shape
    F = p["w1"].shape[1]
    tm = _pick_row_block(M)
    kernel = functools.partial(_ffn_ln_kernel, eps=eps)

    def resident(shape):
        return pl.BlockSpec(shape, lambda i: (0, 0))

    return pl.pallas_call(
        kernel,
        out_shape=jax.ShapeDtypeStruct((M, E), jnp.float32),
        grid=(M // tm,),
        in_specs=[
            pl.BlockSpec((tm, E), lambda i: (i, 0)),
            resident((1, E)), resident((1, E)),                # ln2 gamma, beta
            resident((E, F)), resident((1, F)),                # W1, b1
            resident((F, E)), resident((1, E)),                # W2, b2
        ],
        out_specs=pl.BlockSpec((tm, E), lambda i: (i, 0)),
        compiler_params=pltpu.CompilerParams(
            dimension_semantics=("parallel",),
            vmem_limit_bytes=32 * 1024 * 1024),
    )(x2d, p["ln2_g"], p["ln2_b"], p["w1"], p["b1"], p["w2"], p["b2"])


# ------------------------------------------------------------------
# Module forward (2 pallas_calls + boundary layout glue)
# ------------------------------------------------------------------
def decoder_layer_forward(packed, tgt, memory=None, pos=None, query_pos=None,
                          n_head=8):
    # memory / pos feed only the reference's cross-attention, whose result is
    # discarded (`tgt = tgt + dropout2(tgt)`), so they never affect the output.
    L, B, E = tgt.shape
    x_bf = jnp.transpose(tgt, (1, 0, 2))                   # (B, L, E) once
    if query_pos is None:
        qp_bf = jnp.zeros_like(x_bf)
    else:
        qp_bf = jnp.transpose(query_pos, (1, 0, 2))

    y_bf = fused_self_attn_ln(x_bf, qp_bf, packed, n_head)          # norm1 output
    y2 = fused_ln_ffn(y_bf.reshape(B * L, E), packed)               # final tgt
    return jnp.transpose(y2.reshape(B, L, E), (1, 0, 2))            # back to (L,B,E)


# ------------------------------------------------------------------
# Parameters: raw torch-layout params (for the reference) and a packed,
# pre-transposed / fused version consumed by the kernels.
# ------------------------------------------------------------------
def init_raw_params(key, E, F):
    ks = iter(jax.random.split(key, 32))
    s = 0.05

    def w(shape):
        return (s * jax.random.normal(next(ks), shape)).astype(jnp.float32)

    def attn():
        return dict(wq=w((E, E)), wk=w((E, E)), wv=w((E, E)),
                    bq=w((E,)), bk=w((E,)), bv=w((E,)),
                    wo=w((E, E)), bo=w((E,)))

    return dict(
        self_attn=attn(),
        mh_attn=attn(),     # exists in __init__; its output never reaches the forward output
        w1=w((F, E)), b1=w((F,)),
        w2=w((E, F)), b2=w((E,)),
        ln1_g=jnp.ones((E,), jnp.float32), ln1_b=jnp.zeros((E,), jnp.float32),
        ln2_g=jnp.ones((E,), jnp.float32), ln2_b=jnp.zeros((E,), jnp.float32),
        # norm3 exists in __init__ but is never used in forward (kept for parity).
        ln3_g=jnp.ones((E,), jnp.float32), ln3_b=jnp.zeros((E,), jnp.float32),
    )


def pack_params(raw):
    sa = raw["self_attn"]
    E = sa["wq"].shape[0]
    F = raw["w1"].shape[0]
    return dict(
        w_qk=jnp.concatenate([sa["wq"].T, sa["wk"].T], axis=1),      # (E, 2E)
        b_qk=jnp.concatenate([sa["bq"], sa["bk"]]).reshape(1, 2 * E),
        w_v=sa["wv"].T, b_v=sa["bv"].reshape(1, E),
        w_o=sa["wo"].T, b_o=sa["bo"].reshape(1, E),
        ln1_g=raw["ln1_g"].reshape(1, E), ln1_b=raw["ln1_b"].reshape(1, E),
        ln2_g=raw["ln2_g"].reshape(1, E), ln2_b=raw["ln2_b"].reshape(1, E),
        w1=raw["w1"].T, b1=raw["b1"].reshape(1, F),
        w2=raw["w2"].T, b2=raw["b2"].reshape(1, E),
    )


# ------------------------------------------------------------------
# Pure-JAX reference (mirrors the PyTorch module in eval mode)
# ------------------------------------------------------------------
def _ref_mha(q_in, k_in, v_in, p, H):
    Lq, B, E = q_in.shape
    Lk = k_in.shape[0]
    D = E // H
    q = q_in @ p["wq"].T + p["bq"]
    k = k_in @ p["wk"].T + p["bk"]
    v = v_in @ p["wv"].T + p["bv"]

    def heads(x, Lx):
        return x.reshape(Lx, B * H, D).transpose(1, 0, 2)

    qh, kh, vh = heads(q, Lq), heads(k, Lk), heads(v, Lk)
    s = jnp.einsum("bld,bsd->bls", qh, kh) / math.sqrt(D)
    a = jax.nn.softmax(s, axis=-1)
    o = jnp.einsum("bls,bsd->bld", a, vh)
    o = o.transpose(1, 0, 2).reshape(Lq, B, E)
    return o @ p["wo"].T + p["bo"]


def _ref_ln(x, g, b, eps=1e-5):
    mean = x.mean(-1, keepdims=True)
    var = ((x - mean) ** 2).mean(-1, keepdims=True)
    return (x - mean) / jnp.sqrt(var + eps) * g + b


def ref_forward(raw, tgt, memory, pos, query_pos, H):
    qk = tgt if query_pos is None else tgt + query_pos
    tgt2 = _ref_mha(qk, qk, tgt, raw["self_attn"], H)
    t = _ref_ln(tgt + tgt2, raw["ln1_g"], raw["ln1_b"])
    # reference computes cross-attention here but discards it: no output effect
    t = _ref_ln(t + t, raw["ln2_g"], raw["ln2_b"])
    h = jax.nn.relu(t @ raw["w1"].T + raw["b1"])
    tgt2 = h @ raw["w2"].T + raw["b2"]
    return t + tgt2


# ------------------------------------------------------------------
if __name__ == "__main__":
    E, H, F = 256, 8, 512          # d_model, n_head, dim_feedforward (scaled down)
    L, S, B = 8, 16, 2             # tgt seq len, memory seq len, batch

    key = jax.random.PRNGKey(0)
    kp, kt, km, kqp, kpo = jax.random.split(key, 5)
    raw = init_raw_params(kp, E, F)
    packed = pack_params(raw)
    tgt = jax.random.normal(kt, (L, B, E), jnp.float32)
    memory = jax.random.normal(km, (S, B, E), jnp.float32)
    query_pos = jax.random.normal(kqp, (L, B, E), jnp.float32)
    pos = jax.random.normal(kpo, (S, B, E), jnp.float32)

    fwd = jax.jit(functools.partial(decoder_layer_forward, n_head=H))
    out = jax.block_until_ready(fwd(packed, tgt, memory, pos=pos,
                                    query_pos=query_pos))

    ref = ref_forward(raw, tgt, memory, pos, query_pos, H)
    np.testing.assert_allclose(np.asarray(out), np.asarray(ref),
                               rtol=2e-2, atol=2e-2)
    print("KERNEL_OK")
</pallas_src>

<mosaic_0001>
module attributes {stable_mosaic.version = 11 : i64} {
  func.func @_self_attn_ln_kernel(%arg0: i32, %arg1: memref<1x8x256xf32, #tpu.memory_space<vmem>>, %arg2: memref<1x8x256xf32, #tpu.memory_space<vmem>>, %arg3: memref<256x512xf32, #tpu.memory_space<vmem>>, %arg4: memref<1x512xf32, #tpu.memory_space<vmem>>, %arg5: memref<256x256xf32, #tpu.memory_space<vmem>>, %arg6: memref<1x256xf32, #tpu.memory_space<vmem>>, %arg7: memref<256x256xf32, #tpu.memory_space<vmem>>, %arg8: memref<1x256xf32, #tpu.memory_space<vmem>>, %arg9: memref<1x256xf32, #tpu.memory_space<vmem>>, %arg10: memref<1x256xf32, #tpu.memory_space<vmem>>, %arg11: memref<1x8x256xf32, #tpu.memory_space<vmem>>) attributes {dimension_semantics = [#tpu.dimension_semantics<parallel>], iteration_bounds = array<i64: 2>, scalar_prefetch = 0 : i64, scratch_operands = 0 : i64, tpu.core_type = #tpu.core_type<tc>, window_params = [{transform_indices = @transform_0, window_bounds = array<i64: 1, 8, 256>}, {transform_indices = @transform_1, window_bounds = array<i64: 1, 8, 256>}, {pipeline_mode = #tpu.pipeline_mode<synchronous>, transform_indices = @transform_2, window_bounds = array<i64: 256, 512>}, {pipeline_mode = #tpu.pipeline_mode<synchronous>, transform_indices = @transform_3, window_bounds = array<i64: 1, 512>}, {pipeline_mode = #tpu.pipeline_mode<synchronous>, transform_indices = @transform_4, window_bounds = array<i64: 256, 256>}, {pipeline_mode = #tpu.pipeline_mode<synchronous>, transform_indices = @transform_5, window_bounds = array<i64: 1, 256>}, {pipeline_mode = #tpu.pipeline_mode<synchronous>, transform_indices = @transform_6, window_bounds = array<i64: 256, 256>}, {pipeline_mode = #tpu.pipeline_mode<synchronous>, transform_indices = @transform_7, window_bounds = array<i64: 1, 256>}, {pipeline_mode = #tpu.pipeline_mode<synchronous>, transform_indices = @transform_8, window_bounds = array<i64: 1, 256>}, {pipeline_mode = #tpu.pipeline_mode<synchronous>, transform_indices = @transform_9, window_bounds = array<i64: 1, 256>}, {transform_indices = @transform_10, window_bounds = array<i64: 1, 8, 256>}]} {
    %c0 = arith.constant 0 : index
    %c0_0 = arith.constant 0 : index
    %c0_1 = arith.constant 0 : index
    %0 = vector.load %arg1[%c0, %c0_0, %c0_1] : memref<1x8x256xf32, #tpu.memory_space<vmem>>, vector<1x8x256xf32>
    %1 = vector.shape_cast %0 : vector<1x8x256xf32> to vector<8x256xf32>
    %c0_2 = arith.constant 0 : index
    %c0_3 = arith.constant 0 : index
    %c0_4 = arith.constant 0 : index
    %2 = vector.load %arg2[%c0_2, %c0_3, %c0_4] : memref<1x8x256xf32, #tpu.memory_space<vmem>>, vector<1x8x256xf32>
    %3 = vector.shape_cast %2 : vector<1x8x256xf32> to vector<8x256xf32>
    %4 = arith.addf %1, %3 : vector<8x256xf32>
    %c0_5 = arith.constant 0 : index
    %c0_6 = arith.constant 0 : index
    %5 = vector.load %arg3[%c0_5, %c0_6] : memref<256x512xf32, #tpu.memory_space<vmem>>, vector<256x512xf32>
    %cst = arith.constant dense<0.000000e+00> : vector<8x512xf32>
    %6 = tpu.matmul %4, %5, %cst {dimension_numbers = #tpu.dot_dimension_numbers<[1], [0], [0], [1], [0, 0, 1, 1], [], []>} : vector<8x256xf32>, vector<256x512xf32>, vector<8x512xf32> -> vector<8x512xf32>
    %c0_7 = arith.constant 0 : index
    %c0_8 = arith.constant 0 : index
    %7 = vector.load %arg4[%c0_7, %c0_8] : memref<1x512xf32, #tpu.memory_space<vmem>>, vector<1x512xf32>
    %8 = vector.broadcast %7 : vector<1x512xf32> to vector<8x512xf32>
    %9 = arith.addf %6, %8 : vector<8x512xf32>
    %c0_9 = arith.constant 0 : index
    %c0_10 = arith.constant 0 : index
    %10 = vector.load %arg5[%c0_9, %c0_10] : memref<256x256xf32, #tpu.memory_space<vmem>>, vector<256x256xf32>
    %cst_11 = arith.constant dense<0.000000e+00> : vector<8x256xf32>
    %11 = tpu.matmul %1, %10, %cst_11 {dimension_numbers = #tpu.dot_dimension_numbers<[1], [0], [0], [1], [0, 0, 1, 1], [], []>} : vector<8x256xf32>, vector<256x256xf32>, vector<8x256xf32> -> vector<8x256xf32>
    %c0_12 = arith.constant 0 : index
    %c0_13 = arith.constant 0 : index
    %12 = vector.load %arg6[%c0_12, %c0_13] : memref<1x256xf32, #tpu.memory_space<vmem>>, vector<1x256xf32>
    %13 = vector.broadcast %12 : vector<1x256xf32> to vector<8x256xf32>
    %14 = arith.addf %11, %13 : vector<8x256xf32>
    %cst_14 = arith.constant 0.000000e+00 : f32
    %15 = vector.broadcast %cst_14 : f32 to vector<8x256xf32>
    %16 = vector.extract_strided_slice %9 {offsets = [0, 0], sizes = [8, 32], strides = [1, 1]} : vector<8x512xf32> to vector<8x32xf32>
    %17 = vector.extract_strided_slice %9 {offsets = [0, 256], sizes = [8, 32], strides = [1, 1]} : vector<8x512xf32> to vector<8x32xf32>
    %18 = vector.extract_strided_slice %14 {offsets = [0, 0], sizes = [8, 32], strides = [1, 1]} : vector<8x256xf32> to vector<8x32xf32>
    %cst_15 = arith.constant dense<0.000000e+00> : vector<8x8xf32>
    %19 = tpu.matmul %16, %17, %cst_15 {dimension_numbers = #tpu.dot_dimension_numbers<[1], [1], [0], [0], [0, 0, 1, 0], [], []>} : vector<8x32xf32>, vector<8x32xf32>, vector<8x8xf32> -> vector<8x8xf32>
    %cst_16 = arith.constant 0.176776692 : f32
    %20 = vector.broadcast %cst_16 : f32 to vector<8x8xf32>
    %21 = arith.mulf %19, %20 : vector<8x8xf32>
    %cst_17 = arith.constant dense<0xFF800000> : vector<8xf32>
    %22 = vector.multi_reduction <maximumf>, %21, %cst_17 [1] : vector<8x8xf32> to vector<8xf32>
    %23 = vector.shape_cast %22 : vector<8xf32> to vector<8x1xf32>
    %24 = vector.broadcast %23 : vector<8x1xf32> to vector<8x8xf32>
    %25 = arith.subf %21, %24 : vector<8x8xf32>
    %26 = math.exp %25 : vector<8x8xf32>
    %cst_18 = arith.constant dense<0.000000e+00> : vector<8xf32>
    %27 = vector.multi_reduction <add>, %26, %cst_18 [1] : vector<8x8xf32> to vector<8xf32>
    %28 = vector.shape_cast %27 : vector<8xf32> to vector<8x1xf32>
    %29 = tpu.reciprocal %28 {approx = true} : vector<8x1xf32> -> vector<8x1xf32>
    %30 = vector.broadcast %29 : vector<8x1xf32> to vector<8x8xf32>
    %31 = arith.mulf %26, %30 : vector<8x8xf32>
    %cst_19 = arith.constant dense<0.000000e+00> : vector<8x32xf32>
    %32 = tpu.matmul %31, %18, %cst_19 {dimension_numbers = #tpu.dot_dimension_numbers<[1], [0], [0], [1], [0, 0, 1, 1], [], []>} : vector<8x8xf32>, vector<8x32xf32>, vector<8x32xf32> -> vector<8x32xf32>
    %c0_20 = arith.constant 0 : index
    %c0_21 = arith.constant 0 : index
    %33 = vector.load %arg7[%c0_20, %c0_21] : memref<256x256xf32, #tpu.memory_space<vmem>>, vector<32x256xf32>
    %cst_22 = arith.constant dense<0.000000e+00> : vector<8x256xf32>
    %34 = tpu.matmul %32, %33, %cst_22 {dimension_numbers = #tpu.dot_dimension_numbers<[1], [0], [0], [1], [0, 0, 1, 1], [], []>} : vector<8x32xf32>, vector<32x256xf32>, vector<8x256xf32> -> vector<8x256xf32>
    %35 = arith.addf %15, %34 : vector<8x256xf32>
    %36 = vector.extract_strided_slice %9 {offsets = [0, 32], sizes = [8, 32], strides = [1, 1]} : vector<8x512xf32> to vector<8x32xf32>
    %37 = vector.extract_strided_slice %9 {offsets = [0, 288], sizes = [8, 32], strides = [1, 1]} : vector<8x512xf32> to vector<8x32xf32>
    %38 = vector.extract_strided_slice %14 {offsets = [0, 32], sizes = [8, 32], strides = [1, 1]} : vector<8x256xf32> to vector<8x32xf32>
    %cst_23 = arith.constant dense<0.000000e+00> : vector<8x8xf32>
    %39 = tpu.matmul %36, %37, %cst_23 {dimension_numbers = #tpu.dot_dimension_numbers<[1], [1], [0], [0], [0, 0, 1, 0], [], []>} : vector<8x32xf32>, vector<8x32xf32>, vector<8x8xf32> -> vector<8x8xf32>
    %cst_24 = arith.constant 0.176776692 : f32
    %40 = vector.broadcast %cst_24 : f32 to vector<8x8xf32>
    %41 = arith.mulf %39, %40 : vector<8x8xf32>
    %cst_25 = arith.constant dense<0xFF800000> : vector<8xf32>
    %42 = vector.multi_reduction <maximumf>, %41, %cst_25 [1] : vector<8x8xf32> to vector<8xf32>
    %43 = vector.shape_cast %42 : vector<8xf32> to vector<8x1xf32>
    %44 = vector.broadcast %43 : vector<8x1xf32> to vector<8x8xf32>
    %45 = arith.subf %41, %44 : vector<8x8xf32>
    %46 = math.exp %45 : vector<8x8xf32>
    %cst_26 = arith.constant dense<0.000000e+00> : vector<8xf32>
    %47 = vector.multi_reduction <add>, %46, %cst_26 [1] : vector<8x8xf32> to vector<8xf32>
    %48 = vector.shape_cast %47 : vector<8xf32> to vector<8x1xf32>
    %49 = tpu.reciprocal %48 {approx = true} : vector<8x1xf32> -> vector<8x1xf32>
    %50 = vector.broadcast %49 : vector<8x1xf32> to vector<8x8xf32>
    %51 = arith.mulf %46, %50 : vector<8x8xf32>
    %cst_27 = arith.constant dense<0.000000e+00> : vector<8x32xf32>
    %52 = tpu.matmul %51, %38, %cst_27 {dimension_numbers = #tpu.dot_dimension_numbers<[1], [0], [0], [1], [0, 0, 1, 1], [], []>} : vector<8x8xf32>, vector<8x32xf32>, vector<8x32xf32> -> vector<8x32xf32>
    %c32 = arith.constant 32 : index
    %c0_28 = arith.constant 0 : index
    %53 = vector.load %arg7[%c32, %c0_28] : memref<256x256xf32, #tpu.memory_space<vmem>>, vector<32x256xf32>
    %cst_29 = arith.constant dense<0.000000e+00> : vector<8x256xf32>
    %54 = tpu.matmul %52, %53, %cst_29 {dimension_numbers = #tpu.dot_dimension_numbers<[1], [0], [0], [1], [0, 0, 1, 1], [], []>} : vector<8x32xf32>, vector<32x256xf32>, vector<8x256xf32> -> vector<8x256xf32>
    %55 = arith.addf %35, %54 : vector<8x256xf32>
    %56 = vector.extract_strided_slice %9 {offsets = [0, 64], sizes = [8, 32], strides = [1, 1]} : vector<8x512xf32> to vector<8x32xf32>
    %57 = vector.extract_strided_slice %9 {offsets = [0, 320], sizes = [8, 32], strides = [1, 1]} : vector<8x512xf32> to vector<8x32xf32>
    %58 = vector.extract_strided_slice %14 {offsets = [0, 64], sizes = [8, 32], strides = [1, 1]} : vector<8x256xf32> to vector<8x32xf32>
    %cst_30 = arith.constant dense<0.000000e+00> : vector<8x8xf32>
    %59 = tpu.matmul %56, %57, %cst_30 {dimension_numbers = #tpu.dot_dimension_numbers<[1], [1], [0], [0], [0, 0, 1, 0], [], []>} : vector<8x32xf32>, vector<8x32xf32>, vector<8x8xf32> -> vector<8x8xf32>
    %cst_31 = arith.constant 0.176776692 : f32
    %60 = vector.broadcast %cst_31 : f32 to vector<8x8xf32>
    %61 = arith.mulf %59, %60 : vector<8x8xf32>
    %cst_32 = arith.constant dense<0xFF800000> : vector<8xf32>
    %62 = vector.multi_reduction <maximumf>, %61, %cst_32 [1] : vector<8x8xf32> to vector<8xf32>
    %63 = vector.shape_cast %62 : vector<8xf32> to vector<8x1xf32>
    %64 = vector.broadcast %63 : vector<8x1xf32> to vector<8x8xf32>
    %65 = arith.subf %61, %64 : vector<8x8xf32>
    %66 = math.exp %65 : vector<8x8xf32>
    %cst_33 = arith.constant dense<0.000000e+00> : vector<8xf32>
    %67 = vector.multi_reduction <add>, %66, %cst_33 [1] : vector<8x8xf32> to vector<8xf32>
    %68 = vector.shape_cast %67 : vector<8xf32> to vector<8x1xf32>
    %69 = tpu.reciprocal %68 {approx = true} : vector<8x1xf32> -> vector<8x1xf32>
    %70 = vector.broadcast %69 : vector<8x1xf32> to vector<8x8xf32>
    %71 = arith.mulf %66, %70 : vector<8x8xf32>
    %cst_34 = arith.constant dense<0.000000e+00> : vector<8x32xf32>
    %72 = tpu.matmul %71, %58, %cst_34 {dimension_numbers = #tpu.dot_dimension_numbers<[1], [0], [0], [1], [0, 0, 1, 1], [], []>} : vector<8x8xf32>, vector<8x32xf32>, vector<8x32xf32> -> vector<8x32xf32>
    %c64 = arith.constant 64 : index
    %c0_35 = arith.constant 0 : index
    %73 = vector.load %arg7[%c64, %c0_35] : memref<256x256xf32, #tpu.memory_space<vmem>>, vector<32x256xf32>
    %cst_36 = arith.constant dense<0.000000e+00> : vector<8x256xf32>
    %74 = tpu.matmul %72, %73, %cst_36 {dimension_numbers = #tpu.dot_dimension_numbers<[1], [0], [0], [1], [0, 0, 1, 1], [], []>} : vector<8x32xf32>, vector<32x256xf32>, vector<8x256xf32> -> vector<8x256xf32>
    %75 = arith.addf %55, %74 : vector<8x256xf32>
    %76 = vector.extract_strided_slice %9 {offsets = [0, 96], sizes = [8, 32], strides = [1, 1]} : vector<8x512xf32> to vector<8x32xf32>
    %77 = vector.extract_strided_slice %9 {offsets = [0, 352], sizes = [8, 32], strides = [1, 1]} : vector<8x512xf32> to vector<8x32xf32>
    %78 = vector.extract_strided_slice %14 {offsets = [0, 96], sizes = [8, 32], strides = [1, 1]} : vector<8x256xf32> to vector<8x32xf32>
    %cst_37 = arith.constant dense<0.000000e+00> : vector<8x8xf32>
    %79 = tpu.matmul %76, %77, %cst_37 {dimension_numbers = #tpu.dot_dimension_numbers<[1], [1], [0], [0], [0, 0, 1, 0], [], []>} : vector<8x32xf32>, vector<8x32xf32>, vector<8x8xf32> -> vector<8x8xf32>
    %cst_38 = arith.constant 0.176776692 : f32
    %80 = vector.broadcast %cst_38 : f32 to vector<8x8xf32>
    %81 = arith.mulf %79, %80 : vector<8x8xf32>
    %cst_39 = arith.constant dense<0xFF800000> : vector<8xf32>
    %82 = vector.multi_reduction <maximumf>, %81, %cst_39 [1] : vector<8x8xf32> to vector<8xf32>
    %83 = vector.shape_cast %82 : vector<8xf32> to vector<8x1xf32>
    %84 = vector.broadcast %83 : vector<8x1xf32> to vector<8x8xf32>
    %85 = arith.subf %81, %84 : vector<8x8xf32>
    %86 = math.exp %85 : vector<8x8xf32>
    %cst_40 = arith.constant dense<0.000000e+00> : vector<8xf32>
    %87 = vector.multi_reduction <add>, %86, %cst_40 [1] : vector<8x8xf32> to vector<8xf32>
    %88 = vector.shape_cast %87 : vector<8xf32> to vector<8x1xf32>
    %89 = tpu.reciprocal %88 {approx = true} : vector<8x1xf32> -> vector<8x1xf32>
    %90 = vector.broadcast %89 : vector<8x1xf32> to vector<8x8xf32>
    %91 = arith.mulf %86, %90 : vector<8x8xf32>
    %cst_41 = arith.constant dense<0.000000e+00> : vector<8x32xf32>
    %92 = tpu.matmul %91, %78, %cst_41 {dimension_numbers = #tpu.dot_dimension_numbers<[1], [0], [0], [1], [0, 0, 1, 1], [], []>} : vector<8x8xf32>, vector<8x32xf32>, vector<8x32xf32> -> vector<8x32xf32>
    %c96 = arith.constant 96 : index
    %c0_42 = arith.constant 0 : index
    %93 = vector.load %arg7[%c96, %c0_42] : memref<256x256xf32, #tpu.memory_space<vmem>>, vector<32x256xf32>
    %cst_43 = arith.constant dense<0.000000e+00> : vector<8x256xf32>
    %94 = tpu.matmul %92, %93, %cst_43 {dimension_numbers = #tpu.dot_dimension_numbers<[1], [0], [0], [1], [0, 0, 1, 1], [], []>} : vector<8x32xf32>, vector<32x256xf32>, vector<8x256xf32> -> vector<8x256xf32>
    %95 = arith.addf %75, %94 : vector<8x256xf32>
    %96 = vector.extract_strided_slice %9 {offsets = [0, 128], sizes = [8, 32], strides = [1, 1]} : vector<8x512xf32> to vector<8x32xf32>
    %97 = vector.extract_strided_slice %9 {offsets = [0, 384], sizes = [8, 32], strides = [1, 1]} : vector<8x512xf32> to vector<8x32xf32>
    %98 = vector.extract_strided_slice %14 {offsets = [0, 128], sizes = [8, 32], strides = [1, 1]} : vector<8x256xf32> to vector<8x32xf32>
    %cst_44 = arith.constant dense<0.000000e+00> : vector<8x8xf32>
    %99 = tpu.matmul %96, %97, %cst_44 {dimension_numbers = #tpu.dot_dimension_numbers<[1], [1], [0], [0], [0, 0, 1, 0], [], []>} : vector<8x32xf32>, vector<8x32xf32>, vector<8x8xf32> -> vector<8x8xf32>
    %cst_45 = arith.constant 0.176776692 : f32
    %100 = vector.broadcast %cst_45 : f32 to vector<8x8xf32>
    %101 = arith.mulf %99, %100 : vector<8x8xf32>
    %cst_46 = arith.constant dense<0xFF800000> : vector<8xf32>
    %102 = vector.multi_reduction <maximumf>, %101, %cst_46 [1] : vector<8x8xf32> to vector<8xf32>
    %103 = vector.shape_cast %102 : vector<8xf32> to vector<8x1xf32>
    %104 = vector.broadcast %103 : vector<8x1xf32> to vector<8x8xf32>
    %105 = arith.subf %101, %104 : vector<8x8xf32>
    %106 = math.exp %105 : vector<8x8xf32>
    %cst_47 = arith.constant dense<0.000000e+00> : vector<8xf32>
    %107 = vector.multi_reduction <add>, %106, %cst_47 [1] : vector<8x8xf32> to vector<8xf32>
    %108 = vector.shape_cast %107 : vector<8xf32> to vector<8x1xf32>
    %109 = tpu.reciprocal %108 {approx = true} : vector<8x1xf32> -> vector<8x1xf32>
    %110 = vector.broadcast %109 : vector<8x1xf32> to vector<8x8xf32>
    %111 = arith.mulf %106, %110 : vector<8x8xf32>
    %cst_48 = arith.constant dense<0.000000e+00> : vector<8x32xf32>
    %112 = tpu.matmul %111, %98, %cst_48 {dimension_numbers = #tpu.dot_dimension_numbers<[1], [0], [0], [1], [0, 0, 1, 1], [], []>} : vector<8x8xf32>, vector<8x32xf32>, vector<8x32xf32> -> vector<8x32xf32>
    %c128 = arith.constant 128 : index
    %c0_49 = arith.constant 0 : index
    %113 = vector.load %arg7[%c128, %c0_49] : memref<256x256xf32, #tpu.memory_space<vmem>>, vector<32x256xf32>
    %cst_50 = arith.constant dense<0.000000e+00> : vector<8x256xf32>
    %114 = tpu.matmul %112, %113, %cst_50 {dimension_numbers = #tpu.dot_dimension_numbers<[1], [0], [0], [1], [0, 0, 1, 1], [], []>} : vector<8x32xf32>, vector<32x256xf32>, vector<8x256xf32> -> vector<8x256xf32>
    %115 = arith.addf %95, %114 : vector<8x256xf32>
    %116 = vector.extract_strided_slice %9 {offsets = [0, 160], sizes = [8, 32], strides = [1, 1]} : vector<8x512xf32> to vector<8x32xf32>
    %117 = vector.extract_strided_slice %9 {offsets = [0, 416], sizes = [8, 32], strides = [1, 1]} : vector<8x512xf32> to vector<8x32xf32>
    %118 = vector.extract_strided_slice %14 {offsets = [0, 160], sizes = [8, 32], strides = [1, 1]} : vector<8x256xf32> to vector<8x32xf32>
    %cst_51 = arith.constant dense<0.000000e+00> : vector<8x8xf32>
    %119 = tpu.matmul %116, %117, %cst_51 {dimension_numbers = #tpu.dot_dimension_numbers<[1], [1], [0], [0], [0, 0, 1, 0], [], []>} : vector<8x32xf32>, vector<8x32xf32>, vector<8x8xf32> -> vector<8x8xf32>
    %cst_52 = arith.constant 0.176776692 : f32
    %120 = vector.broadcast %cst_52 : f32 to vector<8x8xf32>
    %121 = arith.mulf %119, %120 : vector<8x8xf32>
    %cst_53 = arith.constant dense<0xFF800000> : vector<8xf32>
    %122 = vector.multi_reduction <maximumf>, %121, %cst_53 [1] : vector<8x8xf32> to vector<8xf32>
    %123 = vector.shape_cast %122 : vector<8xf32> to vector<8x1xf32>
    %124 = vector.broadcast %123 : vector<8x1xf32> to vector<8x8xf32>
    %125 = arith.subf %121, %124 : vector<8x8xf32>
    %126 = math.exp %125 : vector<8x8xf32>
    %cst_54 = arith.constant dense<0.000000e+00> : vector<8xf32>
    %127 = vector.multi_reduction <add>, %126, %cst_54 [1] : vector<8x8xf32> to vector<8xf32>
    %128 = vector.shape_cast %127 : vector<8xf32> to vector<8x1xf32>
    %129 = tpu.reciprocal %128 {approx = true} : vector<8x1xf32> -> vector<8x1xf32>
    %130 = vector.broadcast %129 : vector<8x1xf32> to vector<8x8xf32>
    %131 = arith.mulf %126, %130 : vector<8x8xf32>
    %cst_55 = arith.constant dense<0.000000e+00> : vector<8x32xf32>
    %132 = tpu.matmul %131, %118, %cst_55 {dimension_numbers = #tpu.dot_dimension_numbers<[1], [0], [0], [1], [0, 0, 1, 1], [], []>} : vector<8x8xf32>, vector<8x32xf32>, vector<8x32xf32> -> vector<8x32xf32>
    %c160 = arith.constant 160 : index
    %c0_56 = arith.constant 0 : index
    %133 = vector.load %arg7[%c160, %c0_56] : memref<256x256xf32, #tpu.memory_space<vmem>>, vector<32x256xf32>
    %cst_57 = arith.constant dense<0.000000e+00> : vector<8x256xf32>
    %134 = tpu.matmul %132, %133, %cst_57 {dimension_numbers = #tpu.dot_dimension_numbers<[1], [0], [0], [1], [0, 0, 1, 1], [], []>} : vector<8x32xf32>, vector<32x256xf32>, vector<8x256xf32> -> vector<8x256xf32>
    %135 = arith.addf %115, %134 : vector<8x256xf32>
    %136 = vector.extract_strided_slice %9 {offsets = [0, 192], sizes = [8, 32], strides = [1, 1]} : vector<8x512xf32> to vector<8x32xf32>
    %137 = vector.extract_strided_slice %9 {offsets = [0, 448], sizes = [8, 32], strides = [1, 1]} : vector<8x512xf32> to vector<8x32xf32>
    %138 = vector.extract_strided_slice %14 {offsets = [0, 192], sizes = [8, 32], strides = [1, 1]} : vector<8x256xf32> to vector<8x32xf32>
    %cst_58 = arith.constant dense<0.000000e+00> : vector<8x8xf32>
    %139 = tpu.matmul %136, %137, %cst_58 {dimension_numbers = #tpu.dot_dimension_numbers<[1], [1], [0], [0], [0, 0, 1, 0], [], []>} : vector<8x32xf32>, vector<8x32xf32>, vector<8x8xf32> -> vector<8x8xf32>
    %cst_59 = arith.constant 0.176776692 : f32
    %140 = vector.broadcast %cst_59 : f32 to vector<8x8xf32>
    %141 = arith.mulf %139, %140 : vector<8x8xf32>
    %cst_60 = arith.constant dense<0xFF800000> : vector<8xf32>
    %142 = vector.multi_reduction <maximumf>, %141, %cst_60 [1] : vector<8x8xf32> to vector<8xf32>
    %143 = vector.shape_cast %142 : vector<8xf32> to vector<8x1xf32>
    %144 = vector.broadcast %143 : vector<8x1xf32> to vector<8x8xf32>
    %145 = arith.subf %141, %144 : vector<8x8xf32>
    %146 = math.exp %145 : vector<8x8xf32>
    %cst_61 = arith.constant dense<0.000000e+00> : vector<8xf32>
    %147 = vector.multi_reduction <add>, %146, %cst_61 [1] : vector<8x8xf32> to vector<8xf32>
    %148 = vector.shape_cast %147 : vector<8xf32> to vector<8x1xf32>
    %149 = tpu.reciprocal %148 {approx = true} : vector<8x1xf32> -> vector<8x1xf32>
    %150 = vector.broadcast %149 : vector<8x1xf32> to vector<8x8xf32>
    %151 = arith.mulf %146, %150 : vector<8x8xf32>
    %cst_62 = arith.constant dense<0.000000e+00> : vector<8x32xf32>
    %152 = tpu.matmul %151, %138, %cst_62 {dimension_numbers = #tpu.dot_dimension_numbers<[1], [0], [0], [1], [0, 0, 1, 1], [], []>} : vector<8x8xf32>, vector<8x32xf32>, vector<8x32xf32> -> vector<8x32xf32>
    %c192 = arith.constant 192 : index
    %c0_63 = arith.constant 0 : index
    %153 = vector.load %arg7[%c192, %c0_63] : memref<256x256xf32, #tpu.memory_space<vmem>>, vector<32x256xf32>
    %cst_64 = arith.constant dense<0.000000e+00> : vector<8x256xf32>
    %154 = tpu.matmul %152, %153, %cst_64 {dimension_numbers = #tpu.dot_dimension_numbers<[1], [0], [0], [1], [0, 0, 1, 1], [], []>} : vector<8x32xf32>, vector<32x256xf32>, vector<8x256xf32> -> vector<8x256xf32>
    %155 = arith.addf %135, %154 : vector<8x256xf32>
    %156 = vector.extract_strided_slice %9 {offsets = [0, 224], sizes = [8, 32], strides = [1, 1]} : vector<8x512xf32> to vector<8x32xf32>
    %157 = vector.extract_strided_slice %9 {offsets = [0, 480], sizes = [8, 32], strides = [1, 1]} : vector<8x512xf32> to vector<8x32xf32>
    %158 = vector.extract_strided_slice %14 {offsets = [0, 224], sizes = [8, 32], strides = [1, 1]} : vector<8x256xf32> to vector<8x32xf32>
    %cst_65 = arith.constant dense<0.000000e+00> : vector<8x8xf32>
    %159 = tpu.matmul %156, %157, %cst_65 {dimension_numbers = #tpu.dot_dimension_numbers<[1], [1], [0], [0], [0, 0, 1, 0], [], []>} : vector<8x32xf32>, vector<8x32xf32>, vector<8x8xf32> -> vector<8x8xf32>
    %cst_66 = arith.constant 0.176776692 : f32
    %160 = vector.broadcast %cst_66 : f32 to vector<8x8xf32>
    %161 = arith.mulf %159, %160 : vector<8x8xf32>
    %cst_67 = arith.constant dense<0xFF800000> : vector<8xf32>
    %162 = vector.multi_reduction <maximumf>, %161, %cst_67 [1] : vector<8x8xf32> to vector<8xf32>
    %163 = vector.shape_cast %162 : vector<8xf32> to vector<8x1xf32>
    %164 = vector.broadcast %163 : vector<8x1xf32> to vector<8x8xf32>
    %165 = arith.subf %161, %164 : vector<8x8xf32>
    %166 = math.exp %165 : vector<8x8xf32>
    %cst_68 = arith.constant dense<0.000000e+00> : vector<8xf32>
    %167 = vector.multi_reduction <add>, %166, %cst_68 [1] : vector<8x8xf32> to vector<8xf32>
    %168 = vector.shape_cast %167 : vector<8xf32> to vector<8x1xf32>
    %169 = tpu.reciprocal %168 {approx = true} : vector<8x1xf32> -> vector<8x1xf32>
    %170 = vector.broadcast %169 : vector<8x1xf32> to vector<8x8xf32>
    %171 = arith.mulf %166, %170 : vector<8x8xf32>
    %cst_69 = arith.constant dense<0.000000e+00> : vector<8x32xf32>
    %172 = tpu.matmul %171, %158, %cst_69 {dimension_numbers = #tpu.dot_dimension_numbers<[1], [0], [0], [1], [0, 0, 1, 1], [], []>} : vector<8x8xf32>, vector<8x32xf32>, vector<8x32xf32> -> vector<8x32xf32>
    %c224 = arith.constant 224 : index
    %c0_70 = arith.constant 0 : index
    %173 = vector.load %arg7[%c224, %c0_70] : memref<256x256xf32, #tpu.memory_space<vmem>>, vector<32x256xf32>
    %cst_71 = arith.constant dense<0.000000e+00> : vector<8x256xf32>
    %174 = tpu.matmul %172, %173, %cst_71 {dimension_numbers = #tpu.dot_dimension_numbers<[1], [0], [0], [1], [0, 0, 1, 1], [], []>} : vector<8x32xf32>, vector<32x256xf32>, vector<8x256xf32> -> vector<8x256xf32>
    %175 = arith.addf %155, %174 : vector<8x256xf32>
    %176 = arith.addf %1, %175 : vector<8x256xf32>
    %c0_72 = arith.constant 0 : index
    %c0_73 = arith.constant 0 : index
    %177 = vector.load %arg8[%c0_72, %c0_73] : memref<1x256xf32, #tpu.memory_space<vmem>>, vector<1x256xf32>
    %178 = vector.broadcast %177 : vector<1x256xf32> to vector<8x256xf32>
    %179 = arith.addf %176, %178 : vector<8x256xf32>
    %cst_74 = arith.constant dense<0.000000e+00> : vector<8xf32>
    %180 = vector.multi_reduction <add>, %179, %cst_74 [1] : vector<8x256xf32> to vector<8xf32>
    %181 = vector.shape_cast %180 : vector<8xf32> to vector<8x1xf32>
    %cst_75 = arith.constant 2.560000e+02 : f32
    %182 = vector.broadcast %cst_75 : f32 to vector<8x1xf32>
    %183 = arith.divf %181, %182 : vector<8x1xf32>
    %184 = vector.broadcast %183 : vector<8x1xf32> to vector<8x256xf32>
    %185 = arith.subf %179, %184 : vector<8x256xf32>
    %186 = arith.mulf %185, %185 : vector<8x256xf32>
    %cst_76 = arith.constant dense<0.000000e+00> : vector<8xf32>
    %187 = vector.multi_reduction <add>, %186, %cst_76 [1] : vector<8x256xf32> to vector<8xf32>
    %188 = vector.shape_cast %187 : vector<8xf32> to vector<8x1xf32>
    %cst_77 = arith.constant 2.560000e+02 : f32
    %189 = vector.broadcast %cst_77 : f32 to vector<8x1xf32>
    %190 = arith.divf %188, %189 : vector<8x1xf32>
    %cst_78 = arith.constant 9.99999974E-6 : f32
    %191 = vector.broadcast %cst_78 : f32 to vector<8x1xf32>
    %192 = arith.addf %190, %191 : vector<8x1xf32>
    %193 = math.rsqrt %192 : vector<8x1xf32>
    %194 = vector.broadcast %193 : vector<8x1xf32> to vector<8x256xf32>
    %195 = arith.mulf %185, %194 : vector<8x256xf32>
    %c0_79 = arith.constant 0 : index
    %c0_80 = arith.constant 0 : index
    %196 = vector.load %arg9[%c0_79, %c0_80] : memref<1x256xf32, #tpu.memory_space<vmem>>, vector<1x256xf32>
    %197 = vector.broadcast %196 : vector<1x256xf32> to vector<8x256xf32>
    %198 = arith.mulf %195, %197 : vector<8x256xf32>
    %c0_81 = arith.constant 0 : index
    %c0_82 = arith.constant 0 : index
    %199 = vector.load %arg10[%c0_81, %c0_82] : memref<1x256xf32, #tpu.memory_space<vmem>>, vector<1x256xf32>
    %200 = vector.broadcast %199 : vector<1x256xf32> to vector<8x256xf32>
    %201 = arith.addf %198, %200 : vector<8x256xf32>
    %c0_83 = arith.constant 0 : index
    %c0_84 = arith.constant 0 : index
    %c0_85 = arith.constant 0 : index
    %202 = vector.load %arg11[%c0_83, %c0_84, %c0_85] : memref<1x8x256xf32, #tpu.memory_space<vmem>>, vector<1x8x256xf32>
    %203 = vector.shape_cast %202 : vector<1x8x256xf32> to vector<8x256xf32>
    %204 = vector.shape_cast %201 : vector<8x256xf32> to vector<1x8x256xf32>
    tpu.vector_store %arg11[%c0_83, %c0_84, %c0_85], %204 {strides = array<i32>} : memref<1x8x256xf32, #tpu.memory_space<vmem>>, vector<1x8x256xf32>,
    return
  }
  func.func @transform_0(%arg0: i32) -> (i32, i32, i32) {
    %c0_i32 = arith.constant 0 : i32
    %c0_i32_0 = arith.constant 0 : i32
    %c0_i32_1 = arith.constant 0 : i32
    return %arg0, %c0_i32, %c0_i32_0 : i32, i32, i32
  }
  func.func @transform_1(%arg0: i32) -> (i32, i32, i32) {
    %c0_i32 = arith.constant 0 : i32
    %c0_i32_0 = arith.constant 0 : i32
    %c0_i32_1 = arith.constant 0 : i32
    return %arg0, %c0_i32, %c0_i32_0 : i32, i32, i32
  }
  func.func @transform_2(%arg0: i32) -> (i32, i32) {
    %c0_i32 = arith.constant 0 : i32
    %c0_i32_0 = arith.constant 0 : i32
    %c0_i32_1 = arith.constant 0 : i32
    return %c0_i32, %c0_i32_0 : i32, i32
  }
  func.func @transform_3(%arg0: i32) -> (i32, i32) {
    %c0_i32 = arith.constant 0 : i32
    %c0_i32_0 = arith.constant 0 : i32
    %c0_i32_1 = arith.constant 0 : i32
    return %c0_i32, %c0_i32_0 : i32, i32
  }
  func.func @transform_4(%arg0: i32) -> (i32, i32) {
    %c0_i32 = arith.constant 0 : i32
    %c0_i32_0 = arith.constant 0 : i32
    %c0_i32_1 = arith.constant 0 : i32
    return %c0_i32, %c0_i32_0 : i32, i32
  }
  func.func @transform_5(%arg0: i32) -> (i32, i32) {
    %c0_i32 = arith.constant 0 : i32
    %c0_i32_0 = arith.constant 0 : i32
    %c0_i32_1 = arith.constant 0 : i32
    return %c0_i32, %c0_i32_0 : i32, i32
  }
  func.func @transform_6(%arg0: i32) -> (i32, i32) {
    %c0_i32 = arith.constant 0 : i32
    %c0_i32_0 = arith.constant 0 : i32
    %c0_i32_1 = arith.constant 0 : i32
    return %c0_i32, %c0_i32_0 : i32, i32
  }
  func.func @transform_7(%arg0: i32) -> (i32, i32) {
    %c0_i32 = arith.constant 0 : i32
    %c0_i32_0 = arith.constant 0 : i32
    %c0_i32_1 = arith.constant 0 : i32
    return %c0_i32, %c0_i32_0 : i32, i32
  }
  func.func @transform_8(%arg0: i32) -> (i32, i32) {
    %c0_i32 = arith.constant 0 : i32
    %c0_i32_0 = arith.constant 0 : i32
    %c0_i32_1 = arith.constant 0 : i32
    return %c0_i32, %c0_i32_0 : i32, i32
  }
  func.func @transform_9(%arg0: i32) -> (i32, i32) {
    %c0_i32 = arith.constant 0 : i32
    %c0_i32_0 = arith.constant 0 : i32
    %c0_i32_1 = arith.constant 0 : i32
    return %c0_i32, %c0_i32_0 : i32, i32
  }
  func.func @transform_10(%arg0: i32) -> (i32, i32, i32) {
    %c0_i32 = arith.constant 0 : i32
    %c0_i32_0 = arith.constant 0 : i32
    %c0_i32_1 = arith.constant 0 : i32
    return %arg0, %c0_i32, %c0_i32_0 : i32, i32, i32
  }
}

module attributes {stable_mosaic.version = 11 : i64} {
  func.func @_ffn_ln_kernel(%arg0: i32, %arg1: memref<16x256xf32, #tpu.memory_space<vmem>>, %arg2: memref<1x256xf32, #tpu.memory_space<vmem>>, %arg3: memref<1x256xf32, #tpu.memory_space<vmem>>, %arg4: memref<256x512xf32, #tpu.memory_space<vmem>>, %arg5: memref<1x512xf32, #tpu.memory_space<vmem>>, %arg6: memref<512x256xf32, #tpu.memory_space<vmem>>, %arg7: memref<1x256xf32, #tpu.memory_space<vmem>>, %arg8: memref<16x256xf32, #tpu.memory_space<vmem>>) attributes {dimension_semantics = [#tpu.dimension_semantics<parallel>], iteration_bounds = array<i64: 1>, scalar_prefetch = 0 : i64, scratch_operands = 0 : i64, tpu.core_type = #tpu.core_type<tc>, window_params = [{transform_indices = @transform_0, window_bounds = array<i64: 16, 256>}, {pipeline_mode = #tpu.pipeline_mode<synchronous>, transform_indices = @transform_1, window_bounds = array<i64: 1, 256>}, {pipeline_mode = #tpu.pipeline_mode<synchronous>, transform_indices = @transform_2, window_bounds = array<i64: 1, 256>}, {pipeline_mode = #tpu.pipeline_mode<synchronous>, transform_indices = @transform_3, window_bounds = array<i64: 256, 512>}, {pipeline_mode = #tpu.pipeline_mode<synchronous>, transform_indices = @transform_4, window_bounds = array<i64: 1, 512>}, {pipeline_mode = #tpu.pipeline_mode<synchronous>, transform_indices = @transform_5, window_bounds = array<i64: 512, 256>}, {pipeline_mode = #tpu.pipeline_mode<synchronous>, transform_indices = @transform_6, window_bounds = array<i64: 1, 256>}, {transform_indices = @transform_7, window_bounds = array<i64: 16, 256>}]} {
    %c0 = arith.constant 0 : index
    %c0_0 = arith.constant 0 : index
    %0 = vector.load %arg1[%c0, %c0_0] : memref<16x256xf32, #tpu.memory_space<vmem>>, vector<16x256xf32>
    %1 = arith.addf %0, %0 : vector<16x256xf32>
    %cst = arith.constant dense<0.000000e+00> : vector<16xf32>
    %2 = vector.multi_reduction <add>, %1, %cst [1] : vector<16x256xf32> to vector<16xf32>
    %3 = vector.shape_cast %2 : vector<16xf32> to vector<16x1xf32>
    %cst_1 = arith.constant 2.560000e+02 : f32
    %4 = vector.broadcast %cst_1 : f32 to vector<16x1xf32>
    %5 = arith.divf %3, %4 : vector<16x1xf32>
    %6 = vector.broadcast %5 : vector<16x1xf32> to vector<16x256xf32>
    %7 = arith.subf %1, %6 : vector<16x256xf32>
    %8 = arith.mulf %7, %7 : vector<16x256xf32>
    %cst_2 = arith.constant dense<0.000000e+00> : vector<16xf32>
    %9 = vector.multi_reduction <add>, %8, %cst_2 [1] : vector<16x256xf32> to vector<16xf32>
    %10 = vector.shape_cast %9 : vector<16xf32> to vector<16x1xf32>
    %cst_3 = arith.constant 2.560000e+02 : f32
    %11 = vector.broadcast %cst_3 : f32 to vector<16x1xf32>
    %12 = arith.divf %10, %11 : vector<16x1xf32>
    %cst_4 = arith.constant 9.99999974E-6 : f32
    %13 = vector.broadcast %cst_4 : f32 to vector<16x1xf32>
    %14 = arith.addf %12, %13 : vector<16x1xf32>
    %15 = math.rsqrt %14 : vector<16x1xf32>
    %16 = vector.broadcast %15 : vector<16x1xf32> to vector<16x256xf32>
    %17 = arith.mulf %7, %16 : vector<16x256xf32>
    %c0_5 = arith.constant 0 : index
    %c0_6 = arith.constant 0 : index
    %18 = vector.load %arg2[%c0_5, %c0_6] : memref<1x256xf32, #tpu.memory_space<vmem>>, vector<1x256xf32>
    %19 = vector.broadcast %18 : vector<1x256xf32> to vector<16x256xf32>
    %20 = arith.mulf %17, %19 : vector<16x256xf32>
    %c0_7 = arith.constant 0 : index
    %c0_8 = arith.constant 0 : index
    %21 = vector.load %arg3[%c0_7, %c0_8] : memref<1x256xf32, #tpu.memory_space<vmem>>, vector<1x256xf32>
    %22 = vector.broadcast %21 : vector<1x256xf32> to vector<16x256xf32>
    %23 = arith.addf %20, %22 : vector<16x256xf32>
    %c0_9 = arith.constant 0 : index
    %c0_10 = arith.constant 0 : index
    %24 = vector.load %arg4[%c0_9, %c0_10] : memref<256x512xf32, #tpu.memory_space<vmem>>, vector<256x512xf32>
    %cst_11 = arith.constant dense<0.000000e+00> : vector<16x512xf32>
    %25 = tpu.matmul %23, %24, %cst_11 {dimension_numbers = #tpu.dot_dimension_numbers<[1], [0], [0], [1], [0, 0, 1, 1], [], []>} : vector<16x256xf32>, vector<256x512xf32>, vector<16x512xf32> -> vector<16x512xf32>
    %c0_12 = arith.constant 0 : index
    %c0_13 = arith.constant 0 : index
    %26 = vector.load %arg5[%c0_12, %c0_13] : memref<1x512xf32, #tpu.memory_space<vmem>>, vector<1x512xf32>
    %27 = vector.broadcast %26 : vector<1x512xf32> to vector<16x512xf32>
    %28 = arith.addf %25, %27 : vector<16x512xf32>
    %cst_14 = arith.constant 0.000000e+00 : f32
    %29 = vector.broadcast %cst_14 : f32 to vector<16x512xf32>
    %30 = arith.maximumf %28, %29 : vector<16x512xf32>
    %c0_15 = arith.constant 0 : index
    %c0_16 = arith.constant 0 : index
    %31 = vector.load %arg6[%c0_15, %c0_16] : memref<512x256xf32, #tpu.memory_space<vmem>>, vector<512x256xf32>
    %cst_17 = arith.constant dense<0.000000e+00> : vector<16x256xf32>
    %32 = tpu.matmul %30, %31, %cst_17 {dimension_numbers = #tpu.dot_dimension_numbers<[1], [0], [0], [1], [0, 0, 1, 1], [], []>} : vector<16x512xf32>, vector<512x256xf32>, vector<16x256xf32> -> vector<16x256xf32>
    %c0_18 = arith.constant 0 : index
    %c0_19 = arith.constant 0 : index
    %33 = vector.load %arg7[%c0_18, %c0_19] : memref<1x256xf32, #tpu.memory_space<vmem>>, vector<1x256xf32>
    %34 = vector.broadcast %33 : vector<1x256xf32> to vector<16x256xf32>
    %35 = arith.addf %32, %34 : vector<16x256xf32>
    %36 = arith.addf %23, %35 : vector<16x256xf32>
    %c0_20 = arith.constant 0 : index
    %c0_21 = arith.constant 0 : index
    %37 = vector.load %arg8[%c0_20, %c0_21] : memref<16x256xf32, #tpu.memory_space<vmem>>, vector<16x256xf32>
    tpu.vector_store %arg8[%c0_20, %c0_21], %36 {strides = array<i32>} : memref<16x256xf32, #tpu.memory_space<vmem>>, vector<16x256xf32>,
    return
  }
  func.func @transform_0(%arg0: i32) -> (i32, i32) {
    %c0_i32 = arith.constant 0 : i32
    %c0_i32_0 = arith.constant 0 : i32
    return %arg0, %c0_i32 : i32, i32
  }
  func.func @transform_1(%arg0: i32) -> (i32, i32) {
    %c0_i32 = arith.constant 0 : i32
    %c0_i32_0 = arith.constant 0 : i32
    %c0_i32_1 = arith.constant 0 : i32
    return %c0_i32, %c0_i32_0 : i32, i32
  }
  func.func @transform_2(%arg0: i32) -> (i32, i32) {
    %c0_i32 = arith.constant 0 : i32
    %c0_i32_0 = arith.constant 0 : i32
    %c0_i32_1 = arith.constant 0 : i32
    return %c0_i32, %c0_i32_0 : i32, i32
  }
  func.func @transform_3(%arg0: i32) -> (i32, i32) {
    %c0_i32 = arith.constant 0 : i32
    %c0_i32_0 = arith.constant 0 : i32
    %c0_i32_1 = arith.constant 0 : i32
    return %c0_i32, %c0_i32_0 : i32, i32
  }
  func.func @transform_4(%arg0: i32) -> (i32, i32) {
    %c0_i32 = arith.constant 0 : i32
    %c0_i32_0 = arith.constant 0 : i32
    %c0_i32_1 = arith.constant 0 : i32
    return %c0_i32, %c0_i32_0 : i32, i32
  }
  func.func @transform_5(%arg0: i32) -> (i32, i32) {
    %c0_i32 = arith.constant 0 : i32
    %c0_i32_0 = arith.constant 0 : i32
    %c0_i32_1 = arith.constant 0 : i32
    return %c0_i32, %c0_i32_0 : i32, i32
  }
  func.func @transform_6(%arg0: i32) -> (i32, i32) {
    %c0_i32 = arith.constant 0 : i32
    %c0_i32_0 = arith.constant 0 : i32
    %c0_i32_1 = arith.constant 0 : i32
    return %c0_i32, %c0_i32_0 : i32, i32
  }
  func.func @transform_7(%arg0: i32) -> (i32, i32) {
    %c0_i32 = arith.constant 0 : i32
    %c0_i32_0 = arith.constant 0 : i32
    return %arg0, %c0_i32 : i32, i32
  }
}

</mosaic_0001>

<bundles_post_ra>
// kernel: decoder_layer_forward.3
= control target key start
LH: loop header
LB: loop body
LE: loop exit
PB: predicated region body
PF: predicated region fallthrough
CT: control target
= control target key end

     0   :  { %s1909_s0 = inlined_call_operand.vmem [shape: f32[16,256], index: 0, kind: input, shape index: {}]   ;;  %s1910_s3 = inlined_call_operand.vmem [shape: f32[256,512], index: 3, kind: input, shape index: {}]   ;;  %s1911_s5 = inlined_call_operand.vmem [shape: f32[512,256], index: 5, kind: input, shape index: {}]   ;;  %s1912_s1 = inlined_call_operand.vmem [shape: f32[1,256], index: 1, kind: input, shape index: {}]   ;;  %s1913_s2 = inlined_call_operand.vmem [shape: f32[1,256], index: 2, kind: input, shape index: {}]   ;;  %s1914_s4 = inlined_call_operand.vmem [shape: f32[1,512], index: 4, kind: input, shape index: {}]   ;;  %s1915_s6 = inlined_call_operand.vmem [shape: f32[1,256], index: 6, kind: input, shape index: {}]   ;;  %s1916_s7 = inlined_call_operand.vmem [shape: f32[16,256], index: 7, kind: output, shape index: {}]  }
   0x1   :  { %v26_v0 = vld [vmem:[%s1909_s0] sm:$0xff]  ;;  %v27_v1 = vld [vmem:[%s1909_s0 + $0x8] sm:$0xff]  ;;  %v28_v2 = vld [vmem:[%s1909_s0 + $0x10] sm:$0xff] }
   0x2   :  { %v1034_v3 = vadd.f32 %v26_v0, %v26_v0  ;;  %v1036_v4 = vadd.f32 %v27_v1, %v27_v1  ;;  %v29_v5 = vld [vmem:[%s1909_s0 + $0x18] sm:$0xff]  ;;  %v1041_v6 = vadd.f32 %v28_v2, %v28_v2  ;;  %v100_v10 = vld [vmem:[%s1910_s3 + $0x8] sm:$0xff]  ;;  %v99_v12 = vld [vmem:[%s1910_s3] sm:$0xff] }
   0x3   :  { %v1043_v7 = vadd.f32 %v29_v5, %v29_v5  ;;  %v104_v11 = vld [vmem:[%s1910_s3 + $0x28] sm:$0xff]  ;;  %v103_v14 = vld [vmem:[%s1910_s3 + $0x20] sm:$0xff] }
   0x4   :  { %v34_v8 = vadd.f32 %v1036_v4, %v1034_v3  ;;  %v717_v13 = vpack.c.bf16 %v104_v11, %v100_v10  ;;  %v108_v15 = vld [vmem:[%s1910_s3 + $0x48] sm:$0xff]  ;;  %v719_v17 = vpack.c.bf16 %v103_v14, %v99_v12  ;;  %v107_v19 = vld [vmem:[%s1910_s3 + $0x40] sm:$0xff] }
   0x5   :  { %v37_v9 = vadd.f32 %v1043_v7, %v1041_v6  ;;  %v112_v16 = vld [vmem:[%s1910_s3 + $0x68] sm:$0xff]  ;;  %v111_v20 = vld [vmem:[%s1910_s3 + $0x60] sm:$0xff] }
   0x6   :  { %35 = vadd.xlane.f32.xlu0 %v34_v8  ;;  %v721_v18 = vpack.c.bf16 %v112_v16, %v108_v15  ;;  %v116_v21 = vld [vmem:[%s1910_s3 + $0x88] sm:$0xff]  ;;  %718 = vmatprep.subr.bf16.mxu1 %v717_v13  ;;  %v723_v23 = vpack.c.bf16 %v111_v20, %v107_v19  ;;  %v115_v25 = vld [vmem:[%s1910_s3 + $0x80] sm:$0xff] }
   0x7   :  { %v120_v22 = vld [vmem:[%s1910_s3 + $0xa8] sm:$0xff]  ;;  %720 = vmatpush1.bf16.msra.mxu1 %v719_v17  ;;  %v119_v26 = vld [vmem:[%s1910_s3 + $0xa0] sm:$0xff] }
   0x8   :  { %722 = vmatprep.subr.bf16.mxu1 %v721_v18  ;;  %v725_v24 = vpack.c.bf16 %v120_v22, %v116_v21  ;;  %v124_v27 = vld [vmem:[%s1910_s3 + $0xc8] sm:$0xff]  ;;  %v727_v29 = vpack.c.bf16 %v119_v26, %v115_v25  ;;  %v123_v31 = vld [vmem:[%s1910_s3 + $0xc0] sm:$0xff] }
   0x9   :  { %v128_v28 = vld [vmem:[%s1910_s3 + $0xe8] sm:$0xff]  ;;  %v127_v32 = vld [vmem:[%s1910_s3 + $0xe0] sm:$0xff] }
   0xa   :  { %38 = vadd.xlane.f32.xlu0 %v37_v9  ;;  %v729_v30 = vpack.c.bf16 %v128_v28, %v124_v27  ;;  %v132_v33 = vld [vmem:[%s1910_s3 + $0x108] sm:$0xff]  ;;  %v731_v35 = vpack.c.bf16 %v127_v32, %v123_v31  ;;  %v131_v37 = vld [vmem:[%s1910_s3 + $0x100] sm:$0xff] }
   0xb   :  { %724 = vmatpush1.bf16.msra.mxu1 %v723_v23  ;;  %v136_v34 = vld [vmem:[%s1910_s3 + $0x128] sm:$0xff]  ;;  %v135_v38 = vld [vmem:[%s1910_s3 + $0x120] sm:$0xff] }
   0xc   :  { %726 = vmatprep.subr.bf16.mxu1 %v725_v24  ;;  %v733_v36 = vpack.c.bf16 %v136_v34, %v132_v33  ;;  %v140_v39 = vld [vmem:[%s1910_s3 + $0x148] sm:$0xff]  ;;  %v735_v41 = vpack.c.bf16 %v135_v38, %v131_v37  ;;  %v139_v43 = vld [vmem:[%s1910_s3 + $0x140] sm:$0xff] }
   0xd   :  { %v144_v40 = vld [vmem:[%s1910_s3 + $0x168] sm:$0xff]  ;;  %v143_v44 = vld [vmem:[%s1910_s3 + $0x160] sm:$0xff] }
   0xe   :  { %v737_v42 = vpack.c.bf16 %v144_v40, %v140_v39  ;;  %v148_v45 = vld [vmem:[%s1910_s3 + $0x188] sm:$0xff]  ;;  %v739_v47 = vpack.c.bf16 %v143_v44, %v139_v43  ;;  %v147_v49 = vld [vmem:[%s1910_s3 + $0x180] sm:$0xff] }
   0xf   :  { %728 = vmatpush1.bf16.msra.mxu1 %v727_v29  ;;  %v152_v46 = vld [vmem:[%s1910_s3 + $0x1a8] sm:$0xff]  ;;  %v151_v50 = vld [vmem:[%s1910_s3 + $0x1a0] sm:$0xff] }
  0x10   :  { %730 = vmatprep.subr.bf16.mxu1 %v729_v30  ;;  %v741_v48 = vpack.c.bf16 %v152_v46, %v148_v45  ;;  %v156_v51 = vld [vmem:[%s1910_s3 + $0x1c8] sm:$0xff]  ;;  %v743_v53 = vpack.c.bf16 %v151_v50, %v147_v49  ;;  %v155_v55 = vld [vmem:[%s1910_s3 + $0x1c0] sm:$0xff] }
  0x11   :  { %v160_v52 = vld [vmem:[%s1910_s3 + $0x1e8] sm:$0xff]  ;;  %v159_v56 = vld [vmem:[%s1910_s3 + $0x1e0] sm:$0xff] }
  0x12   :  { %v745_v54 = vpack.c.bf16 %v160_v52, %v156_v51  ;;  %v164_v57 = vld [vmem:[%s1910_s3 + $0x208] sm:$0xff]  ;;  %v747_v59 = vpack.c.bf16 %v159_v56, %v155_v55  ;;  %v163_v61 = vld [vmem:[%s1910_s3 + $0x200] sm:$0xff]  ;;  %v102_v56 = vld [vmem:[%s1910_s3 + $0x18] sm:$0xff] }
  0x13   :  { %732 = vmatpush1.bf16.msra.mxu1 %v731_v35  ;;  %v168_v58 = vld [vmem:[%s1910_s3 + $0x228] sm:$0xff]  ;;  %v167_v62 = vld [vmem:[%s1910_s3 + $0x220] sm:$0xff] }
  0x14   :  { %734 = vmatprep.subr.bf16.mxu1 %v733_v36  ;;  %v749_v60 = vpack.c.bf16 %v168_v58, %v164_v57  ;;  %v172_v63 = vld [vmem:[%s1910_s3 + $0x248] sm:$0xff]  ;;  %v751_v1 = vpack.c.bf16 %v167_v62, %v163_v61  ;;  %v171_v5 = vld [vmem:[%s1910_s3 + $0x240] sm:$0xff]  ;;  %v106_v57 = vld [vmem:[%s1910_s3 + $0x38] sm:$0xff] }
  0x15   :  { %v176_v0 = vld [vmem:[%s1910_s3 + $0x268] sm:$0xff]  ;;  %v175_v8 = vld [vmem:[%s1910_s3 + $0x260] sm:$0xff]  ;;  %v781_v58 = vpack.c.bf16 %v106_v57, %v102_v56  ;;  %v449_v57 = vld [vmem:[%s1911_s5 + $0x130] sm:$0xff] }
  0x16   :  { %v753_v2 = vpack.c.bf16 %v176_v0, %v172_v63  ;;  %v180_v9 = vld [vmem:[%s1910_s3 + $0x288] sm:$0xff]  ;;  %v755_v11 = vpack.c.bf16 %v175_v8, %v171_v5  ;;  %v179_v13 = vld [vmem:[%s1910_s3 + $0x280] sm:$0xff]  ;;  %v413_v63 = vld [vmem:[%s1911_s5 + $0x10] sm:$0xff] }
  0x17   :  { %736 = vmatpush1.bf16.msra.mxu1 %v735_v41  ;;  %v184_v10 = vld [vmem:[%s1910_s3 + $0x2a8] sm:$0xff]  ;;  %v183_v14 = vld [vmem:[%s1910_s3 + $0x2a0] sm:$0xff] }
  0x18   :  { %738 = vmatprep.subr.bf16.mxu1 %v737_v42  ;;  %v757_v12 = vpack.c.bf16 %v184_v10, %v180_v9  ;;  %v759_v15 = vpack.c.bf16 %v183_v14, %v179_v13  ;;  %v188_v28 = vld [vmem:[%s1910_s3 + $0x2c8] sm:$0xff]  ;;  %v187_v29 = vld [vmem:[%s1910_s3 + $0x2c0] sm:$0xff]  ;;  %v417_v9 = vld [vmem:[%s1911_s5 + $0x30] sm:$0xff] }
  0x19   :  { %v191_v30 = vld [vmem:[%s1910_s3 + $0x2e0] sm:$0xff]  ;;  %v196_v32 = vld [vmem:[%s1910_s3 + $0x308] sm:$0xff] }
  0x1a   :  { %v763_v31 = vpack.c.bf16 %v191_v30, %v187_v29  ;;  %v200_v33 = vld [vmem:[%s1910_s3 + $0x328] sm:$0xff]  ;;  %v195_v35 = vld [vmem:[%s1910_s3 + $0x300] sm:$0xff]  ;;  %v434_v29 = vld [vmem:[%s1911_s5 + $0xb8] sm:$0xff] }
  0x1b   :  { %740 = vmatpush1.bf16.msra.mxu1 %v739_v47  ;;  %v765_v34 = vpack.c.bf16 %v200_v33, %v196_v32  ;;  %v199_v36 = vld [vmem:[%s1910_s3 + $0x320] sm:$0xff]  ;;  %v204_v38 = vld [vmem:[%s1910_s3 + $0x348] sm:$0xff]  ;;  %v433_v33 = vld [vmem:[%s1911_s5 + $0xb0] sm:$0xff] }
  0x1c   :  { %742 = vmatprep.subr.bf16.mxu1 %v741_v48  ;;  %v767_v37 = vpack.c.bf16 %v199_v36, %v195_v35  ;;  %v208_v39 = vld [vmem:[%s1910_s3 + $0x368] sm:$0xff]  ;;  %v203_v41 = vld [vmem:[%s1910_s3 + $0x340] sm:$0xff]  ;;  %v438_v35 = vld [vmem:[%s1911_s5 + $0xd8] sm:$0xff] }
  0x1d   :  { %v769_v40 = vpack.c.bf16 %v208_v39, %v204_v38  ;;  %v207_v42 = vld [vmem:[%s1910_s3 + $0x360] sm:$0xff]  ;;  %v212_v44 = vld [vmem:[%s1910_s3 + $0x388] sm:$0xff]  ;;  %v437_v39 = vld [vmem:[%s1911_s5 + $0xd0] sm:$0xff] }
  0x1e   :  { %v771_v43 = vpack.c.bf16 %v207_v42, %v203_v41  ;;  %v216_v45 = vld [vmem:[%s1910_s3 + $0x3a8] sm:$0xff]  ;;  %v211_v46 = vld [vmem:[%s1910_s3 + $0x380] sm:$0xff]  ;;  %v442_v41 = vld [vmem:[%s1911_s5 + $0xf8] sm:$0xff] }
  0x1f   :  { %744 = vmatpush1.bf16.msra.mxu1 %v743_v53  ;;  %v773_v47 = vpack.c.bf16 %v216_v45, %v212_v44  ;;  %v215_v48 = vld [vmem:[%s1910_s3 + $0x3a0] sm:$0xff]  ;;  %v220_v49 = vld [vmem:[%s1910_s3 + $0x3c8] sm:$0xff]  ;;  %v441_v45 = vld [vmem:[%s1911_s5 + $0xf0] sm:$0xff] }
  0x20   :  { %746 = vmatprep.subr.bf16.mxu1 %v745_v54  ;;  %v224_v50 = vld [vmem:[%s1910_s3 + $0x3e8] sm:$0xff]  ;;  %v775_v51 = vpack.c.bf16 %v215_v48, %v211_v46  ;;  %v219_v53 = vld [vmem:[%s1910_s3 + $0x3c0] sm:$0xff] }
  0x21   :  { %v777_v52 = vpack.c.bf16 %v224_v50, %v220_v49  ;;  %v223_v54 = vld [vmem:[%s1910_s3 + $0x3e0] sm:$0xff]  ;;  %v416_v0 = vld [vmem:[%s1911_s5 + $0x28] sm:$0xff] }
  0x22   :  { %v779_v55 = vpack.c.bf16 %v223_v54, %v219_v53  ;;  %v411_v61 = vld [vmem:[%s1911_s5] sm:$0xff]  ;;  %v420_v10 = vld [vmem:[%s1911_s5 + $0x48] sm:$0xff]  ;;  %v450_v53 = vld [vmem:[%s1911_s5 + $0x138] sm:$0xff] }
  0x23   :  { %748 = vmatpush1.bf16.msra.mxu1 %v747_v59  ;;  %v412_v59 = vld [vmem:[%s1911_s5 + $0x8] sm:$0xff]  ;;  %v415_v8 = vld [vmem:[%s1911_s5 + $0x20] sm:$0xff] }
  0x24   :  { %750 = vmatprep.subr.bf16.mxu1 %v749_v60  ;;  %v414_v60 = vld [vmem:[%s1911_s5 + $0x18] sm:$0xff]  ;;  %v419_v14 = vld [vmem:[%s1911_s5 + $0x40] sm:$0xff]  ;;  %v444_v46 = vld [vmem:[%s1911_s5 + $0x108] sm:$0xff] }
  0x25   :  { %v845_v62 = vpack.c.bf16 %v414_v60, %v412_v59  ;;  %v431_v32 = vld [vmem:[%s1911_s5 + $0xa0] sm:$0xff]  ;;  %v454_v59 = vld [vmem:[%s1911_s5 + $0x158] sm:$0xff] }
  0x26   :  { %v867_v36 = vpack.c.bf16 %v433_v33, %v431_v32  ;;  %v435_v38 = vld [vmem:[%s1911_s5 + $0xc0] sm:$0xff]  ;;  %v465_v33 = vld [vmem:[%s1911_s5 + $0x1b0] sm:$0xff] }
  0x27   :  { %752 = vmatpush1.bf16.msra.mxu1 %v751_v1  ;;  %v418_v1 = vld [vmem:[%s1911_s5 + $0x38] sm:$0xff]  ;;  %846 = vmatprep.subr.bf16.mxu0 %v845_v62  ;;  %v871_v42 = vpack.c.bf16 %v437_v39, %v435_v38  ;;  %v439_v44 = vld [vmem:[%s1911_s5 + $0xe0] sm:$0xff] }
  0x28   :  { %754 = vmatprep.subr.bf16.mxu1 %v753_v2  ;;  %v847_v2 = vpack.c.bf16 %v413_v63, %v411_v61  ;;  %v849_v5 = vpack.c.bf16 %v418_v1, %v416_v0  ;;  %v875_v48 = vpack.c.bf16 %v441_v45, %v439_v44  ;;  %v443_v50 = vld [vmem:[%s1911_s5 + $0x100] sm:$0xff]  ;;  %v453_v1 = vld [vmem:[%s1911_s5 + $0x150] sm:$0xff] }
  0x29   :  { %v447_v56 = vld [vmem:[%s1911_s5 + $0x120] sm:$0xff]  ;;  %v105_v44 = vld [vmem:[%s1910_s3 + $0x30] sm:$0xff] }
  0x2a   :  { %848 = vmatpush1.bf16.msra.mxu0 %v847_v2  ;;  %v883_v61 = vpack.c.bf16 %v449_v57, %v447_v56  ;;  %v451_v0 = vld [vmem:[%s1911_s5 + $0x140] sm:$0xff]  ;;  %v69_v2 = vlaneseq }
  0x2b   :  { %756 = vmatpush1.bf16.msra.mxu1 %v755_v11  ;;  %v422_v11 = vld [vmem:[%s1911_s5 + $0x58] sm:$0xff]  ;;  %850 = vmatprep.subr.bf16.mxu0 %v849_v5  ;;  %v456_v5 = vld [vmem:[%s1911_s5 + $0x168] sm:$0xff]  ;;  %v463_v32 = vld [vmem:[%s1911_s5 + $0x1a0] sm:$0xff] }
  0x2c   :  { %758 = vmatprep.subr.bf16.mxu1 %v757_v12  ;;  %v851_v12 = vpack.c.bf16 %v417_v9, %v415_v8  ;;  %v853_v13 = vpack.c.bf16 %v422_v11, %v420_v10  ;;  %v458_v8 = vld [vmem:[%s1911_s5 + $0x178] sm:$0xff]  ;;  %v887_v11 = vpack.c.bf16 %v453_v1, %v451_v0  ;;  %v899_v45 = vpack.c.bf16 %v465_v33, %v463_v32 }
  0x2e   :  { %852 = vmatpush1.bf16.msra.mxu0 %v851_v12 }
  0x2f   :  { %760 = vmatpush1.bf16.msra.mxu1 %v759_v15  ;;  %v421_v15 = vld [vmem:[%s1911_s5 + $0x50] sm:$0xff]  ;;  %854 = vmatprep.subr.bf16.mxu0 %v853_v13  ;;  %v889_v13 = vpack.c.bf16 %v458_v8, %v456_v5 }
  0x30   :  { %v117_v5 = vld [vmem:[%s1910_s3 + $0x90] sm:$0xff] }
  0x31   :  { %v121_v8 = vld [vmem:[%s1910_s3 + $0xb0] sm:$0xff] }
  0x93   :  { %v36_v16 = vpop.xlane.xlu0 %35 }
  0x94   :  { %v41_v17 = vmul.f32 0.00390625, %v36_v16  ;;  %v424_v16 = vld [vmem:[%s1911_s5 + $0x68] sm:$0xff] }
  0x96   :  { %v1182_v18 = vsub.f32 %v1034_v3, %v41_v17  ;;  %v1185_v19 = vsub.f32 %v1036_v4, %v41_v17  ;;  %v426_v17 = vld [vmem:[%s1911_s5 + $0x78] sm:$0xff] }
  0x97   :  { %v39_v20 = vpop.xlane.xlu0 %38 }
  0x98   :  { %v42_v21 = vmul.f32 0.00390625, %v39_v20  ;;  %v47_v22 = vmul.f32 %v1182_v18, %v1182_v18  ;;  %v48_v23 = vmul.f32 %v1185_v19, %v1185_v19  ;;  %v855_v20 = vpack.c.bf16 %v421_v15, %v419_v14  ;;  %v455_v14 = vld [vmem:[%s1911_s5 + $0x160] sm:$0xff]  ;;  %v457_v15 = vld [vmem:[%s1911_s5 + $0x170] sm:$0xff] }
  0x9a   :  { %v1192_v24 = vsub.f32 %v1041_v6, %v42_v21  ;;  %v1195_v25 = vsub.f32 %v1043_v7, %v42_v21  ;;  %v51_v26 = vadd.f32 %v48_v23, %v47_v22  ;;  %v192_v6 = vld [vmem:[%s1910_s3 + $0x2e8] sm:$0xff]  ;;  %v857_v21 = vpack.c.bf16 %v426_v17, %v424_v16  ;;  %v423_v22 = vld [vmem:[%s1911_s5 + $0x60] sm:$0xff]  ;;  %v425_v23 = vld [vmem:[%s1911_s5 + $0x70] sm:$0xff]  ;;  %856 = vmatpush1.bf16.msra.mxu0 %v855_v20 }
  0x9b   :  { %v761_v7 = vpack.c.bf16 %v192_v6, %v188_v28  ;;  %v427_v28 = vld [vmem:[%s1911_s5 + $0x80] sm:$0xff]  ;;  %v429_v6 = vld [vmem:[%s1911_s5 + $0x90] sm:$0xff]  ;;  %v1411_v16 = vshrl.u32 %v69_v2, 7  ;;  %v460_v17 = vld [vmem:[%s1911_s5 + $0x188] sm:$0xff] }
  0x9c   :  { %52 = vadd.xlane.f32.xlu1 %v51_v26  ;;  %v49_v3 = vmul.f32 %v1192_v24, %v1192_v24  ;;  %v50_v4 = vmul.f32 %v1195_v25, %v1195_v25  ;;  %v428_v26 = vld [vmem:[%s1911_s5 + $0x88] sm:$0xff]  ;;  %858 = vmatprep.subr.bf16.mxu0 %v857_v21  ;;  %v863_v30 = vpack.c.bf16 %v429_v6, %v427_v28  ;;  %v462_v20 = vld [vmem:[%s1911_s5 + $0x198] sm:$0xff] }
  0x9d   :  { %762 = vmatprep.subr.bf16.mxu1 %v761_v7  ;;  %v432_v7 = vld [vmem:[%s1911_s5 + $0xa8] sm:$0xff]  ;;  %v466_v6 = vld [vmem:[%s1911_s5 + $0x1b8] sm:$0xff] }
  0x9e   :  { %v54_v27 = vadd.f32 %v50_v4, %v49_v3  ;;  %764 = vmatpush1.bf16.msra.mxu1 %v763_v31  ;;  %v430_v3 = vld [vmem:[%s1911_s5 + $0x98] sm:$0xff]  ;;  %v859_v4 = vpack.c.bf16 %v425_v23, %v423_v22  ;;  %v865_v31 = vpack.c.bf16 %v434_v29, %v432_v7  ;;  %v891_v22 = vpack.c.bf16 %v457_v15, %v455_v14  ;;  %v464_v28 = vld [vmem:[%s1911_s5 + $0x1a8] sm:$0xff]  ;;  %v67_v7 = vld [vmem:[%s1912_s1] sm:$0x3] }
  0x9f   :  { %766 = vmatprep.subr.bf16.mxu1 %v765_v34  ;;  %v436_v34 = vld [vmem:[%s1911_s5 + $0xc8] sm:$0xff]  ;;  %v893_v23 = vpack.c.bf16 %v462_v20, %v460_v17  ;;  %v83_v29 = vld [vmem:[%s1913_s2] sm:$0x3]  ;;  %v129_v14 = vld [vmem:[%s1910_s3 + $0xf0] sm:$0xff] }
  0xa0   :  { %55 = vadd.xlane.f32.xlu1 %v54_v27  ;;  %v861_v27 = vpack.c.bf16 %v430_v3, %v428_v26  ;;  %860 = vmatpush1.bf16.msra.mxu0 %v859_v4  ;;  %v459_v26 = vld [vmem:[%s1911_s5 + $0x180] sm:$0xff]  ;;  %v461_v3 = vld [vmem:[%s1911_s5 + $0x190] sm:$0xff]  ;;  %v1426_v4 = vsub.s32 1, %v1411_v16  ;;  %v134_v15 = vld [vmem:[%s1910_s3 + $0x118] sm:$0xff] }
  0xa1   :  { %v138_v17 = vld [vmem:[%s1910_s3 + $0x138] sm:$0xff] }
  0xa2   :  { %768 = vmatpush1.bf16.msra.mxu1 %v767_v37  ;;  %862 = vmatprep.subr.bf16.mxu0 %v861_v27  ;;  %v869_v37 = vpack.c.bf16 %v438_v35, %v436_v34  ;;  %v1429_v27 = vsub.s32 0, %v1411_v16  ;;  %v76_v34 = vrot.slane %v67_v7, %v1426_v4  ;;  %v92_v39 = vrot.slane %v83_v29, %v1426_v4 }
  0xa3   :  { %770 = vmatprep.subr.bf16.mxu1 %v769_v40  ;;  %v440_v40 = vld [vmem:[%s1911_s5 + $0xe8] sm:$0xff] }
  0xa4   :  { %864 = vmatpush1.bf16.msra.mxu0 %v863_v30  ;;  %v895_v30 = vpack.c.bf16 %v461_v3, %v459_v26  ;;  %v72_v35 = vrot.slane %v67_v7, %v1429_v27  ;;  %v142_v26 = vld [vmem:[%s1910_s3 + $0x158] sm:$0xff]  ;;  %v141_v7 = vld [vmem:[%s1910_s3 + $0x150] sm:$0xff] }
  0xa5   :  { %866 = vmatprep.subr.bf16.mxu0 %v865_v31  ;;  %v897_v31 = vpack.c.bf16 %v466_v6, %v464_v28  ;;  %v146_v3 = vld [vmem:[%s1910_s3 + $0x178] sm:$0xff] }
  0xa6   :  { %772 = vmatpush1.bf16.msra.mxu1 %v771_v43  ;;  %v873_v43 = vpack.c.bf16 %v442_v41, %v440_v40  ;;  %v101_v40 = vld [vmem:[%s1910_s3 + $0x10] sm:$0xff]  ;;  %v801_v6 = vpack.c.bf16 %v146_v3, %v142_v26 }
  0xa7   :  { %774 = vmatprep.subr.bf16.mxu1 %v773_v47  ;;  %v446_v47 = vld [vmem:[%s1911_s5 + $0x118] sm:$0xff]  ;;  %v213_v3 = vld [vmem:[%s1910_s3 + $0x390] sm:$0xff] }
  0xa8   :  { %868 = vmatpush1.bf16.msra.mxu0 %v867_v36  ;;  %v877_v49 = vpack.c.bf16 %v446_v47, %v444_v46  ;;  %v468_v36 = vld [vmem:[%s1911_s5 + $0x1c8] sm:$0xff]  ;;  %v467_v46 = vld [vmem:[%s1911_s5 + $0x1c0] sm:$0xff]  ;;  %v469_v47 = vld [vmem:[%s1911_s5 + $0x1d0] sm:$0xff] }
  0xa9   :  { %870 = vmatprep.subr.bf16.mxu0 %v869_v37  ;;  %v470_v37 = vld [vmem:[%s1911_s5 + $0x1d8] sm:$0xff] }
  0xaa   :  { %776 = vmatpush1.bf16.msra.mxu1 %v775_v51  ;;  %v445_v51 = vld [vmem:[%s1911_s5 + $0x110] sm:$0xff] }
  0xab   :  { %778 = vmatprep.subr.bf16.mxu1 %v777_v52  ;;  %v448_v52 = vld [vmem:[%s1911_s5 + $0x128] sm:$0xff]  ;;  %v879_v54 = vpack.c.bf16 %v445_v51, %v443_v50  ;;  %v114_v50 = vld [vmem:[%s1910_s3 + $0x78] sm:$0xff] }
  0xac   :  { %872 = vmatpush1.bf16.msra.mxu0 %v871_v42 }
  0xad   :  { %874 = vmatprep.subr.bf16.mxu0 %v873_v43  ;;  %v88_v43 = vrot.slane %v83_v29, %v1429_v27  ;;  %v145_v29 = vld [vmem:[%s1910_s3 + $0x170] sm:$0xff] }
  0xae   :  { %780 = vmatpush1.bf16.msra.mxu1 %v779_v55  ;;  %v881_v55 = vpack.c.bf16 %v450_v53, %v448_v52  ;;  %v783_v52 = vpack.c.bf16 %v105_v44, %v101_v40  ;;  %v903_v53 = vpack.c.bf16 %v469_v47, %v467_v46  ;;  %v803_v32 = vpack.c.bf16 %v145_v29, %v141_v7  ;;  %v157_v40 = vld [vmem:[%s1910_s3 + $0x1d0] sm:$0xff]  ;;  %v226_v7 = vld [vmem:[%s1910_s3 + $0x3f8] sm:$0xff] }
  0xaf   :  { %782 = vmatprep.subr.bf16.mxu1 %v781_v58  ;;  %v452_v58 = vld [vmem:[%s1911_s5 + $0x148] sm:$0xff]  ;;  %v165_v46 = vld [vmem:[%s1910_s3 + $0x210] sm:$0xff] }
  0xb0   :  { %876 = vmatpush1.bf16.msra.mxu0 %v875_v48  ;;  %v885_v63 = vpack.c.bf16 %v454_v59, %v452_v58  ;;  %v109_v59 = vld [vmem:[%s1910_s3 + $0x50] sm:$0xff] }
  0xb1   :  { %878 = vmatprep.subr.bf16.mxu0 %v877_v49  ;;  %v110_v49 = vld [vmem:[%s1910_s3 + $0x58] sm:$0xff]  ;;  %v169_v47 = vld [vmem:[%s1910_s3 + $0x230] sm:$0xff] }
  0xb2   :  { %v785_v58 = vpack.c.bf16 %v114_v50, %v110_v49  ;;  %v173_v50 = vld [vmem:[%s1910_s3 + $0x250] sm:$0xff] }
  0xb4   :  { %880 = vmatpush1.bf16.msra.mxu0 %v879_v54 }
  0xb5   :  { %882 = vmatprep.subr.bf16.mxu0 %v881_v55 }
  0xb8   :  { %884 = vmatpush1.bf16.msra.mxu0 %v883_v61 }
  0xb9   :  { %886 = vmatprep.subr.bf16.mxu0 %v885_v63 }
  0xbc   :  { %888 = vmatpush1.bf16.msra.mxu0 %v887_v11  ;;  %v791_v11 = vpack.c.bf16 %v121_v8, %v117_v5  ;;  %v202_v5 = vld [vmem:[%s1910_s3 + $0x338] sm:$0xff] }
  0xbd   :  { %890 = vmatprep.subr.bf16.mxu0 %v889_v13  ;;  %v125_v13 = vld [vmem:[%s1910_s3 + $0xd0] sm:$0xff] }
  0xbe   :  { %v795_v20 = vpack.c.bf16 %v129_v14, %v125_v13  ;;  %v210_v13 = vld [vmem:[%s1910_s3 + $0x378] sm:$0xff] }
  0xc0   :  { %892 = vmatpush1.bf16.msra.mxu0 %v891_v22  ;;  %v133_v22 = vld [vmem:[%s1910_s3 + $0x110] sm:$0xff] }
  0xc1   :  { %894 = vmatprep.subr.bf16.mxu0 %v893_v23  ;;  %v137_v23 = vld [vmem:[%s1910_s3 + $0x130] sm:$0xff] }
  0xc2   :  { %v799_v28 = vpack.c.bf16 %v137_v23, %v133_v22  ;;  %v218_v22 = vld [vmem:[%s1910_s3 + $0x3b8] sm:$0xff] }
  0xc4   :  { %896 = vmatpush1.bf16.msra.mxu0 %v895_v30  ;;  %v150_v30 = vld [vmem:[%s1910_s3 + $0x198] sm:$0xff] }
  0xc5   :  { %898 = vmatprep.subr.bf16.mxu0 %v897_v31  ;;  %v154_v31 = vld [vmem:[%s1910_s3 + $0x1b8] sm:$0xff] }
  0xc6   :  { %v805_v33 = vpack.c.bf16 %v154_v31, %v150_v30  ;;  %v221_v31 = vld [vmem:[%s1910_s3 + $0x3d0] sm:$0xff] }
  0xc8   :  { %900 = vmatpush1.bf16.msra.mxu0 %v899_v45 }
 0x129   :  { %v53_v60 = vpop.xlane.xlu1 %52 }
 0x12a   :  { %v57_v62 = vmul.f32 0.00390625, %v53_v60  ;;  %v113_v60 = vld [vmem:[%s1910_s3 + $0x70] sm:$0xff] }
 0x12b   :  { %v787_v1 = vpack.c.bf16 %v113_v60, %v109_v59  ;;  %v185_v59 = vld [vmem:[%s1910_s3 + $0x2b0] sm:$0xff]  ;;  %v190_v60 = vld [vmem:[%s1910_s3 + $0x2d8] sm:$0xff] }
 0x12c   :  { %v59_v9 = vadd.f32 1e-05, %v57_v62 }
 0x12d   :  { %v56_v10 = vpop.xlane.xlu1 %55 }
 0x12e   :  { %981 = vrsqrt.f32 %v59_v9  ;;  %v58_v12 = vmul.f32 0.00390625, %v56_v10  ;;  %v126_v9 = vld [vmem:[%s1910_s3 + $0xd8] sm:$0xff] }
 0x12f   :  { %v130_v10 = vld [vmem:[%s1910_s3 + $0xf8] sm:$0xff] }
 0x130   :  { %v60_v21 = vadd.f32 1e-05, %v58_v12  ;;  %v793_v12 = vpack.c.bf16 %v130_v10, %v126_v9  ;;  %v197_v10 = vld [vmem:[%s1910_s3 + $0x310] sm:$0xff] }
 0x132   :  { %983 = vrsqrt.f32 %v60_v21  ;;  %v797_v21 = vpack.c.bf16 %v138_v17, %v134_v15  ;;  %v205_v17 = vld [vmem:[%s1910_s3 + $0x350] sm:$0xff] }
 0x138   :  { %v982_v38 = vpop.eup %981 }
 0x139   :  { %v64_v41 = vmul.f32 %v982_v38, %v1185_v19  ;;  %v63_v42 = vmul.f32 %v982_v38, %v1182_v18  ;;  %v901_v19 = vpack.c.bf16 %v470_v37, %v468_v36  ;;  %v158_v36 = vld [vmem:[%s1910_s3 + $0x1d8] sm:$0xff] }
 0x13a   :  { %v162_v37 = vld [vmem:[%s1910_s3 + $0x1f8] sm:$0xff] }
 0x13b   :  { %v80_v48 = vmul.f32 %v76_v34, %v64_v41  ;;  %v79_v18 = vmul.f32 %v72_v35, %v63_v42  ;;  %902 = vmatprep.subr.bf16.mxu0 %v901_v19  ;;  %v161_v41 = vld [vmem:[%s1910_s3 + $0x1f0] sm:$0xff]  ;;  %v166_v42 = vld [vmem:[%s1910_s3 + $0x218] sm:$0xff] }
 0x13c   :  { %v984_v51 = vpop.eup %983  ;;  %904 = vmatpush1.bf16.msra.mxu0 %v903_v53  ;;  %v811_v44 = vpack.c.bf16 %v161_v41, %v157_v40  ;;  %v174_v19 = vld [vmem:[%s1910_s3 + $0x258] sm:$0xff]  ;;  %v476_v40 = vld [vmem:[%s1911_s5 + $0x208] sm:$0xff] }
 0x13d   :  { %v1479_v54 = vadd.f32 %v92_v39, %v80_v48  ;;  %v1481_v55 = vadd.f32 %v88_v43, %v79_v18  ;;  %v66_v56 = vmul.f32 %v984_v51, %v1195_v25  ;;  %v65_v57 = vmul.f32 %v984_v51, %v1192_v24  ;;  %v118_v25 = vld [vmem:[%s1910_s3 + $0x98] sm:$0xff]  ;;  %v177_v51 = vld [vmem:[%s1910_s3 + $0x270] sm:$0xff] }
 0x13e   :  { %v122_v24 = vld [vmem:[%s1910_s3 + $0xb8] sm:$0xff]  ;;  %v815_v18 = vpack.c.bf16 %v169_v47, %v165_v46 }
 0x13f   :  { %313 = vmatprep.mubr.f32.mxu1 %v1479_v54  ;;  %v82_v61 = vmul.f32 %v76_v34, %v66_v56  ;;  %v81_v62 = vmul.f32 %v72_v35, %v65_v57  ;;  %v789_v2 = vpack.c.bf16 %v122_v24, %v118_v25  ;;  %v149_v34 = vld [vmem:[%s1910_s3 + $0x190] sm:$0xff]  ;;  %v178_v48 = vld [vmem:[%s1910_s3 + $0x278] sm:$0xff]  ;;  %v819_v56 = vpack.c.bf16 %v177_v51, %v173_v50  ;;  %v480_v50 = vld [vmem:[%s1911_s5 + $0x228] sm:$0xff] }
 0x140   :  { %314 = vmatmul.mubr.f32.vlgmr.msra.gmra.mrb[0].mxu1 %v1481_v55  ;;  %v153_v35 = vld [vmem:[%s1910_s3 + $0x1b0] sm:$0xff]  ;;  %v817_v49 = vpack.c.bf16 %v178_v48, %v174_v19  ;;  %v186_v53 = vld [vmem:[%s1910_s3 + $0x2b8] sm:$0xff]  ;;  %v475_v48 = vld [vmem:[%s1911_s5 + $0x200] sm:$0xff] }
 0x141   :  { %784 = vmatpush1.bf16.msra.mxu1 %v783_v52  ;;  %v1499_v63 = vadd.f32 %v92_v39, %v82_v61  ;;  %v1501_v0 = vadd.f32 %v88_v43, %v81_v62  ;;  %v807_v38 = vpack.c.bf16 %v153_v35, %v149_v34  ;;  %v809_v39 = vpack.c.bf16 %v162_v37, %v158_v36  ;;  %v170_v43 = vld [vmem:[%s1910_s3 + $0x238] sm:$0xff]  ;;  %v189_v24 = vld [vmem:[%s1910_s3 + $0x2d0] sm:$0xff]  ;;  %v472_v34 = vld [vmem:[%s1911_s5 + $0x1e8] sm:$0xff] }
 0x142   :  { %786 = vmatprep.subr.bf16.mxu1 %v785_v58  ;;  %v813_v45 = vpack.c.bf16 %v170_v43, %v166_v42  ;;  %v182_v52 = vld [vmem:[%s1910_s3 + $0x298] sm:$0xff]  ;;  %v181_v58 = vld [vmem:[%s1910_s3 + $0x290] sm:$0xff]  ;;  %v471_v37 = vld [vmem:[%s1911_s5 + $0x1e0] sm:$0xff] }
 0x143   :  { %319 = vmatprep.mubr.f32.mxu1 %v1499_v63  ;;  %v821_v57 = vpack.c.bf16 %v186_v53, %v182_v52  ;;  %v194_v61 = vld [vmem:[%s1910_s3 + $0x2f8] sm:$0xff]  ;;  %v823_v62 = vpack.c.bf16 %v185_v59, %v181_v58  ;;  %v1692_v43 = vld [vmem:[%s1914_s4] sm:$0xf] }
 0x144   :  { %320 = vmatmul.mubr.f32.gmra.mrb[2].mxu1 %v1501_v0  ;;  %v825_v25 = vpack.c.bf16 %v194_v61, %v190_v60  ;;  %v474_v35 = vld [vmem:[%s1911_s5 + $0x1f8] sm:$0xff]  ;;  %v479_v61 = vld [vmem:[%s1911_s5 + $0x220] sm:$0xff] }
 0x145   :  { %788 = vmatpush1.bf16.msra.mxu1 %v787_v1  ;;  %390 = vmatprep.mubr.f32.mxu1 %v1479_v54  ;;  %v193_v1 = vld [vmem:[%s1910_s3 + $0x2f0] sm:$0xff]  ;;  %v905_v36 = vpack.c.bf16 %v474_v35, %v472_v34  ;;  %v478_v41 = vld [vmem:[%s1911_s5 + $0x218] sm:$0xff] }
 0x146   :  { %790 = vmatprep.subr.bf16.mxu1 %v789_v2  ;;  %v198_v2 = vld [vmem:[%s1910_s3 + $0x318] sm:$0xff]  ;;  %v827_v8 = vpack.c.bf16 %v193_v1, %v189_v24  ;;  %v909_v42 = vpack.c.bf16 %v478_v41, %v476_v40  ;;  %v484_v24 = vld [vmem:[%s1911_s5 + $0x248] sm:$0xff] }
 0x147   :  { %v829_v9 = vpack.c.bf16 %v202_v5, %v198_v2  ;;  %906 = vmatprep.subr.bf16.mxu0 %v905_v36  ;;  %v482_v51 = vld [vmem:[%s1911_s5 + $0x238] sm:$0xff] }
 0x148   :  { %v913_v60 = vpack.c.bf16 %v482_v51, %v480_v50  ;;  %v486_v1 = vld [vmem:[%s1911_s5 + $0x258] sm:$0xff]  ;;  %v512_v50 = vld [vmem:[%s1911_s5 + $0x328] sm:$0xff] }
 0x149   :  { %792 = vmatpush1.bf16.msra.mxu1 %v791_v11  ;;  %v201_v11 = vld [vmem:[%s1910_s3 + $0x330] sm:$0xff]  ;;  %v502_v34 = vld [vmem:[%s1911_s5 + $0x2d8] sm:$0xff] }
 0x14a   :  { %794 = vmatprep.subr.bf16.mxu1 %v793_v12  ;;  %v206_v12 = vld [vmem:[%s1910_s3 + $0x358] sm:$0xff]  ;;  %v831_v14 = vpack.c.bf16 %v201_v11, %v197_v10  ;;  %v483_v10 = vld [vmem:[%s1911_s5 + $0x240] sm:$0xff]  ;;  %v485_v11 = vld [vmem:[%s1911_s5 + $0x250] sm:$0xff] }
 0x14b   :  { %v833_v15 = vpack.c.bf16 %v210_v13, %v206_v12  ;;  %v488_v12 = vld [vmem:[%s1911_s5 + $0x268] sm:$0xff]  ;;  %v490_v13 = vld [vmem:[%s1911_s5 + $0x278] sm:$0xff] }
 0x14c   :  { %v506_v40 = vld [vmem:[%s1911_s5 + $0x2f8] sm:$0xff] }
 0x14d   :  { %796 = vmatpush1.bf16.msra.mxu1 %v795_v20  ;;  %v209_v20 = vld [vmem:[%s1910_s3 + $0x370] sm:$0xff]  ;;  %v514_v51 = vld [vmem:[%s1911_s5 + $0x338] sm:$0xff] }
 0x14e   :  { %798 = vmatprep.subr.bf16.mxu1 %v797_v21  ;;  %v214_v21 = vld [vmem:[%s1910_s3 + $0x398] sm:$0xff]  ;;  %v835_v23 = vpack.c.bf16 %v209_v20, %v205_v17  ;;  %v487_v17 = vld [vmem:[%s1911_s5 + $0x260] sm:$0xff]  ;;  %v489_v20 = vld [vmem:[%s1911_s5 + $0x270] sm:$0xff] }
 0x14f   :  { %v837_v26 = vpack.c.bf16 %v218_v22, %v214_v21  ;;  %v492_v21 = vld [vmem:[%s1911_s5 + $0x288] sm:$0xff]  ;;  %v494_v22 = vld [vmem:[%s1911_s5 + $0x298] sm:$0xff] }
 0x151   :  { %800 = vmatpush1.bf16.msra.mxu1 %v799_v28  ;;  %v217_v28 = vld [vmem:[%s1910_s3 + $0x3b0] sm:$0xff] }
 0x152   :  { %802 = vmatprep.subr.bf16.mxu1 %v801_v6  ;;  %v222_v6 = vld [vmem:[%s1910_s3 + $0x3d8] sm:$0xff]  ;;  %v839_v29 = vpack.c.bf16 %v217_v28, %v213_v3  ;;  %v491_v3 = vld [vmem:[%s1911_s5 + $0x280] sm:$0xff]  ;;  %v493_v28 = vld [vmem:[%s1911_s5 + $0x290] sm:$0xff] }
 0x153   :  { %v841_v30 = vpack.c.bf16 %v226_v7, %v222_v6  ;;  %v496_v6 = vld [vmem:[%s1911_s5 + $0x2a8] sm:$0xff]  ;;  %v498_v7 = vld [vmem:[%s1911_s5 + $0x2b8] sm:$0xff] }
 0x155   :  { %804 = vmatpush1.bf16.msra.mxu1 %v803_v32  ;;  %v225_v32 = vld [vmem:[%s1910_s3 + $0x3f0] sm:$0xff] }
 0x156   :  { %806 = vmatprep.subr.bf16.mxu1 %v805_v33  ;;  %v843_v33 = vpack.c.bf16 %v225_v32, %v221_v31  ;;  %v495_v31 = vld [vmem:[%s1911_s5 + $0x2a0] sm:$0xff]  ;;  %v497_v32 = vld [vmem:[%s1911_s5 + $0x2b0] sm:$0xff] }
 0x157   :  { %v931_v35 = vpack.c.bf16 %v497_v32, %v495_v31  ;;  %v533_v31 = vld [vmem:[%s1911_s5 + $0x3d0] sm:$0xff]  ;;  %v243_v32 = vsub.s32 3, %v1411_v16 }
 0x159   :  { %808 = vmatpush1.bf16.msra.mxu1 %v807_v38  ;;  %v473_v38 = vld [vmem:[%s1911_s5 + $0x1f0] sm:$0xff] }
 0x15a   :  { %810 = vmatprep.subr.bf16.mxu1 %v809_v39  ;;  %v907_v39 = vpack.c.bf16 %v473_v38, %v471_v37  ;;  %v499_v37 = vld [vmem:[%s1911_s5 + $0x2c0] sm:$0xff]  ;;  %v501_v38 = vld [vmem:[%s1911_s5 + $0x2d0] sm:$0xff] }
 0x15b   :  { %v935_v41 = vpack.c.bf16 %v501_v38, %v499_v37  ;;  %v535_v38 = vld [vmem:[%s1911_s5 + $0x3e0] sm:$0xff] }
 0x15c   :  { %908 = vmatpush1.bf16.msra.mxu0 %v907_v39  ;;  %v504_v39 = vld [vmem:[%s1911_s5 + $0x2e8] sm:$0xff] }
 0x15d   :  { %812 = vmatpush1.bf16.msra.mxu1 %v811_v44  ;;  %910 = vmatprep.subr.bf16.mxu0 %v909_v42  ;;  %v232_v44 = vrot.slane %v1692_v43, %v1429_v27  ;;  %v937_v42 = vpack.c.bf16 %v506_v40, %v504_v39  ;;  %v244_v39 = vrot.slane %v1692_v43, %v243_v32 }
 0x15e   :  { %814 = vmatprep.subr.bf16.mxu1 %v813_v45  ;;  %v236_v45 = vrot.slane %v1692_v43, %v1426_v4 }
 0x161   :  { %816 = vmatpush1.bf16.msra.mxu1 %v815_v18  ;;  %v477_v18 = vld [vmem:[%s1911_s5 + $0x210] sm:$0xff] }
 0x162   :  { %818 = vmatprep.subr.bf16.mxu1 %v817_v49 }
 0x165   :  { %820 = vmatpush1.bf16.msra.mxu1 %v819_v56  ;;  %v911_v56 = vpack.c.bf16 %v477_v18, %v475_v48  ;;  %v507_v18 = vld [vmem:[%s1911_s5 + $0x300] sm:$0xff] }
 0x166   :  { %822 = vmatprep.subr.bf16.mxu1 %v821_v57 }
 0x169   :  { %824 = vmatpush1.bf16.msra.mxu1 %v823_v62  ;;  %v481_v62 = vld [vmem:[%s1911_s5 + $0x230] sm:$0xff] }
 0x16a   :  { %826 = vmatprep.subr.bf16.mxu1 %v825_v25  ;;  %v915_v5 = vpack.c.bf16 %v481_v62, %v479_v61  ;;  %v515_v62 = vld [vmem:[%s1911_s5 + $0x340] sm:$0xff] }
 0x16d   :  { %828 = vmatpush1.bf16.msra.mxu1 %v827_v8 }
 0x16e   :  { %830 = vmatprep.subr.bf16.mxu1 %v829_v9  ;;  %v917_v9 = vpack.c.bf16 %v486_v1, %v484_v24  ;;  %v520_v24 = vld [vmem:[%s1911_s5 + $0x368] sm:$0xff]  ;;  %v522_v1 = vld [vmem:[%s1911_s5 + $0x378] sm:$0xff] }
 0x171   :  { %832 = vmatpush1.bf16.msra.mxu1 %v831_v14  ;;  %v919_v14 = vpack.c.bf16 %v485_v11, %v483_v10  ;;  %v524_v10 = vld [vmem:[%s1911_s5 + $0x388] sm:$0xff]  ;;  %v526_v11 = vld [vmem:[%s1911_s5 + $0x398] sm:$0xff] }
 0x172   :  { %834 = vmatprep.subr.bf16.mxu1 %v833_v15  ;;  %v921_v15 = vpack.c.bf16 %v490_v13, %v488_v12  ;;  %v957_v13 = vpack.c.bf16 %v526_v11, %v524_v10 }
 0x175   :  { %836 = vmatpush1.bf16.msra.mxu1 %v835_v23  ;;  %v923_v23 = vpack.c.bf16 %v489_v20, %v487_v17  ;;  %v528_v17 = vld [vmem:[%s1911_s5 + $0x3a8] sm:$0xff]  ;;  %v530_v20 = vld [vmem:[%s1911_s5 + $0x3b8] sm:$0xff] }
 0x176   :  { %838 = vmatprep.subr.bf16.mxu1 %v837_v26  ;;  %v925_v26 = vpack.c.bf16 %v494_v22, %v492_v21  ;;  %v961_v22 = vpack.c.bf16 %v530_v20, %v528_v17 }
 0x179   :  { %840 = vmatpush1.bf16.msra.mxu1 %v839_v29  ;;  %v927_v29 = vpack.c.bf16 %v493_v28, %v491_v3  ;;  %v532_v3 = vld [vmem:[%s1911_s5 + $0x3c8] sm:$0xff]  ;;  %v534_v28 = vld [vmem:[%s1911_s5 + $0x3d8] sm:$0xff] }
 0x17a   :  { %842 = vmatprep.subr.bf16.mxu1 %v841_v30  ;;  %v929_v30 = vpack.c.bf16 %v498_v7, %v496_v6  ;;  %v965_v7 = vpack.c.bf16 %v534_v28, %v532_v3 }
 0x17d   :  { %844 = vmatpush1.bf16.msra.mxu1 %v843_v33  ;;  %v500_v33 = vld [vmem:[%s1911_s5 + $0x2c8] sm:$0xff] }
 0x17e   :  { %v933_v36 = vpack.c.bf16 %v502_v34, %v500_v33  ;;  %v536_v33 = vld [vmem:[%s1911_s5 + $0x3e8] sm:$0xff]  ;;  %v538_v34 = vld [vmem:[%s1911_s5 + $0x3f8] sm:$0xff] }
 0x17f   :  { %v969_v37 = vpack.c.bf16 %v538_v34, %v536_v33 }
 0x180   :  { %391 = vmatmul.mubr.f32.vlgmr.msra.gmra.mrb[4].mxu1 %v1481_v55 }
 0x181   :  { %396 = vmatprep.mubr.f32.mxu1 %v1499_v63 }
 0x184   :  { %397 = vmatmul.mubr.f32.gmra.mrb[6].mxu1 %v1501_v0 }
 0x213   :  { %v315_v46 = vpop.f32.mrb[0].mxu1 }
 0x214   :  { %v316_v47 = vadd.f32 %v315_v46, %v232_v44  ;;  %v317_v19 = vpop.f32.mrb[1].mxu1  ;;  %v508_v46 = vld [vmem:[%s1911_s5 + $0x308] sm:$0xff] }
 0x215   :  { %v318_v49 = vadd.f32 %v317_v19, %v236_v45 }
 0x216   :  { %v403_v57 = vmax.f32 %v316_v47, 0.0  ;;  %v510_v47 = vld [vmem:[%s1911_s5 + $0x318] sm:$0xff] }
 0x217   :  { %v321_v52 = vpop.f32.mrb[2].mxu1  ;;  %v404_v53 = vmax.f32 %v318_v49, 0.0  ;;  %v941_v48 = vpack.c.bf16 %v510_v47, %v508_v46  ;;  %v509_v49 = vld [vmem:[%s1911_s5 + $0x310] sm:$0xff] }
 0x218   :  { %v322_v58 = vadd.f32 %v321_v52, %v232_v44  ;;  %v323_v59 = vpop.f32.mrb[3].mxu1  ;;  %v503_v44 = vld [vmem:[%s1911_s5 + $0x2e0] sm:$0xff]  ;;  %v943_v52 = vpack.c.bf16 %v509_v49, %v507_v18 }
 0x219   :  { %v324_v25 = vadd.f32 %v323_v59, %v236_v45  ;;  %615 = vmatprep.mubr.f32.mxu0 %v404_v53  ;;  %v505_v45 = vld [vmem:[%s1911_s5 + $0x2f0] sm:$0xff]  ;;  %v945_v53 = vpack.c.bf16 %v514_v51, %v512_v50  ;;  %v518_v59 = vld [vmem:[%s1911_s5 + $0x358] sm:$0xff] }
 0x21a   :  { %616 = vmatmul.mubr.f32.vlgmr.msra.gmra.mrb[0].mxu0 %v403_v57  ;;  %v407_v8 = vmax.f32 %v322_v58, 0.0  ;;  %v939_v19 = vpack.c.bf16 %v505_v45, %v503_v44  ;;  %v513_v57 = vld [vmem:[%s1911_s5 + $0x330] sm:$0xff]  ;;  %v516_v58 = vld [vmem:[%s1911_s5 + $0x348] sm:$0xff] }
 0x21b   :  { %v408_v2 = vmax.f32 %v324_v25, 0.0  ;;  %912 = vmatpush1.bf16.msra.mxu0 %v911_v56  ;;  %v511_v56 = vld [vmem:[%s1911_s5 + $0x320] sm:$0xff]  ;;  %v949_v61 = vpack.c.bf16 %v518_v59, %v516_v58  ;;  %v517_v25 = vld [vmem:[%s1911_s5 + $0x350] sm:$0xff] }
 0x21c   :  { %914 = vmatprep.subr.bf16.mxu0 %v913_v60  ;;  %v947_v60 = vpack.c.bf16 %v513_v57, %v511_v56 }
 0x21d   :  { %621 = vmatprep.mubr.f32.mxu0 %v408_v2  ;;  %v951_v2 = vpack.c.bf16 %v517_v25, %v515_v62 }
 0x21e   :  { %622 = vmatmul.mubr.f32.gmra.mrb[2].mxu0 %v407_v8  ;;  %v519_v8 = vld [vmem:[%s1911_s5 + $0x360] sm:$0xff] }
 0x21f   :  { %916 = vmatpush1.bf16.msra.mxu0 %v915_v5  ;;  %v953_v5 = vpack.c.bf16 %v522_v1, %v520_v24 }
 0x220   :  { %918 = vmatprep.subr.bf16.mxu0 %v917_v9  ;;  %v521_v9 = vld [vmem:[%s1911_s5 + $0x370] sm:$0xff] }
 0x221   :  { %v955_v12 = vpack.c.bf16 %v521_v9, %v519_v8 }
 0x223   :  { %920 = vmatpush1.bf16.msra.mxu0 %v919_v14  ;;  %v523_v14 = vld [vmem:[%s1911_s5 + $0x380] sm:$0xff] }
 0x224   :  { %922 = vmatprep.subr.bf16.mxu0 %v921_v15  ;;  %v525_v15 = vld [vmem:[%s1911_s5 + $0x390] sm:$0xff] }
 0x225   :  { %v959_v21 = vpack.c.bf16 %v525_v15, %v523_v14 }
 0x227   :  { %924 = vmatpush1.bf16.msra.mxu0 %v923_v23  ;;  %v527_v23 = vld [vmem:[%s1911_s5 + $0x3a0] sm:$0xff] }
 0x228   :  { %926 = vmatprep.subr.bf16.mxu0 %v925_v26  ;;  %v529_v26 = vld [vmem:[%s1911_s5 + $0x3b0] sm:$0xff] }
 0x229   :  { %v963_v6 = vpack.c.bf16 %v529_v26, %v527_v23 }
 0x22b   :  { %928 = vmatpush1.bf16.msra.mxu0 %v927_v29  ;;  %v239_v29 = vsub.s32 2, %v1411_v16  ;;  %v537_v16 = vld [vmem:[%s1911_s5 + $0x3f0] sm:$0xff] }
 0x22c   :  { %930 = vmatprep.subr.bf16.mxu0 %v929_v30  ;;  %v531_v30 = vld [vmem:[%s1911_s5 + $0x3c0] sm:$0xff] }
 0x22f   :  { %932 = vmatpush1.bf16.msra.mxu0 %v931_v35  ;;  %v967_v35 = vpack.c.bf16 %v533_v31, %v531_v30 }
 0x230   :  { %934 = vmatprep.subr.bf16.mxu0 %v933_v36  ;;  %v240_v36 = vrot.slane %v1692_v43, %v239_v29  ;;  %v539_v43 = vld [vmem:[%s1915_s6] sm:$0x3] }
 0x233   :  { %936 = vmatpush1.bf16.msra.mxu0 %v935_v41  ;;  %v971_v41 = vpack.c.bf16 %v537_v16, %v535_v38 }
 0x234   :  { %938 = vmatprep.subr.bf16.mxu0 %v937_v42 }
 0x237   :  { %940 = vmatpush1.bf16.msra.mxu0 %v939_v19 }
 0x238   :  { %942 = vmatprep.subr.bf16.mxu0 %v941_v48 }
 0x23b   :  { %944 = vmatpush1.bf16.msra.mxu0 %v943_v52  ;;  %v544_v52 = vrot.slane %v539_v43, %v1429_v27 }
 0x23c   :  { %946 = vmatprep.subr.bf16.mxu0 %v945_v53  ;;  %v548_v53 = vrot.slane %v539_v43, %v1426_v4 }
 0x23f   :  { %948 = vmatpush1.bf16.msra.mxu0 %v947_v60 }
 0x240   :  { %950 = vmatprep.subr.bf16.mxu0 %v949_v61 }
 0x243   :  { %952 = vmatpush1.bf16.msra.mxu0 %v951_v2 }
 0x244   :  { %954 = vmatprep.subr.bf16.mxu0 %v953_v5 }
 0x247   :  { %956 = vmatpush1.bf16.msra.mxu0 %v955_v12 }
 0x248   :  { %958 = vmatprep.subr.bf16.mxu0 %v957_v13 }
 0x24b   :  { %960 = vmatpush1.bf16.msra.mxu0 %v959_v21 }
 0x24c   :  { %962 = vmatprep.subr.bf16.mxu0 %v961_v22 }
 0x24f   :  { %964 = vmatpush1.bf16.msra.mxu0 %v963_v6 }
 0x250   :  { %966 = vmatprep.subr.bf16.mxu0 %v965_v7 }
 0x253   :  { %v392_v40 = vpop.f32.mrb[4].mxu1  ;;  %968 = vmatpush1.bf16.msra.mxu0 %v967_v35 }
 0x254   :  { %v393_v42 = vadd.f32 %v392_v40, %v240_v36  ;;  %v394_v44 = vpop.f32.mrb[5].mxu1  ;;  %970 = vmatprep.subr.bf16.mxu0 %v969_v37 }
 0x255   :  { %v395_v45 = vadd.f32 %v394_v44, %v244_v39 }
 0x256   :  { %v405_v19 = vmax.f32 %v393_v42, 0.0 }
 0x257   :  { %v406_v46 = vmax.f32 %v395_v45, 0.0  ;;  %v398_v47 = vpop.f32.mrb[6].mxu1  ;;  %972 = vmatpush1.bf16.msra.mxu0 %v971_v41 }
 0x258   :  { %v399_v48 = vadd.f32 %v398_v47, %v240_v36  ;;  %v400_v18 = vpop.f32.mrb[7].mxu1 }
 0x259   :  { %v401_v49 = vadd.f32 %v400_v18, %v244_v39  ;;  %692 = vmatprep.mubr.f32.mxu0 %v406_v46 }
 0x25a   :  { %693 = vmatmul.mubr.f32.vlgmr.msra.gmra.mrb[0].mxu0 %v405_v19  ;;  %v409_v51 = vmax.f32 %v399_v48, 0.0 }
 0x25b   :  { %v410_v50 = vmax.f32 %v401_v49, 0.0 }
 0x25d   :  { %698 = vmatprep.mubr.f32.mxu0 %v410_v50 }
 0x25e   :  { %699 = vmatmul.mubr.f32.gmra.mrb[2].mxu0 %v409_v51 }
 0x32d   :  { %v694_v56 = vpop.f32.mrb[0].mxu0 }
 0x32e   :  { %v973_v57 = vadd.f32 %v694_v56, %v544_v52  ;;  %v696_v58 = vpop.f32.mrb[1].mxu0 }
 0x32f   :  { %v974_v59 = vadd.f32 %v696_v58, %v548_v53 }
 0x330   :  { %v705_v60 = vadd.f32 %v973_v57, %v1481_v55 }
 0x331   :  { %v706_v61 = vadd.f32 %v974_v59, %v1479_v54  ;;  %v700_v62 = vpop.f32.mrb[2].mxu0 }
 0x332   :  { %709 = vst [vmem:[%s1916_s7] sm:$0xff] %v705_v60  ;;  %v975_v25 = vadd.f32 %v700_v62, %v544_v52  ;;  %v702_v24 = vpop.f32.mrb[3].mxu0 }
 0x333   :  { %710 = vst [vmem:[%s1916_s7 + $0x8] sm:$0xff] %v706_v61  ;;  %v976_v4 = vadd.f32 %v702_v24, %v548_v53 }
 0x334   :  { %v707_v27 = vadd.f32 %v975_v25, %v1501_v0 }
 0x335   :  { %v708_v1 = vadd.f32 %v976_v4, %v1499_v63 }
 0x336   :  { %711 = vst [vmem:[%s1916_s7 + $0x10] sm:$0xff] %v707_v27 }
 0x337   :  { %712 = vst [vmem:[%s1916_s7 + $0x18] sm:$0xff] %v708_v1 }

// kernel: decoder_layer_forward.2
= control target key start
LH: loop header
LB: loop body
LE: loop exit
PB: predicated region body
PF: predicated region fallthrough
CT: control target
= control target key end

     0   :  { %15 = vsyncpa [#allocation3], 0  ;;  %s4064_s0 = inlined_call_operand.vmem [shape: f32[2,8,256], index: 0, kind: input, shape index: {}]   ;;  %s4065_s1 = inlined_call_operand.vmem [shape: f32[2,8,256], index: 1, kind: input, shape index: {}]   ;;  %s4066_s2 = inlined_call_operand.hbm [shape: f32[256,512], index: 2, kind: input, shape index: {}]   ;;  %s4067_s3 = inlined_call_operand.vmem [shape: f32[1,512], index: 3, kind: input, shape index: {}]   ;;  %s4068_s4 = inlined_call_operand.hbm [shape: f32[256,256], index: 4, kind: input, shape index: {}]   ;;  %s4069_s5 = inlined_call_operand.vmem [shape: f32[1,256], index: 5, kind: input, shape index: {}]   ;;  %s4070_s6 = inlined_call_operand.hbm [shape: f32[256,256], index: 6, kind: input, shape index: {}]   ;;  %s4071_s7 = inlined_call_operand.vmem [shape: f32[1,256], index: 7, kind: input, shape index: {}]   ;;  %s4072_s8 = inlined_call_operand.vmem [shape: f32[1,256], index: 8, kind: input, shape index: {}]   ;;  %s4073_s9 = inlined_call_operand.vmem [shape: f32[1,256], index: 9, kind: input, shape index: {}]   ;;  %s4074_s10 = inlined_call_operand.vmem [shape: f32[2,8,256], index: 10, kind: output, shape index: {}]  }
   0x1   :  { %16 = vsyncpa [#allocation5], 0  ;;  %s3707_s13 = smov 0  }
   0x2 LB: > { %s3640_s14 = smov [#allocation4]   ;;  %s3713_s16 = sadd.s32 4294967295, %s3638_s13   ;;  %s3638_s13 = sphi %s3707_s13, %s22_s13  }
   0x3   : > { %s301_s15 = sshll.u32 %s3640_s14, 4  ;;  %p3022_p0 = scmp.ge.s32.totalorder %s3638_s13, 1  ;;  %s3722_s15 = int_to_ptr.vmem [resolvable:$true] %s301_s15 }
   0x4   : > { %p273_p1 = scmp.lt.s32.totalorder %s3638_s13, 3  ;;  %p4075_p2 = scmp.eq.s32.totalorder %s3713_s16, 0 }
   0x5   : > { %s3641_s18 = smov [#allocation2]   ;;  %s3642_s21 = smov [#allocation6]  }
   0x6   : > { %p3718_p3 = pnand %p3022_p0, %p273_p1  ;;  %s285_s19 = sshll.u32 %s3641_s18, 4  ;;  %s3726_s19 = int_to_ptr.vmem [resolvable:$true] %s285_s19 }
   0x7   : > { %s3734_s22 = sshll.u32 %s3642_s21, 4  ;;  %s3540_s25 = scalar_lea.hbm %s4068_s4, 8192  ;;  %s318_s22 = int_to_ptr.vmem [resolvable:$true] %s3734_s22 }
   0x8   : > { %s4077_s17 = scalar_select %p3718_p3, 1, 0 }
   0x9   : > { %p3468_p4 = pneg %p3718_p3  ;;  %p3541_p6 = scmp.ne.s32.totalorder %s4068_s4, %s3540_s25 }
   0xa   : > { %p3547_p10 = scmp.lt.u32.totalorder %s3540_s25, %s4068_s4 }
   0xb   : > { %p3730_p5 = pnand %p4075_p2, %p3468_p4 }
   0xd   : > { %p3744_p7 = pneg %p3730_p5 }
   0xf   : > { %p3543_p8 = pnand %p3744_p7, %p3541_p6 }
  0x11   : > { %p3544_p9 = pneg %p3543_p8 }
  0x13   : > { %p3549_p11 = pnand %p3547_p10, %p3544_p9 }
  0x15   : > { %3552 = shalt.err (!%p3549_p11)
}
  0x16   : > { %s3553_s11 = scalar_lea.vmem %s3722_s15, 8192  ;;  %p3561_p1 = scmp.lt.s32.totalorder %s3722_s15, %s3722_s15 }
  0x17   : > { %p3554_p12 = scmp.ne.s32.totalorder %s3722_s15, %s3553_s11  ;;  %p3562_p4 = scmp.lt.s32.totalorder %s3553_s11, %s3553_s11 }
  0x19   : > { %p3556_p13 = pnand %p3554_p12, %p3744_p7  ;;  %p3563_p6 = por %p3562_p4, %p3561_p1 }
  0x1b   : > { %p3557_p0 = pneg %p3556_p13 }
  0x1d   : > { %p3564_p8 = pnand %p3563_p6, %p3557_p0 }
  0x1f   : > { %3567 = shalt.err (!%p3564_p8)
}
  0x20   : > { %s3643_s12 = smov 256   ;;  %s3644_s14 = smov 16  }
  0x21   : > { %3474 = dma.hbm_to_vmem [thread:$0]  (!%p3730_p5), %s4068_s4, 8192, %s3722_s15, [#allocation5], %s3643_s12, %s3643_s12, %s3644_s14  }
  0x22   : > { %s3568_s25 = scalar_lea.hbm %s4066_s2, 16384 }
  0x23   : > { %p3569_p9 = scmp.ne.s32.totalorder %s4066_s2, %s3568_s25  ;;  %p3575_p12 = scmp.lt.u32.totalorder %s3568_s25, %s4066_s2 }
  0x25   : > { %p3571_p10 = pnand %p3569_p9, %p3744_p7 }
  0x27   : > { %p3572_p11 = pneg %p3571_p10 }
  0x29   : > { %p3577_p13 = pnand %p3575_p12, %p3572_p11 }
  0x2b   : > { %3580 = shalt.err (!%p3577_p13)
}
  0x2c   : > { %s3581_s15 = scalar_lea.vmem %s3726_s19, 16384  ;;  %p3589_p6 = scmp.lt.s32.totalorder %s3726_s19, %s3726_s19 }
  0x2d   : > { %p3582_p0 = scmp.ne.s32.totalorder %s3726_s19, %s3581_s15  ;;  %p3590_p8 = scmp.lt.s32.totalorder %s3581_s15, %s3581_s15 }
  0x2f   : > { %p3584_p1 = pnand %p3582_p0, %p3744_p7  ;;  %p3591_p9 = por %p3590_p8, %p3589_p6 }
  0x31   : > { %p3585_p4 = pneg %p3584_p1 }
  0x33   : > { %p3592_p10 = pnand %p3591_p9, %p3585_p4 }
  0x35   : > { %3595 = shalt.err (!%p3592_p10)
}
  0x36   : > { %s3645_s11 = smov 512   ;;  %s3646_s18 = smov 32  }
  0x37   : > { %3471 = dma.hbm_to_vmem [thread:$0]  (!%p3730_p5), %s4066_s2, 16384, %s3726_s19, [#allocation3], %s3645_s11, %s3645_s11, %s3646_s18  }
  0x38   : > { %s3596_s26 = scalar_lea.hbm %s4070_s6, 8192 }
  0x39   : > { %p3597_p11 = scmp.ne.s32.totalorder %s4070_s6, %s3596_s26  ;;  %p3603_p0 = scmp.lt.u32.totalorder %s3596_s26, %s4070_s6 }
  0x3b   : > { %p3599_p12 = pnand %p3597_p11, %p3744_p7 }
  0x3d   : > { %p3600_p13 = pneg %p3599_p12 }
  0x3f   : > { %p3605_p1 = pnand %p3603_p0, %p3600_p13 }
  0x41   : > { %3608 = shalt.err (!%p3605_p1)
}
  0x42   : > { %s3609_s21 = scalar_lea.vmem %s318_s22, 8192  ;;  %p3617_p9 = scmp.lt.s32.totalorder %s318_s22, %s318_s22 }
  0x43   : > { %p3610_p4 = scmp.ne.s32.totalorder %s318_s22, %s3609_s21  ;;  %p3618_p10 = scmp.lt.s32.totalorder %s3609_s21, %s3609_s21 }
  0x45   : > { %p3612_p6 = pnand %p3610_p4, %p3744_p7  ;;  %p3619_p2 = por %p3618_p10, %p3617_p9 }
  0x47   : > { %p3613_p8 = pneg %p3612_p6 }
  0x49   : > { %p3620_p3 = pnand %p3619_p2, %p3613_p8 }
  0x4b   : > { %3623 = shalt.err (!%p3620_p3)
}
  0x4c   : > { %3477 = dma.hbm_to_vmem [thread:$0]  (!%p3730_p5), %s4070_s6, 8192, %s318_s22, [#allocation5], %s3643_s12, %s3643_s12, %s3644_s14  }
  0x4d   : > { %p4080_p11 = scmp.ne.s32.totalorder %s4077_s17, 0 }
  0x4e   : > { %p4081_p7 = scmp.eq.s32.totalorder (!%p4080_p11), %s3713_s16, 0 }
  0x4f   : > { %358 = sbr.rel (%p4080_p11) target bundleno = 3996 (0xf9c), region = 60 }
  0x56   : > { %3629 = dma.done.wait (%p4081_p7), [#allocation3], 16384   ;;  %p4082_p12 = pmov %p4081_p7 }
  0x57   : > { %p4083_p2 = pmov %p4081_p7 }
  0x58   : > { %3631 = vsyncadd (%p4082_p12), [#allocation3], 4294950912 }
  0x59   : > { %3633 = dma.done.wait (%p4083_p2), [#allocation5], 16384   ;;  %p4084_p3 = pmov %p4083_p2 }
  0x5a   : > { %v433_v0 = vld [vmem:[#allocation2 + $0x18] sm:$0xff]  ;;  %v432_v2 = vld [vmem:[#allocation2 + $0x10] sm:$0xff]  ;;  %v431_v5 = vld [vmem:[#allocation2 + $0x8] sm:$0xff]  ;;  %p409_p5 = scmp.lt.s32.totalorder %s3713_s16, 1  ;;  %vm3648_vm0 = vmmov 0   ;;  %vm869_vm1 = vcmask 261120  }
  0x5b   : > { %3635 = vsyncadd (%p4084_p3), [#allocation5], 4294950912  ;;  %v437_v1 = vld [vmem:[#allocation2 + $0x38] sm:$0xff]  ;;  %v436_v4 = vld [vmem:[#allocation2 + $0x30] sm:$0xff]  ;;  %s3649_s24 = smov 96   ;;  %vm947_vm2 = vcmask 64512  }
  0x5c   : > { %v3250_v3 = vpack.c.bf16 %v437_v1, %v433_v0  ;;  %v435_v6 = vld [vmem:[#allocation2 + $0x28] sm:$0xff]  ;;  %v3252_v7 = vpack.c.bf16 %v436_v4, %v432_v2  ;;  %v430_v9 = vld [vmem:[#allocation2] sm:$0xff]  ;;  %v441_v11 = vld [vmem:[#allocation2 + $0x58] sm:$0xff]  ;;  %s4086_s16 = smov (!%p409_p5, %s3713_s16), 1  ;;  %s3650_s27 = smov 64  }
  0x5d   : > { %v3186_v8 = vpack.c.bf16 %v435_v6, %v431_v5  ;;  %v434_v10 = vld [vmem:[#allocation2 + $0x20] sm:$0xff]  ;;  %v445_v13 = vld [vmem:[#allocation2 + $0x78] sm:$0xff]  ;;  %v440_v14 = vld [vmem:[#allocation2 + $0x50] sm:$0xff]  ;;  %s3827_s17 = sshll.u32 %s4086_s16, 4  ;;  %s3651_s29 = smov 32  }
  0x5e   : > { %3251 = vmatprep.subr.bf16.mxu1 %v3250_v3  ;;  %v3188_v12 = vpack.c.bf16 %v434_v10, %v430_v9  ;;  %v444_v15 = vld [vmem:[#allocation2 + $0x70] sm:$0xff]  ;;  %v3254_v16 = vpack.c.bf16 %v445_v13, %v441_v11  ;;  %v439_v18 = vld [vmem:[#allocation2 + $0x48] sm:$0xff]  ;;  %v438_v20 = vld [vmem:[#allocation2 + $0x40] sm:$0xff]  ;;  %s3833_s28 = scalar_lea.vmem %s4064_s0, %s3827_s17  ;;  %s3839_s14 = scalar_lea.vmem %s4065_s1, %s3827_s17 }
  0x5f   : > { %3253 = vmatpush1.bf16.msra.mxu1 %v3252_v7  ;;  %3187 = vmatprep.subr.bf16.mxu0 %v3186_v8  ;;  %v3256_v17 = vpack.c.bf16 %v444_v15, %v440_v14  ;;  %v443_v19 = vld [vmem:[#allocation2 + $0x68] sm:$0xff]  ;;  %v442_v22 = vld [vmem:[#allocation2 + $0x60] sm:$0xff]  ;;  %v449_v23 = vld [vmem:[#allocation2 + $0x98] sm:$0xff]  ;;  %s423_s12 = scalar_lea.vmem %s4074_s10, %s3827_s17 }
  0x60   : > { %3189 = vmatpush1.bf16.msra.mxu0 %v3188_v12  ;;  %v3190_v21 = vpack.c.bf16 %v443_v19, %v439_v18  ;;  %v453_v24 = vld [vmem:[#allocation2 + $0xb8] sm:$0xff]  ;;  %3255 = vmatprep.subr.bf16.mxu1 %v3254_v16  ;;  %v3192_v25 = vpack.c.bf16 %v442_v22, %v438_v20  ;;  %v448_v27 = vld [vmem:[#allocation2 + $0x90] sm:$0xff]  ;;  %v447_v29 = vld [vmem:[#allocation2 + $0x88] sm:$0xff] }
  0x61   : > { %v3258_v26 = vpack.c.bf16 %v453_v24, %v449_v23  ;;  %v452_v28 = vld [vmem:[#allocation2 + $0xb0] sm:$0xff]  ;;  %v451_v30 = vld [vmem:[#allocation2 + $0xa8] sm:$0xff]  ;;  %v446_v31 = vld [vmem:[#allocation2 + $0x80] sm:$0xff] }
  0x62   : > { %3191 = vmatprep.subr.bf16.mxu0 %v3190_v21  ;;  %v450_v32 = vld [vmem:[#allocation2 + $0xa0] sm:$0xff]  ;;  %v3260_v33 = vpack.c.bf16 %v452_v28, %v448_v27  ;;  %v3194_v34 = vpack.c.bf16 %v451_v30, %v447_v29  ;;  %v457_v35 = vld [vmem:[#allocation2 + $0xd8] sm:$0xff]  ;;  %v456_v37 = vld [vmem:[#allocation2 + $0xd0] sm:$0xff] }
  0x63   : > { %3257 = vmatpush1.bf16.msra.mxu1 %v3256_v17  ;;  %v461_v36 = vld [vmem:[#allocation2 + $0xf8] sm:$0xff]  ;;  %v3196_v38 = vpack.c.bf16 %v450_v32, %v446_v31  ;;  %v460_v40 = vld [vmem:[#allocation2 + $0xf0] sm:$0xff]  ;;  %v455_v41 = vld [vmem:[#allocation2 + $0xc8] sm:$0xff] }
  0x64   : > { %3193 = vmatpush1.bf16.msra.mxu0 %v3192_v25  ;;  %3259 = vmatprep.subr.bf16.mxu1 %v3258_v26  ;;  %v3262_v39 = vpack.c.bf16 %v461_v36, %v457_v35  ;;  %v459_v42 = vld [vmem:[#allocation2 + $0xe8] sm:$0xff]  ;;  %v454_v44 = vld [vmem:[#allocation2 + $0xc0] sm:$0xff]  ;;  %v465_v46 = vld [vmem:[#allocation2 + $0x118] sm:$0xff]  ;;  %v3264_v48 = vpack.c.bf16 %v460_v40, %v456_v37 }
  0x65   : > { %3195 = vmatprep.subr.bf16.mxu0 %v3194_v34  ;;  %v3198_v43 = vpack.c.bf16 %v459_v42, %v455_v41  ;;  %v458_v45 = vld [vmem:[#allocation2 + $0xe0] sm:$0xff]  ;;  %v469_v47 = vld [vmem:[#allocation2 + $0x138] sm:$0xff]  ;;  %v463_v49 = vld [vmem:[#allocation2 + $0x108] sm:$0xff] }
  0x66   : > { %v467_v50 = vld [vmem:[#allocation2 + $0x128] sm:$0xff]  ;;  %v3200_v51 = vpack.c.bf16 %v458_v45, %v454_v44  ;;  %v3266_v52 = vpack.c.bf16 %v469_v47, %v465_v46  ;;  %v464_v53 = vld [vmem:[#allocation2 + $0x110] sm:$0xff]  ;;  %v462_v55 = vld [vmem:[#allocation2 + $0x100] sm:$0xff] }
  0x67   : > { %3261 = vmatpush1.bf16.msra.mxu1 %v3260_v33  ;;  %v468_v54 = vld [vmem:[#allocation2 + $0x130] sm:$0xff]  ;;  %v3202_v56 = vpack.c.bf16 %v467_v50, %v463_v49  ;;  %v466_v57 = vld [vmem:[#allocation2 + $0x120] sm:$0xff]  ;;  %v473_v58 = vld [vmem:[#allocation2 + $0x158] sm:$0xff] }
  0x68   : > { %3197 = vmatpush1.bf16.msra.mxu0 %v3196_v38  ;;  %3263 = vmatprep.subr.bf16.mxu1 %v3262_v39  ;;  %v477_v59 = vld [vmem:[#allocation2 + $0x178] sm:$0xff]  ;;  %v471_v60 = vld [vmem:[#allocation2 + $0x148] sm:$0xff]  ;;  %v3268_v62 = vpack.c.bf16 %v468_v54, %v464_v53  ;;  %v3204_v63 = vpack.c.bf16 %v466_v57, %v462_v55  ;;  %v472_v1 = vld [vmem:[#allocation2 + $0x150] sm:$0xff] }
  0x69   : > { %3199 = vmatprep.subr.bf16.mxu0 %v3198_v43  ;;  %v475_v61 = vld [vmem:[#allocation2 + $0x168] sm:$0xff]  ;;  %v3270_v0 = vpack.c.bf16 %v477_v59, %v473_v58  ;;  %v476_v2 = vld [vmem:[#allocation2 + $0x170] sm:$0xff]  ;;  %v470_v3 = vld [vmem:[#allocation2 + $0x140] sm:$0xff] }
  0x6a   : > { %v3206_v4 = vpack.c.bf16 %v475_v61, %v471_v60  ;;  %v474_v5 = vld [vmem:[#allocation2 + $0x160] sm:$0xff]  ;;  %v481_v6 = vld [vmem:[#allocation2 + $0x198] sm:$0xff]  ;;  %v479_v8 = vld [vmem:[#allocation2 + $0x188] sm:$0xff]  ;;  %v3272_v10 = vpack.c.bf16 %v476_v2, %v472_v1 }
  0x6b   : > { %3265 = vmatpush1.bf16.msra.mxu1 %v3264_v48  ;;  %v485_v7 = vld [vmem:[#allocation2 + $0x1b8] sm:$0xff]  ;;  %v483_v9 = vld [vmem:[#allocation2 + $0x1a8] sm:$0xff]  ;;  %v3208_v11 = vpack.c.bf16 %v474_v5, %v470_v3  ;;  %v480_v13 = vld [vmem:[#allocation2 + $0x190] sm:$0xff] }
  0x6c   : > { %3201 = vmatpush1.bf16.msra.mxu0 %v3200_v51  ;;  %3267 = vmatprep.subr.bf16.mxu1 %v3266_v52  ;;  %v3274_v12 = vpack.c.bf16 %v485_v7, %v481_v6  ;;  %v484_v14 = vld [vmem:[#allocation2 + $0x1b0] sm:$0xff]  ;;  %v478_v15 = vld [vmem:[#allocation2 + $0x180] sm:$0xff]  ;;  %v3210_v16 = vpack.c.bf16 %v483_v9, %v479_v8  ;;  %v489_v18 = vld [vmem:[#allocation2 + $0x1d8] sm:$0xff] }
  0x6d   : > { %3203 = vmatprep.subr.bf16.mxu0 %v3202_v56  ;;  %v482_v17 = vld [vmem:[#allocation2 + $0x1a0] sm:$0xff]  ;;  %v493_v19 = vld [vmem:[#allocation2 + $0x1f8] sm:$0xff]  ;;  %v487_v20 = vld [vmem:[#allocation2 + $0x1c8] sm:$0xff]  ;;  %v3276_v22 = vpack.c.bf16 %v484_v14, %v480_v13 }
  0x6e   : > { %v491_v21 = vld [vmem:[#allocation2 + $0x1e8] sm:$0xff]  ;;  %v3212_v23 = vpack.c.bf16 %v482_v17, %v478_v15  ;;  %v3278_v24 = vpack.c.bf16 %v493_v19, %v489_v18  ;;  %v488_v25 = vld [vmem:[#allocation2 + $0x1d0] sm:$0xff]  ;;  %v486_v27 = vld [vmem:[#allocation2 + $0x1c0] sm:$0xff] }
  0x6f   : > { %3269 = vmatpush1.bf16.msra.mxu1 %v3268_v62  ;;  %v492_v26 = vld [vmem:[#allocation2 + $0x1f0] sm:$0xff]  ;;  %v3214_v28 = vpack.c.bf16 %v491_v21, %v487_v20  ;;  %v490_v29 = vld [vmem:[#allocation2 + $0x1e0] sm:$0xff]  ;;  %v497_v30 = vld [vmem:[#allocation2 + $0x218] sm:$0xff] }
  0x70   : > { %3205 = vmatpush1.bf16.msra.mxu0 %v3204_v63  ;;  %3271 = vmatprep.subr.bf16.mxu1 %v3270_v0  ;;  %v501_v31 = vld [vmem:[#allocation2 + $0x238] sm:$0xff]  ;;  %v495_v32 = vld [vmem:[#allocation2 + $0x208] sm:$0xff]  ;;  %v3280_v34 = vpack.c.bf16 %v492_v26, %v488_v25  ;;  %v3216_v35 = vpack.c.bf16 %v490_v29, %v486_v27  ;;  %v496_v37 = vld [vmem:[#allocation2 + $0x210] sm:$0xff] }
  0x71   : > { %3207 = vmatprep.subr.bf16.mxu0 %v3206_v4  ;;  %v499_v33 = vld [vmem:[#allocation2 + $0x228] sm:$0xff]  ;;  %v3282_v36 = vpack.c.bf16 %v501_v31, %v497_v30  ;;  %v500_v38 = vld [vmem:[#allocation2 + $0x230] sm:$0xff]  ;;  %v494_v39 = vld [vmem:[#allocation2 + $0x200] sm:$0xff] }
  0x72   : > { %v3218_v40 = vpack.c.bf16 %v499_v33, %v495_v32  ;;  %v498_v41 = vld [vmem:[#allocation2 + $0x220] sm:$0xff]  ;;  %v505_v42 = vld [vmem:[#allocation2 + $0x258] sm:$0xff]  ;;  %v503_v44 = vld [vmem:[#allocation2 + $0x248] sm:$0xff]  ;;  %v3284_v46 = vpack.c.bf16 %v500_v38, %v496_v37 }
  0x73   : > { %3273 = vmatpush1.bf16.msra.mxu1 %v3272_v10  ;;  %v509_v43 = vld [vmem:[#allocation2 + $0x278] sm:$0xff]  ;;  %v507_v45 = vld [vmem:[#allocation2 + $0x268] sm:$0xff]  ;;  %v3220_v47 = vpack.c.bf16 %v498_v41, %v494_v39  ;;  %v504_v49 = vld [vmem:[#allocation2 + $0x250] sm:$0xff] }
  0x74   : > { %3209 = vmatpush1.bf16.msra.mxu0 %v3208_v11  ;;  %3275 = vmatprep.subr.bf16.mxu1 %v3274_v12  ;;  %v3286_v48 = vpack.c.bf16 %v509_v43, %v505_v42  ;;  %v508_v50 = vld [vmem:[#allocation2 + $0x270] sm:$0xff]  ;;  %v502_v51 = vld [vmem:[#allocation2 + $0x240] sm:$0xff]  ;;  %v3222_v52 = vpack.c.bf16 %v507_v45, %v503_v44  ;;  %v513_v54 = vld [vmem:[#allocation2 + $0x298] sm:$0xff] }
  0x75   : > { %3211 = vmatprep.subr.bf16.mxu0 %v3210_v16  ;;  %v506_v53 = vld [vmem:[#allocation2 + $0x260] sm:$0xff]  ;;  %v517_v55 = vld [vmem:[#allocation2 + $0x2b8] sm:$0xff]  ;;  %v511_v56 = vld [vmem:[#allocation2 + $0x288] sm:$0xff]  ;;  %v3288_v58 = vpack.c.bf16 %v508_v50, %v504_v49 }
  0x76   : > { %v515_v57 = vld [vmem:[#allocation2 + $0x2a8] sm:$0xff]  ;;  %v3224_v59 = vpack.c.bf16 %v506_v53, %v502_v51  ;;  %v3290_v60 = vpack.c.bf16 %v517_v55, %v513_v54  ;;  %v512_v61 = vld [vmem:[#allocation2 + $0x290] sm:$0xff]  ;;  %v510_v63 = vld [vmem:[#allocation2 + $0x280] sm:$0xff] }
  0x77   : > { %3277 = vmatpush1.bf16.msra.mxu1 %v3276_v22  ;;  %v516_v62 = vld [vmem:[#allocation2 + $0x2b0] sm:$0xff]  ;;  %v3226_v0 = vpack.c.bf16 %v515_v57, %v511_v56  ;;  %v514_v1 = vld [vmem:[#allocation2 + $0x2a0] sm:$0xff]  ;;  %v521_v2 = vld [vmem:[#allocation2 + $0x2d8] sm:$0xff] }
  0x78   : > { %3213 = vmatpush1.bf16.msra.mxu0 %v3212_v23  ;;  %3279 = vmatprep.subr.bf16.mxu1 %v3278_v24  ;;  %v525_v3 = vld [vmem:[#allocation2 + $0x2f8] sm:$0xff]  ;;  %v519_v4 = vld [vmem:[#allocation2 + $0x2c8] sm:$0xff]  ;;  %v3292_v6 = vpack.c.bf16 %v516_v62, %v512_v61  ;;  %v520_v7 = vld [vmem:[#allocation2 + $0x2d0] sm:$0xff]  ;;  %v3228_v8 = vpack.c.bf16 %v514_v1, %v510_v63 }
  0x79   : > { %3215 = vmatprep.subr.bf16.mxu0 %v3214_v28  ;;  %v523_v5 = vld [vmem:[#allocation2 + $0x2e8] sm:$0xff]  ;;  %v3294_v9 = vpack.c.bf16 %v525_v3, %v521_v2  ;;  %v524_v10 = vld [vmem:[#allocation2 + $0x2f0] sm:$0xff]  ;;  %v518_v11 = vld [vmem:[#allocation2 + $0x2c0] sm:$0xff] }
  0x7a   : > { %v522_v12 = vld [vmem:[#allocation2 + $0x2e0] sm:$0xff]  ;;  %v3230_v13 = vpack.c.bf16 %v523_v5, %v519_v4  ;;  %v529_v14 = vld [vmem:[#allocation2 + $0x318] sm:$0xff]  ;;  %v527_v16 = vld [vmem:[#allocation2 + $0x308] sm:$0xff]  ;;  %v3296_v20 = vpack.c.bf16 %v524_v10, %v520_v7 }
  0x7b   : > { %3281 = vmatpush1.bf16.msra.mxu1 %v3280_v34  ;;  %v533_v15 = vld [vmem:[#allocation2 + $0x338] sm:$0xff]  ;;  %v531_v17 = vld [vmem:[#allocation2 + $0x328] sm:$0xff]  ;;  %v3232_v22 = vpack.c.bf16 %v522_v12, %v518_v11  ;;  %v528_v24 = vld [vmem:[#allocation2 + $0x310] sm:$0xff] }
  0x7c   : > { %3217 = vmatpush1.bf16.msra.mxu0 %v3216_v35  ;;  %3283 = vmatprep.subr.bf16.mxu1 %v3282_v36  ;;  %v3842_v18 = vld [vmem:[%s3833_s28 + $0x8] sm:$0xff]  ;;  %v3298_v23 = vpack.c.bf16 %v533_v15, %v529_v14  ;;  %v532_v25 = vld [vmem:[#allocation2 + $0x330] sm:$0xff]  ;;  %v526_v26 = vld [vmem:[#allocation2 + $0x300] sm:$0xff]  ;;  %v3234_v27 = vpack.c.bf16 %v531_v17, %v527_v16 }
  0x7d   : > { %3219 = vmatprep.subr.bf16.mxu0 %v3218_v40  ;;  %v427_v19 = vld [vmem:[%s3839_s14 + $0x8] sm:$0xff]  ;;  %v530_v28 = vld [vmem:[#allocation2 + $0x320] sm:$0xff]  ;;  %v537_v29 = vld [vmem:[#allocation2 + $0x358] sm:$0xff]  ;;  %v3300_v33 = vpack.c.bf16 %v532_v25, %v528_v24 }
  0x7e   : > { %v429_v21 = vadd.f32 %v427_v19, %v3842_v18  ;;  %v541_v30 = vld [vmem:[#allocation2 + $0x378] sm:$0xff]  ;;  %v535_v31 = vld [vmem:[#allocation2 + $0x348] sm:$0xff]  ;;  %v3236_v34 = vpack.c.bf16 %v530_v28, %v526_v26  ;;  %v536_v36 = vld [vmem:[#allocation2 + $0x350] sm:$0xff] }
  0x7f   : > { %3285 = vmatpush1.bf16.msra.mxu1 %v3284_v46  ;;  %v539_v32 = vld [vmem:[#allocation2 + $0x368] sm:$0xff]  ;;  %v3302_v35 = vpack.c.bf16 %v541_v30, %v537_v29  ;;  %v540_v37 = vld [vmem:[#allocation2 + $0x370] sm:$0xff]  ;;  %v534_v38 = vld [vmem:[#allocation2 + $0x340] sm:$0xff] }
  0x80   : > { %3221 = vmatpush1.bf16.msra.mxu0 %v3220_v47  ;;  %3287 = vmatprep.subr.bf16.mxu1 %v3286_v48  ;;  %v3238_v39 = vpack.c.bf16 %v539_v32, %v535_v31  ;;  %v538_v40 = vld [vmem:[#allocation2 + $0x360] sm:$0xff]  ;;  %v545_v41 = vld [vmem:[#allocation2 + $0x398] sm:$0xff]  ;;  %v543_v43 = vld [vmem:[#allocation2 + $0x388] sm:$0xff]  ;;  %v3304_v45 = vpack.c.bf16 %v540_v37, %v536_v36 }
  0x81   : > { %3223 = vmatprep.subr.bf16.mxu0 %v3222_v52  ;;  %715 = vmatprep.mubr.f32.mxu1 %v429_v21  ;;  %v549_v42 = vld [vmem:[#allocation2 + $0x3b8] sm:$0xff]  ;;  %v547_v44 = vld [vmem:[#allocation2 + $0x3a8] sm:$0xff]  ;;  %v3240_v46 = vpack.c.bf16 %v538_v40, %v534_v38  ;;  %v544_v48 = vld [vmem:[#allocation2 + $0x390] sm:$0xff] }
  0x82   : > { %644 = vmatprep.mubr.f32.mxu0 %v429_v21  ;;  %v3306_v47 = vpack.c.bf16 %v549_v42, %v545_v41  ;;  %v548_v49 = vld [vmem:[#allocation2 + $0x3b0] sm:$0xff]  ;;  %v542_v50 = vld [vmem:[#allocation2 + $0x380] sm:$0xff]  ;;  %v3242_v51 = vpack.c.bf16 %v547_v44, %v543_v43  ;;  %v553_v53 = vld [vmem:[#allocation2 + $0x3d8] sm:$0xff] }
  0x83   : > { %3289 = vmatpush1.bf16.msra.mxu1 %v3288_v58  ;;  %v546_v52 = vld [vmem:[#allocation2 + $0x3a0] sm:$0xff]  ;;  %v557_v54 = vld [vmem:[#allocation2 + $0x3f8] sm:$0xff]  ;;  %v551_v55 = vld [vmem:[#allocation2 + $0x3c8] sm:$0xff]  ;;  %v3308_v57 = vpack.c.bf16 %v548_v49, %v544_v48 }
  0x84   : > { %3225 = vmatpush1.bf16.msra.mxu0 %v3224_v59  ;;  %3291 = vmatprep.subr.bf16.mxu1 %v3290_v60  ;;  %v555_v56 = vld [vmem:[#allocation2 + $0x3e8] sm:$0xff]  ;;  %v3244_v58 = vpack.c.bf16 %v546_v52, %v542_v50  ;;  %v3310_v59 = vpack.c.bf16 %v557_v54, %v553_v53  ;;  %v552_v60 = vld [vmem:[#allocation2 + $0x3d0] sm:$0xff]  ;;  %v550_v63 = vld [vmem:[#allocation2 + $0x3c0] sm:$0xff] }
  0x85   : > { %3227 = vmatprep.subr.bf16.mxu0 %v3226_v0  ;;  %v556_v61 = vld [vmem:[#allocation2 + $0x3f0] sm:$0xff]  ;;  %v3246_v62 = vpack.c.bf16 %v555_v56, %v551_v55  ;;  %v554_v0 = vld [vmem:[#allocation2 + $0x3e0] sm:$0xff]  ;;  %v723_v1 = vld [vmem:[#allocation4 + $0x8] sm:$0xff] }
  0x86   : > { %v725_v2 = vld [vmem:[#allocation4 + $0x18] sm:$0xff]  ;;  %v3312_v3 = vpack.c.bf16 %v556_v61, %v552_v60  ;;  %v3847_v4 = vld [vmem:[%s3833_s28] sm:$0xff]  ;;  %v727_v11 = vld [vmem:[#allocation4 + $0x28] sm:$0xff] }
  0x87   : > { %3293 = vmatpush1.bf16.msra.mxu1 %v3292_v6  ;;  %v426_v5 = vld [vmem:[%s3839_s14] sm:$0xff]  ;;  %v3248_v6 = vpack.c.bf16 %v554_v0, %v550_v63  ;;  %v3314_v7 = vpack.c.bf16 %v725_v2, %v723_v1  ;;  %v729_v12 = vld [vmem:[#allocation4 + $0x38] sm:$0xff]  ;;  %v728_v16 = vld [vmem:[#allocation4 + $0x30] sm:$0xff] }
  0x88   : > { %3229 = vmatpush1.bf16.msra.mxu0 %v3228_v8  ;;  %3295 = vmatprep.subr.bf16.mxu1 %v3294_v9  ;;  %v722_v8 = vld [vmem:[#allocation4] sm:$0xff]  ;;  %v724_v9 = vld [vmem:[#allocation4 + $0x10] sm:$0xff]  ;;  %v428_v10 = vadd.f32 %v426_v5, %v3847_v4  ;;  %v3318_v14 = vpack.c.bf16 %v729_v12, %v727_v11  ;;  %v731_v17 = vld [vmem:[#allocation4 + $0x48] sm:$0xff] }
  0x89   : > { %3231 = vmatprep.subr.bf16.mxu0 %v3230_v13  ;;  %v3316_v13 = vpack.c.bf16 %v724_v9, %v722_v8  ;;  %v726_v15 = vld [vmem:[#allocation4 + $0x20] sm:$0xff]  ;;  %v733_v19 = vld [vmem:[#allocation4 + $0x58] sm:$0xff]  ;;  %v735_v24 = vld [vmem:[#allocation4 + $0x68] sm:$0xff] }
  0x8a   : > { %v3322_v21 = vpack.c.bf16 %v733_v19, %v731_v17  ;;  %v737_v25 = vld [vmem:[#allocation4 + $0x78] sm:$0xff]  ;;  %v734_v28 = vld [vmem:[#allocation4 + $0x60] sm:$0xff]  ;;  %v736_v29 = vld [vmem:[#allocation4 + $0x70] sm:$0xff] }
  0x8b   : > { %3297 = vmatpush1.bf16.msra.mxu1 %v3296_v20  ;;  %v3320_v20 = vpack.c.bf16 %v728_v16, %v726_v15  ;;  %v739_v30 = vld [vmem:[#allocation4 + $0x88] sm:$0xff]  ;;  %v741_v31 = vld [vmem:[#allocation4 + $0x98] sm:$0xff]  ;;  %v3328_v32 = vpack.c.bf16 %v736_v29, %v734_v28  ;;  %v744_v40 = vld [vmem:[#allocation4 + $0xb0] sm:$0xff] }
  0x8c   : > { %3233 = vmatpush1.bf16.msra.mxu0 %v3232_v22  ;;  %3299 = vmatprep.subr.bf16.mxu1 %v3298_v23  ;;  %v730_v22 = vld [vmem:[#allocation4 + $0x40] sm:$0xff]  ;;  %v732_v23 = vld [vmem:[#allocation4 + $0x50] sm:$0xff]  ;;  %v745_v36 = vld [vmem:[#allocation4 + $0xb8] sm:$0xff] }
  0x8d   : > { %3235 = vmatprep.subr.bf16.mxu0 %v3234_v27  ;;  %v3324_v26 = vpack.c.bf16 %v732_v23, %v730_v22  ;;  %v3326_v27 = vpack.c.bf16 %v737_v25, %v735_v24  ;;  %v747_v41 = vld [vmem:[#allocation4 + $0xc8] sm:$0xff]  ;;  %v749_v42 = vld [vmem:[#allocation4 + $0xd8] sm:$0xff]  ;;  %v752_v52 = vld [vmem:[#allocation4 + $0xf0] sm:$0xff] }
  0x8e   : > { %v3338_v44 = vpack.c.bf16 %v749_v42, %v747_v41  ;;  %v753_v48 = vld [vmem:[#allocation4 + $0xf8] sm:$0xff]  ;;  %v755_v53 = vld [vmem:[#allocation4 + $0x108] sm:$0xff]  ;;  %v758_v63 = vld [vmem:[#allocation4 + $0x120] sm:$0xff] }
  0x8f   : > { %3301 = vmatpush1.bf16.msra.mxu1 %v3300_v33  ;;  %v3330_v33 = vpack.c.bf16 %v741_v31, %v739_v30  ;;  %v757_v54 = vld [vmem:[#allocation4 + $0x118] sm:$0xff]  ;;  %v760_v0 = vld [vmem:[#allocation4 + $0x130] sm:$0xff]  ;;  %v763_v1 = vld [vmem:[#allocation4 + $0x148] sm:$0xff] }
  0x90   : > { %3237 = vmatpush1.bf16.msra.mxu0 %v3236_v34  ;;  %3303 = vmatprep.subr.bf16.mxu1 %v3302_v35  ;;  %v738_v34 = vld [vmem:[#allocation4 + $0x80] sm:$0xff]  ;;  %v743_v35 = vld [vmem:[#allocation4 + $0xa8] sm:$0xff]  ;;  %v3346_v56 = vpack.c.bf16 %v757_v54, %v755_v53  ;;  %v761_v60 = vld [vmem:[#allocation4 + $0x138] sm:$0xff] }
  0x91   : > { %3239 = vmatprep.subr.bf16.mxu0 %v3238_v39  ;;  %v3334_v38 = vpack.c.bf16 %v745_v36, %v743_v35  ;;  %v742_v39 = vld [vmem:[#allocation4 + $0xa0] sm:$0xff]  ;;  %v765_v2 = vld [vmem:[#allocation4 + $0x158] sm:$0xff]  ;;  %v767_v8 = vld [vmem:[#allocation4 + $0x168] sm:$0xff] }
  0x92   : > { %v3336_v43 = vpack.c.bf16 %v744_v40, %v742_v39  ;;  %v3354_v5 = vpack.c.bf16 %v765_v2, %v763_v1  ;;  %v769_v9 = vld [vmem:[#allocation4 + $0x178] sm:$0xff]  ;;  %v766_v12 = vld [vmem:[#allocation4 + $0x160] sm:$0xff]  ;;  %v3647_v39 = vmov 0.0   ;;  %v560_v40 = vlaneseq }
  0x93   : > { %3305 = vmatpush1.bf16.msra.mxu1 %v3304_v45  ;;  %v746_v45 = vld [vmem:[#allocation4 + $0xc0] sm:$0xff]  ;;  %v3358_v11 = vpack.c.bf16 %v769_v9, %v767_v8  ;;  %v773_v15 = vld [vmem:[#allocation4 + $0x198] sm:$0xff] }
  0x94   : > { %3241 = vmatpush1.bf16.msra.mxu0 %v3240_v46  ;;  %3307 = vmatprep.subr.bf16.mxu1 %v3306_v47  ;;  %v748_v46 = vld [vmem:[#allocation4 + $0xd0] sm:$0xff]  ;;  %v751_v47 = vld [vmem:[#allocation4 + $0xe8] sm:$0xff]  ;;  %v770_v19 = vld [vmem:[#allocation4 + $0x180] sm:$0xff]  ;;  %v561_v41 = vshrl.u32 %v560_v40, 7 }
  0x95   : > { %3243 = vmatprep.subr.bf16.mxu0 %v3242_v51  ;;  %v3340_v49 = vpack.c.bf16 %v748_v46, %v746_v45  ;;  %v3342_v50 = vpack.c.bf16 %v753_v48, %v751_v47  ;;  %v750_v51 = vld [vmem:[#allocation4 + $0xe0] sm:$0xff]  ;;  %v777_v22 = vld [vmem:[#allocation4 + $0x1b8] sm:$0xff] }
  0x96   : > { %v3344_v55 = vpack.c.bf16 %v752_v52, %v750_v51  ;;  %v774_v25 = vld [vmem:[#allocation4 + $0x1a0] sm:$0xff]  ;;  %v781_v28 = vld [vmem:[#allocation4 + $0x1d8] sm:$0xff]  ;;  %v570_v42 = vsub.s32 2, %v561_v41  ;;  %v574_v45 = vsub.s32 3, %v561_v41  ;;  %v3865_v48 = vsub.s32 1, %v561_v41 }
  0x97   : > { %3309 = vmatpush1.bf16.msra.mxu1 %v3308_v57  ;;  %v754_v57 = vld [vmem:[#allocation4 + $0x100] sm:$0xff] }
  0x98   : > { %3245 = vmatpush1.bf16.msra.mxu0 %v3244_v58  ;;  %3311 = vmatprep.subr.bf16.mxu1 %v3310_v59  ;;  %v756_v58 = vld [vmem:[#allocation4 + $0x110] sm:$0xff]  ;;  %v759_v59 = vld [vmem:[#allocation4 + $0x128] sm:$0xff]  ;;  %v778_v31 = vld [vmem:[#allocation4 + $0x1c0] sm:$0xff] }
  0x99   : > { %3247 = vmatprep.subr.bf16.mxu0 %v3246_v62  ;;  %v3348_v61 = vpack.c.bf16 %v756_v58, %v754_v57  ;;  %v3350_v62 = vpack.c.bf16 %v761_v60, %v759_v59  ;;  %v782_v36 = vld [vmem:[#allocation4 + $0x1e0] sm:$0xff] }
  0x9a   : > { %v786_v58 = vld [vmem:[%s4069_s5] sm:$0x3] }
  0x9b   : > { %3313 = vmatpush1.bf16.msra.mxu1 %v3312_v3  ;;  %v3352_v3 = vpack.c.bf16 %v760_v0, %v758_v63  ;;  %v795_v60 = vrot.slane %v786_v58, %v3865_v48 }
  0x9c   : > { %3249 = vmatpush1.bf16.msra.mxu0 %v3248_v6  ;;  %v762_v6 = vld [vmem:[#allocation4 + $0x140] sm:$0xff]  ;;  %3111 = vmatprep.subr.mxu1 %v3647_v39 }
  0x9d   : > { %3315 = vmatprep.subr.bf16.mxu0 %v3314_v7  ;;  %v764_v7 = vld [vmem:[#allocation4 + $0x150] sm:$0xff] }
  0x9e   : > { %716 = vmatmul.mubr.f32.vlgmr.msra.gmra.mrb[0].mxu1 %v428_v10 }
  0x9f   : > { %645 = vmatmul.mubr.f32.vlgmr.msra.gmra.mrb[0].mxu0 %v428_v10  ;;  %v3356_v10 = vpack.c.bf16 %v764_v7, %v762_v6  ;;  %3113 = vmatprep.mubr.msk.f32.mxu1 %vm3648_vm0, %v3647_v39 }
  0xa0   : > { %3317 = vmatpush1.bf16.msra.mxu0 %v3316_v13  ;;  %862 = vmatprep.mubr.f32.mxu0 %v3842_v18  ;;  %v740_v18 = vld [vmem:[#allocation4 + $0x90] sm:$0xff] }
  0xa1   : > { %3319 = vmatprep.subr.bf16.mxu0 %v3318_v14  ;;  %v3332_v37 = vpack.c.bf16 %v740_v18, %v738_v34  ;;  %v768_v13 = vld [vmem:[#allocation4 + $0x170] sm:$0xff]  ;;  %v771_v14 = vld [vmem:[#allocation4 + $0x188] sm:$0xff]  ;;  %v785_v34 = vld [vmem:[#allocation4 + $0x1f8] sm:$0xff] }
  0xa2   : > { %v3360_v16 = vpack.c.bf16 %v768_v13, %v766_v12  ;;  %v3362_v17 = vpack.c.bf16 %v773_v15, %v771_v14 }
  0xa4   : > { %3321 = vmatpush1.bf16.msra.mxu0 %v3320_v20  ;;  %v772_v20 = vld [vmem:[#allocation4 + $0x190] sm:$0xff] }
  0xa5   : > { %3323 = vmatprep.subr.bf16.mxu0 %v3322_v21  ;;  %v775_v21 = vld [vmem:[#allocation4 + $0x1a8] sm:$0xff]  ;;  %v3364_v23 = vpack.c.bf16 %v772_v20, %v770_v19 }
  0xa6   : > { %v3366_v24 = vpack.c.bf16 %v777_v22, %v775_v21 }
  0xa8   : > { %3325 = vmatpush1.bf16.msra.mxu0 %v3324_v26  ;;  %v776_v26 = vld [vmem:[#allocation4 + $0x1b0] sm:$0xff] }
  0xa9   : > { %3327 = vmatprep.subr.bf16.mxu0 %v3326_v27  ;;  %v779_v27 = vld [vmem:[#allocation4 + $0x1c8] sm:$0xff]  ;;  %v3368_v29 = vpack.c.bf16 %v776_v26, %v774_v25 }
  0xaa   : > { %v3370_v30 = vpack.c.bf16 %v781_v28, %v779_v27 }
  0xac   : > { %3329 = vmatpush1.bf16.msra.mxu0 %v3328_v32  ;;  %v780_v32 = vld [vmem:[#allocation4 + $0x1d0] sm:$0xff] }
  0xad   : > { %3331 = vmatprep.subr.bf16.mxu0 %v3330_v33  ;;  %v783_v33 = vld [vmem:[#allocation4 + $0x1e8] sm:$0xff]  ;;  %v3372_v18 = vpack.c.bf16 %v780_v32, %v778_v31 }
  0xae   : > { %v3374_v35 = vpack.c.bf16 %v785_v34, %v783_v33 }
  0xb0   : > { %3333 = vmatpush1.bf16.msra.mxu0 %v3332_v37  ;;  %v784_v37 = vld [vmem:[#allocation4 + $0x1f0] sm:$0xff] }
  0xb1   : > { %3335 = vmatprep.subr.bf16.mxu0 %v3334_v38  ;;  %v3376_v38 = vpack.c.bf16 %v784_v37, %v782_v36  ;;  %v1208_v37 = vld [vmem:[#allocation6 + $0x48] sm:$0xff] }
  0xb4   : > { %3337 = vmatpush1.bf16.msra.mxu0 %v3336_v43  ;;  %v558_v43 = vld [vmem:[%s4067_s3] sm:$0xf] }
  0xb5   : > { %3339 = vmatprep.subr.bf16.mxu0 %v3338_v44  ;;  %v571_v44 = vrot.slane %v558_v43, %v570_v42  ;;  %v1209_v42 = vld [vmem:[#allocation6 + $0x50] sm:$0xff] }
  0xb8   : > { %3341 = vmatpush1.bf16.msra.mxu0 %v3340_v49 }
  0xb9   : > { %3343 = vmatprep.subr.bf16.mxu0 %v3342_v50  ;;  %v575_v50 = vrot.slane %v558_v43, %v574_v45  ;;  %v1214_v45 = vld [vmem:[#allocation6 + $0x78] sm:$0xff] }
  0xbc   : > { %3345 = vmatpush1.bf16.msra.mxu0 %v3344_v55  ;;  %v567_v55 = vrot.slane %v558_v43, %v3865_v48 }
  0xbd   : > { %3347 = vmatprep.subr.bf16.mxu0 %v3346_v56 }
  0xc0   : > { %3349 = vmatpush1.bf16.msra.mxu0 %v3348_v61 }
  0xc1   : > { %3351 = vmatprep.subr.bf16.mxu0 %v3350_v62 }
  0xc4   : > { %3353 = vmatpush1.bf16.msra.mxu0 %v3352_v3 }
  0xc5   : > { %3355 = vmatprep.subr.bf16.mxu0 %v3354_v5 }
  0xc8   : > { %3357 = vmatpush1.bf16.msra.mxu0 %v3356_v10 }
  0xc9   : > { %3359 = vmatprep.subr.bf16.mxu0 %v3358_v11 }
  0xcc   : > { %3361 = vmatpush1.bf16.msra.mxu0 %v3360_v16 }
  0xcd   : > { %3363 = vmatprep.subr.bf16.mxu0 %v3362_v17 }
  0xd0   : > { %3365 = vmatpush1.bf16.msra.mxu0 %v3364_v23 }
  0xd1   : > { %3367 = vmatprep.subr.bf16.mxu0 %v3366_v24 }
  0xd4   : > { %3369 = vmatpush1.bf16.msra.mxu0 %v3368_v29 }
  0xd5   : > { %3371 = vmatprep.subr.bf16.mxu0 %v3370_v30 }
  0xd8   : > { %3373 = vmatpush1.bf16.msra.mxu0 %v3372_v18 }
  0xd9   : > { %3375 = vmatprep.subr.bf16.mxu0 %v3374_v35 }
  0xdc   : > { %3377 = vmatpush1.bf16.msra.mxu0 %v3376_v38  ;;  %v1210_v38 = vld [vmem:[#allocation6 + $0x58] sm:$0xff] }
  0xdd   : > { %3106 = vmatprep.subr.mxu0 %v3647_v39  ;;  %v3378_v40 = vpack.c.bf16 %v1210_v38, %v1208_v37 }
  0xdf   : > { %863 = vmatmul.mubr.f32.vlgmr.msra.gmra.mrb[2].mxu0 %v3847_v4  ;;  %v3862_v4 = vsub.s32 0, %v561_v41  ;;  %v1207_v41 = vld [vmem:[#allocation6 + $0x40] sm:$0xff] }
  0xe0   : > { %3108 = vmatprep.mubr.msk.f32.mxu0 %vm3648_vm0, %v3647_v39 }
  0xe1   : > { %v563_v46 = vrot.slane %v558_v43, %v3862_v4  ;;  %v791_v59 = vrot.slane %v786_v58, %v3862_v4  ;;  %v3380_v43 = vpack.c.bf16 %v1209_v42, %v1207_v41  ;;  %v1531_v41 = vld [vmem:[#allocation6 + $0x90] sm:$0xff]  ;;  %v1536_v42 = vld [vmem:[#allocation6 + $0xb8] sm:$0xff] }
 0x171   : > { %v717_v47 = vpop.f32.mrb[0].mxu1 }
 0x172   : > { %v3867_v49 = vadd.f32 %v717_v47, %v571_v44  ;;  %v719_v51 = vpop.f32.mrb[1].mxu1  ;;  %v646_v52 = vpop.f32.mrb[0].mxu0  ;;  %v1212_v44 = vld [vmem:[#allocation6 + $0x68] sm:$0xff]  ;;  %v1211_v47 = vld [vmem:[#allocation6 + $0x60] sm:$0xff] }
 0x173   : > { %v3869_v53 = vadd.f32 %v646_v52, %v563_v46  ;;  %v648_v54 = vpop.f32.mrb[1].mxu0  ;;  %v3877_v56 = vadd.f32 %v719_v51, %v575_v50  ;;  %v3382_v46 = vpack.c.bf16 %v1214_v45, %v1212_v44  ;;  %v1213_v50 = vld [vmem:[#allocation6 + $0x70] sm:$0xff]  ;;  %v1033_v52 = vld [vmem:[#allocation6 + $0x8] sm:$0xff] }
 0x174   : > { %1042 = vrot.lane.b32.xlu1 %v3867_v49, %s3649_s24  ;;  %3107 = vmatpush3.xpose.msk.msra.mxu0 %vm869_vm1, %v3867_v49  ;;  %v3885_v57 = vadd.f32 %v648_v54, %v567_v55  ;;  %v3384_v51 = vpack.c.bf16 %v1213_v50, %v1211_v47  ;;  %v1035_v54 = vld [vmem:[#allocation6 + $0x18] sm:$0xff]  ;;  %v1533_v47 = vld [vmem:[#allocation6 + $0xa0] sm:$0xff]  ;;  %v1535_v50 = vld [vmem:[#allocation6 + $0xb0] sm:$0xff] }
 0x175   : > { %3146 = vmatprep.subr.mxu0 %v3647_v39  ;;  %v3386_v55 = vpack.c.bf16 %v1035_v54, %v1033_v52 }
 0x177   : > { %3109 = vmatmul.mubr.msk.f32.vlgmr.msra.gmra.mrb[4].mxu0 %vm869_vm1, %v3869_v53 }
 0x178   : > { %1040 = vrot.lane.b32.xlu1 %v3869_v53, %s3649_s24  ;;  %3147 = vmatpush3.xpose.msk.msra.mxu0 %vm869_vm1, %v3877_v56 }
 0x179   : > { %3148 = vmatprep.mubr.msk.f32.mxu0 %vm3648_vm0, %v3647_v39  ;;  %3156 = vmatprep.subr.mxu0 %v3647_v39 }
 0x17b   : > { %3149 = vmatmul.mubr.msk.f32.vlgmr.msra.gmra.mrb[6].mxu0 %vm869_vm1, %v3885_v57 }
 0x17c   : > { %3158 = vmatprep.mubr.msk.f32.mxu0 %vm3648_vm0, %v3647_v39 }
 0x1b2   : > { %v864_v61 = vpop.f32.mrb[2].mxu0 }
 0x1b3   : > { %v3899_v62 = vadd.f32 %v864_v61, %v791_v59  ;;  %v866_v63 = vpop.f32.mrb[3].mxu0 }
 0x1b4   : > { %v3901_v0 = vadd.f32 %v866_v63, %v795_v60  ;;  %v1032_v63 = vld [vmem:[#allocation6] sm:$0xff] }
 0x1b5   : > { %3112 = vmatpush3.msra.mxu1 %v3899_v62 }
 0x1b6   : > { %3116 = vmatprep.subr.mxu1 %v3647_v39 }
 0x1e6   : > { %v1043_v15 = vpop.permute.xlu1 %1042 }
 0x1ea   : > { %v1041_v17 = vpop.permute.xlu1 %1040 }
 0x24a   : > { %v942_v1 = vpop.f32.mrb[4].mxu0 }
 0x24b   : > { %v946_v2 = vmul.f32 0.17677669, %v942_v1  ;;  %v3110_v3 = vpop.f32.mrb[5].mxu0  ;;  %v1034_v1 = vld [vmem:[#allocation6 + $0x10] sm:$0xff] }
 0x24c   : > { %v1039_v3 = vld [vmem:[#allocation6 + $0x38] sm:$0xff] }
 0x24d   : > { %v948_v5 = vsel %vm947_vm2, %v946_v2, -inf }
 0x24e   : > { %949 = vmax.xlane.f32.xlu0 %v948_v5  ;;  %v3906_v6 = vpop.f32.mrb[6].mxu0  ;;  %v3388_v5 = vpack.c.bf16 %v1034_v1, %v1032_v63 }
 0x24f   : > { %v3150_v7 = vpop.f32.mrb[7].mxu0 }
 0x2db   : > { %v950_v8 = vpop.xlane.xlu0 %949 }
 0x2dc   : > { %v951_v9 = vsub.f32 %v946_v2, %v950_v8  ;;  %v1037_v2 = vld [vmem:[#allocation6 + $0x28] sm:$0xff]  ;;  %v1036_v8 = vld [vmem:[#allocation6 + $0x20] sm:$0xff] }
 0x2dd   : > { %v3390_v7 = vpack.c.bf16 %v1039_v3, %v1037_v2 }
 0x2de   : > { %v952_v10 = vmul.f32 1.442695, %v951_v9  ;;  %v1038_v9 = vld [vmem:[#allocation6 + $0x30] sm:$0xff] }
 0x2e0   : > { %3504 = vpow2.f32 %v952_v10 }
 0x2ea   : > { %v3505_v11 = vpop.eup %3504 }
 0x2eb   : > { %v954_v12 = vsel %vm947_vm2, %v3505_v11, 0.0 }
 0x2ec   : > { %955 = vadd.xlane.f32.xlu0 %v954_v12  ;;  %v3392_v12 = vpack.c.bf16 %v1038_v9, %v1036_v8 }
 0x379   : > { %v956_v13 = vpop.xlane.xlu0 %955 }
 0x37a   : > { %3506 = vrcp.f32 %v956_v13 }
 0x384   : > { %v3507_v14 = vpop.eup %3506 }
 0x385   : > { %v958_v16 = vmul.f32 %v3507_v14, %v3505_v11 }
 0x387   : > { %3114 = vmatmul.mubr.msk.f32.vlgmr.msra.gmra.mrb[2].mxu1 %vm947_vm2, %v958_v16 }
 0x388   : > { %3117 = vmatpush3.xpose.msk.msra.mxu1 %vm869_vm1, %v1043_v15  ;;  %3118 = vmatprep.mubr.msk.f32.mxu1 %vm3648_vm0, %v3647_v39 }
 0x389   : > { %3121 = vmatprep.subr.mxu1 %v3647_v39 }
 0x38b   : > { %3119 = vmatmul.mubr.msk.f32.vlgmr.msra.gmra.mrb[4].mxu1 %vm869_vm1, %v1041_v17 }
 0x38c   : > { %3123 = vmatprep.mubr.msk.f32.mxu1 %vm3648_vm0, %v3647_v39 }
 0x45a   : > { %v3917_v19 = vpop.f32.mrb[2].mxu1 }
 0x45b   : > { %v3115_v20 = vpop.f32.mrb[3].mxu1 }
 0x45e   : > { %v1114_v21 = vpop.f32.mrb[4].mxu1 }
 0x45f   : > { %v1118_v22 = vmul.f32 0.17677669, %v1114_v21  ;;  %v3120_v23 = vpop.f32.mrb[5].mxu1 }
 0x461   : > { %v1119_v24 = vsel %vm947_vm2, %v1118_v22, -inf }
 0x462   : > { %1120 = vmax.xlane.f32.xlu0 %v1119_v24 }
 0x478   : > { %1131 = vrot.lane.b32.xlu0 %v3899_v62, %s3649_s24 }
 0x47c   : > { %1365 = vrot.lane.b32.xlu0 %v3867_v49, %s3650_s27 }
 0x480   : > { %1363 = vrot.lane.b32.xlu0 %v3869_v53, %s3650_s27 }
 0x484   : > { %2110 = vrot.lane.b32.xlu0 %v3877_v56, %s3649_s24 }
 0x4ef   : > { %v1121_v25 = vpop.xlane.xlu0 %1120 }
 0x4f0   : > { %v1122_v26 = vsub.f32 %v1118_v22, %v1121_v25 }
 0x4f2   : > { %v1123_v27 = vmul.f32 1.442695, %v1122_v26 }
 0x4f3   : > { %v1132_v28 = vpop.permute.xlu0 %1131 }
 0x4f4   : > { %3508 = vpow2.f32 %v1123_v27  ;;  %3122 = vmatpush3.msra.mxu1 %v1132_v28 }
 0x4f5   : > { %3379 = vmatprep.subr.bf16.mxu1 %v3378_v40  ;;  %v1529_v40 = vld [vmem:[#allocation6 + $0x80] sm:$0xff] }
 0x4f7   : > { %v1366_v29 = vpop.permute.xlu0 %1365 }
 0x4fb   : > { %v3928_v30 = vpop.permute.xlu0 %1363 }
 0x4fe   : > { %v3509_v31 = vpop.eup %3508 }
 0x4ff   : > { %v2111_v32 = vpop.permute.xlu0 %2110  ;;  %v1125_v33 = vsel %vm947_vm2, %v3509_v31, 0.0 }
 0x500   : > { %1126 = vadd.xlane.f32.xlu1 %v1125_v33  ;;  %3157 = vmatpush3.xpose.msk.msra.mxu0 %vm869_vm1, %v2111_v32 }
 0x501   : > { %3161 = vmatprep.subr.mxu0 %v3647_v39 }
 0x511   : > { %2108 = vrot.lane.b32.xlu1 %v3885_v57, %s3649_s24 }
 0x58d   : > { %v1127_v34 = vpop.xlane.xlu1 %1126 }
 0x58e   : > { %3510 = vrcp.f32 %v1127_v34  ;;  %v1530_v34 = vld [vmem:[#allocation6 + $0x88] sm:$0xff] }
 0x591   : > { %v2109_v18 = vpop.permute.xlu1 %2108 }
 0x592   : > { %3159 = vmatmul.mubr.msk.f32.vlgmr.msra.gmra.mrb[8].mxu0 %vm869_vm1, %v2109_v18  ;;  %v1532_v18 = vld [vmem:[#allocation6 + $0x98] sm:$0xff] }
 0x593   : > { %3163 = vmatprep.mubr.msk.f32.mxu0 %vm3648_vm0, %v3647_v39 }
 0x598   : > { %v3511_v35 = vpop.eup %3510 }
 0x599   : > { %v1129_v36 = vmul.f32 %v3511_v35, %v3509_v31 }
 0x59b   : > { %3124 = vmatmul.mubr.msk.f32.vlgmr.msra.gmra.mrb[6].mxu1 %vm947_vm2, %v1129_v36  ;;  %v3394_v36 = vpack.c.bf16 %v1532_v18, %v1530_v34 }
 0x59c   : > { %1282 = vmatprep.mubr.f32.mxu1 %v3647_v39  ;;  %3381 = vmatpush1.bf16.msra.mxu1 %v3380_v43  ;;  %v3396_v43 = vpack.c.bf16 %v1531_v41, %v1529_v40  ;;  %v1782_v40 = vld [vmem:[#allocation6 + $0xd8] sm:$0xff]  ;;  %v1779_v41 = vld [vmem:[#allocation6 + $0xc0] sm:$0xff] }
 0x59d   : > { %3383 = vmatprep.subr.bf16.mxu1 %v3382_v46 }
 0x5a0   : > { %3385 = vmatpush1.bf16.msra.mxu1 %v3384_v51  ;;  %v3400_v51 = vpack.c.bf16 %v1535_v50, %v1533_v47  ;;  %v1785_v47 = vld [vmem:[#allocation6 + $0xf0] sm:$0xff] }
 0x5a1   : > { %3387 = vmatprep.subr.bf16.mxu1 %v3386_v55 }
 0x665   : > { %v2182_v58 = vpop.f32.mrb[8].mxu0 }
 0x666   : > { %v2186_v59 = vmul.f32 0.17677669, %v2182_v58  ;;  %v3160_v60 = vpop.f32.mrb[9].mxu0 }
 0x668   : > { %v2187_v61 = vsel %vm947_vm2, %v2186_v59, -inf }
 0x669   : > { %2188 = vmax.xlane.f32.xlu1 %v2187_v61 }
 0x66e   : > { %v1203_v10 = vpop.f32.mrb[6].mxu1 }
 0x66f   : > { %v3125_v11 = vpop.f32.mrb[7].mxu1  ;;  %3043 = vmatmul.mubr.msk.f32.vlgmr.msra.gmra.mrb[8].mxu1 %vm869_vm1, %v1203_v10 }
 0x670   : > { %3389 = vmatpush1.bf16.msra.mxu1 %v3388_v5  ;;  %1356 = vmatprep.mubr.f32.mxu1 %v3647_v39 }
 0x671   : > { %3391 = vmatprep.subr.bf16.mxu1 %v3390_v7 }
 0x674   : > { %3393 = vmatpush1.bf16.msra.mxu1 %v3392_v12 }
 0x675   : > { %3126 = vmatprep.subr.mxu1 %v3647_v39 }
 0x677   : > { %3044 = vmatmul.mubr.msk.f32.vlgmr.msra.gmra.mrb[8].mxu1 %vm869_vm1, %v3917_v19 }
 0x678   : > { %3128 = vmatprep.mubr.msk.f32.mxu1 %vm3648_vm0, %v3647_v39 }
 0x67d   : > { %3127 = vmatpush3.xpose.msk.msra.mxu1 %vm869_vm1, %v1366_v29 }
 0x67e   : > { %3131 = vmatprep.subr.mxu1 %v3647_v39 }
 0x680   : > { %3129 = vmatmul.mubr.msk.f32.vlgmr.msra.gmra.mrb[10].mxu1 %vm869_vm1, %v3928_v30 }
 0x681   : > { %3133 = vmatprep.mubr.msk.f32.mxu1 %vm3648_vm0, %v3647_v39 }
 0x6f6   : > { %v2189_v13 = vpop.xlane.xlu1 %2188 }
 0x6f7   : > { %v2190_v14 = vsub.f32 %v2186_v59, %v2189_v13 }
 0x6f9   : > { %v2191_v15 = vmul.f32 1.442695, %v2190_v14 }
 0x6fb   : > { %3512 = vpow2.f32 %v2191_v15 }
 0x705   : > { %v3513_v16 = vpop.eup %3512 }
 0x706   : > { %v2193_v17 = vsel %vm947_vm2, %v3513_v16, 0.0 }
 0x707   : > { %2194 = vadd.xlane.f32.xlu1 %v2193_v17 }
 0x718   : > { %2199 = vrot.lane.b32.xlu1 %v3901_v0, %s3649_s24 }
 0x753   : > { %v1437_v19 = vpop.f32.mrb[10].mxu1 }
 0x754   : > { %v1441_v20 = vmul.f32 0.17677669, %v1437_v19  ;;  %v3130_v21 = vpop.f32.mrb[11].mxu1 }
 0x756   : > { %v1442_v22 = vsel %vm947_vm2, %v1441_v20, -inf }
 0x757   : > { %1443 = vmax.xlane.f32.xlu0 %v1442_v22  ;;  %v1939_v22 = vmul.f32 0.17677669, %v3906_v6 }
 0x794   : > { %v2195_v23 = vpop.xlane.xlu1 %2194 }
 0x795   : > { %3514 = vrcp.f32 %v2195_v23 }
 0x798   : > { %v2200_v24 = vpop.permute.xlu1 %2199 }
 0x799   : > { %3162 = vmatpush3.msra.mxu0 %v2200_v24  ;;  %v1940_v24 = vsel %vm947_vm2, %v1939_v22, -inf }
 0x79a   : > { %3166 = vmatprep.subr.mxu0 %v3647_v39 }
 0x79f   : > { %v3515_v25 = vpop.eup %3514 }
 0x7a0   : > { %v2197_v26 = vmul.f32 %v3515_v25, %v3513_v16 }
 0x7a2   : > { %3164 = vmatmul.mubr.msk.f32.vlgmr.msra.gmra.mrb[10].mxu0 %vm947_vm2, %v2197_v26 }
 0x7a3   : > { %3168 = vmatprep.mubr.msk.f32.mxu0 %vm3648_vm0, %v3647_v39 }
 0x7e4   : > { %v1444_v27 = vpop.xlane.xlu0 %1443 }
 0x7e5   : > { %v1445_v28 = vsub.f32 %v1441_v20, %v1444_v27 }
 0x7e7   : > { %v1446_v29 = vmul.f32 1.442695, %v1445_v28 }
 0x7e9   : > { %3516 = vpow2.f32 %v1446_v29 }
 0x7f3   : > { %v3517_v30 = vpop.eup %3516 }
 0x7f4   : > { %v1448_v31 = vsel %vm947_vm2, %v3517_v30, 0.0 }
 0x7f5   : > { %1449 = vadd.xlane.f32.xlu0 %v1448_v31 }
 0x80b   : > { %1453 = vrot.lane.b32.xlu0 %v3899_v62, %s3650_s27 }
 0x80f   : > { %2361 = vrot.lane.b32.xlu0 %v3877_v56, %s3650_s27 }
 0x813   : > { %2359 = vrot.lane.b32.xlu0 %v3885_v57, %s3650_s27 }
 0x817   : > { %1615 = vrot.lane.b32.xlu0 %v3867_v49, %s3651_s29  ;;  %v1534_v49 = vld [vmem:[#allocation6 + $0xa8] sm:$0xff] }
 0x818   : > { %v3398_v46 = vpack.c.bf16 %v1536_v42, %v1534_v49  ;;  %v1781_v42 = vld [vmem:[#allocation6 + $0xd0] sm:$0xff] }
 0x81b   : > { %1613 = vrot.lane.b32.xlu0 %v3869_v53, %s3651_s29 }
 0x875   : > { %v3973_v32 = vpop.f32.mrb[10].mxu0 }
 0x876   : > { %v3165_v33 = vpop.f32.mrb[11].mxu0 }
 0x882   : > { %v1450_v35 = vpop.xlane.xlu0 %1449 }
 0x883   : > { %3518 = vrcp.f32 %v1450_v35 }
 0x886   : > { %v1454_v37 = vpop.permute.xlu0 %1453 }
 0x887   : > { %3132 = vmatpush3.msra.mxu1 %v1454_v37 }
 0x888   : > { %3395 = vmatprep.subr.bf16.mxu1 %v3394_v36 }
 0x88a   : > { %v2362_v38 = vpop.permute.xlu0 %2361 }
 0x88b   : > { %3167 = vmatpush3.xpose.msk.msra.mxu0 %vm869_vm1, %v2362_v38  ;;  %v1780_v38 = vld [vmem:[#allocation6 + $0xc8] sm:$0xff] }
 0x88c   : > { %3171 = vmatprep.subr.mxu0 %v3647_v39  ;;  %v3402_v49 = vpack.c.bf16 %v1782_v40, %v1780_v38  ;;  %v2529_v40 = vld [vmem:[#allocation6 + $0x1a0] sm:$0xff] }
 0x88d   : > { %v3519_v53 = vpop.eup %3518 }
 0x88e   : > { %v1452_v44 = vmul.f32 %v3519_v53, %v3517_v30  ;;  %v2360_v45 = vpop.permute.xlu0 %2359  ;;  %v1784_v53 = vld [vmem:[#allocation6 + $0xe8] sm:$0xff] }
 0x88f   : > { %3169 = vmatmul.mubr.msk.f32.vlgmr.msra.gmra.mrb[12].mxu0 %vm869_vm1, %v2360_v45 }
 0x890   : > { %3134 = vmatmul.mubr.msk.f32.vlgmr.msra.gmra.mrb[12].mxu1 %vm947_vm2, %v1452_v44  ;;  %3173 = vmatprep.mubr.msk.f32.mxu0 %vm3648_vm0, %v3647_v39  ;;  %v3404_v44 = vpack.c.bf16 %v1781_v42, %v1779_v41  ;;  %v2531_v41 = vld [vmem:[#allocation6 + $0x1b0] sm:$0xff]  ;;  %v2778_v42 = vld [vmem:[#allocation6 + $0x1d8] sm:$0xff] }
 0x891   : > { %3397 = vmatpush1.bf16.msra.mxu1 %v3396_v43  ;;  %1604 = vmatprep.mubr.f32.mxu1 %v3647_v39  ;;  %v1786_v43 = vld [vmem:[#allocation6 + $0xf8] sm:$0xff] }
 0x892   : > { %3399 = vmatprep.subr.bf16.mxu1 %v3398_v46  ;;  %v1616_v52 = vpop.permute.xlu0 %1615  ;;  %v3406_v45 = vpack.c.bf16 %v1786_v43, %v1784_v53  ;;  %v1783_v46 = vld [vmem:[#allocation6 + $0xe0] sm:$0xff]  ;;  %v3432_v53 = vpack.c.bf16 %v2531_v41, %v2529_v40 }
 0x893   : > { %v3408_v50 = vpack.c.bf16 %v1785_v47, %v1783_v46  ;;  %v2780_v46 = vld [vmem:[#allocation6 + $0x1e8] sm:$0xff]  ;;  %v2782_v47 = vld [vmem:[#allocation6 + $0x1f8] sm:$0xff] }
 0x895   : > { %3401 = vmatpush1.bf16.msra.mxu1 %v3400_v51 }
 0x896   : > { %3136 = vmatprep.subr.mxu1 %v3647_v39  ;;  %v1614_v63 = vpop.permute.xlu0 %1613 }
 0x962   : > { %v2433_v54 = vpop.f32.mrb[12].mxu0 }
 0x963   : > { %v2437_v55 = vmul.f32 0.17677669, %v2433_v54  ;;  %v1525_v58 = vpop.f32.mrb[12].mxu1  ;;  %v3170_v59 = vpop.f32.mrb[13].mxu0 }
 0x964   : > { %v3135_v60 = vpop.f32.mrb[13].mxu1  ;;  %3048 = vmatmul.mubr.msk.f32.vlgmr.msra.gmra.mrb[8].mxu1 %vm869_vm1, %v1525_v58 }
 0x965   : > { %3137 = vmatpush3.xpose.msk.msra.mxu1 %vm869_vm1, %v1616_v52  ;;  %v2438_v61 = vsel %vm947_vm2, %v2437_v55, -inf  ;;  %3138 = vmatprep.mubr.msk.f32.mxu1 %vm3648_vm0, %v3647_v39  ;;  %v2025_v60 = vld [vmem:[#allocation6 + $0x108] sm:$0xff] }
 0x966   : > { %2439 = vmax.xlane.f32.xlu1 %v2438_v61  ;;  %3141 = vmatprep.subr.mxu1 %v3647_v39  ;;  %v2027_v61 = vld [vmem:[#allocation6 + $0x118] sm:$0xff] }
 0x968   : > { %3139 = vmatmul.mubr.msk.f32.vlgmr.msra.gmra.mrb[14].mxu1 %vm869_vm1, %v1614_v63  ;;  %v3410_v63 = vpack.c.bf16 %v2027_v61, %v2025_v60 }
 0x969   : > { %3143 = vmatprep.mubr.msk.f32.mxu1 %vm3648_vm0, %v3647_v39 }
 0x977   : > { %2611 = vrot.lane.b32.xlu1 %v3877_v56, %s3651_s29 }
 0x97b   : > { %2609 = vrot.lane.b32.xlu1 %v3885_v57, %s3651_s29 }
 0x9f3   : > { %v2440_v1 = vpop.xlane.xlu1 %2439 }
 0x9f4   : > { %v2441_v2 = vsub.f32 %v2437_v55, %v2440_v1  ;;  %v2024_v1 = vld [vmem:[#allocation6 + $0x100] sm:$0xff] }
 0x9f6   : > { %v2442_v3 = vmul.f32 1.442695, %v2441_v2  ;;  %v2026_v2 = vld [vmem:[#allocation6 + $0x110] sm:$0xff] }
 0x9f7   : > { %v2612_v13 = vpop.permute.xlu1 %2611 }
 0x9f8   : > { %3520 = vpow2.f32 %v2442_v3 }
 0xa02   : > { %v3521_v5 = vpop.eup %3520 }
 0xa03   : > { %v2444_v7 = vsel %vm947_vm2, %v3521_v5, 0.0 }
 0xa04   : > { %2445 = vadd.xlane.f32.xlu0 %v2444_v7  ;;  %v2029_v7 = vld [vmem:[#allocation6 + $0x128] sm:$0xff] }
 0xa1a   : > { %2449 = vrot.lane.b32.xlu0 %v3901_v0, %s3650_s27 }
 0xa3b   : > { %v1687_v8 = vpop.f32.mrb[14].mxu1 }
 0xa3c   : > { %v1691_v9 = vmul.f32 0.17677669, %v1687_v8  ;;  %v3140_v10 = vpop.f32.mrb[15].mxu1  ;;  %v2031_v8 = vld [vmem:[#allocation6 + $0x138] sm:$0xff] }
 0xa3d   : > { %v3412_v10 = vpack.c.bf16 %v2026_v2, %v2024_v1 }
 0xa3e   : > { %v1692_v11 = vsel %vm947_vm2, %v1691_v9, -inf }
 0xa3f   : > { %1693 = vmax.xlane.f32.xlu0 %v1692_v11 }
 0xa55   : > { %1703 = vrot.lane.b32.xlu0 %v3899_v62, %s3651_s29  ;;  %v2610_v62 = vpop.permute.xlu1 %2609 }
 0xa59   : > { %2699 = vrot.lane.b32.xlu0 %v3901_v0, %s3651_s29 }
 0xa91   : > { %v2446_v56 = vpop.xlane.xlu0 %2445 }
 0xa92   : > { %3522 = vrcp.f32 %v2446_v56  ;;  %v3414_v56 = vpack.c.bf16 %v2031_v8, %v2029_v7 }
 0xa95   : > { %v2450_v57 = vpop.permute.xlu0 %2449 }
 0xa96   : > { %3172 = vmatpush3.msra.mxu0 %v2450_v57  ;;  %v2028_v57 = vld [vmem:[#allocation6 + $0x120] sm:$0xff] }
 0xa97   : > { %3176 = vmatprep.subr.mxu0 %v3647_v39 }
 0xa9c   : > { %v3523_v12 = vpop.eup %3522 }
 0xa9d   : > { %v2448_v14 = vmul.f32 %v3523_v12, %v3521_v5  ;;  %v2030_v12 = vld [vmem:[#allocation6 + $0x130] sm:$0xff] }
 0xa9f   : > { %3174 = vmatmul.mubr.msk.f32.vlgmr.msra.gmra.mrb[14].mxu0 %vm947_vm2, %v2448_v14  ;;  %v2276_v14 = vld [vmem:[#allocation6 + $0x148] sm:$0xff] }
 0xaa0   : > { %3177 = vmatpush3.xpose.msk.msra.mxu0 %vm869_vm1, %v2612_v13  ;;  %3178 = vmatprep.mubr.msk.f32.mxu0 %vm3648_vm0, %v3647_v39  ;;  %v3416_v13 = vpack.c.bf16 %v2030_v12, %v2028_v57 }
 0xaa1   : > { %3181 = vmatprep.subr.mxu0 %v3647_v39 }
 0xaa3   : > { %3179 = vmatmul.mubr.msk.f32.vlgmr.msra.gmra.mrb[16].mxu0 %vm869_vm1, %v2610_v62  ;;  %v2278_v62 = vld [vmem:[#allocation6 + $0x158] sm:$0xff] }
 0xaa4   : > { %3183 = vmatprep.mubr.msk.f32.mxu0 %vm3648_vm0, %v3647_v39 }
 0xacc   : > { %v1694_v15 = vpop.xlane.xlu0 %1693 }
 0xacd   : > { %v1695_v16 = vsub.f32 %v1691_v9, %v1694_v15 }
 0xacf   : > { %v1696_v17 = vmul.f32 1.442695, %v1695_v16 }
 0xad0   : > { %v1704_v19 = vpop.permute.xlu0 %1703 }
 0xad1   : > { %3524 = vpow2.f32 %v1696_v17  ;;  %3142 = vmatpush3.msra.mxu1 %v1704_v19  ;;  %v2275_v19 = vld [vmem:[#allocation6 + $0x140] sm:$0xff] }
 0xad2   : > { %3403 = vmatprep.subr.bf16.mxu1 %v3402_v49  ;;  %v2776_v49 = vld [vmem:[#allocation6 + $0x1c8] sm:$0xff] }
 0xad3   : > { %v3434_v43 = vpack.c.bf16 %v2778_v42, %v2776_v49 }
 0xad4   : > { %v2700_v20 = vpop.permute.xlu0 %2699 }
 0xad5   : > { %3182 = vmatpush3.msra.mxu0 %v2700_v20  ;;  %v2277_v20 = vld [vmem:[#allocation6 + $0x150] sm:$0xff] }
 0xadb   : > { %v3525_v21 = vpop.eup %3524 }
 0xadc   : > { %v1698_v23 = vsel %vm947_vm2, %v3525_v21, 0.0 }
 0xadd   : > { %1699 = vadd.xlane.f32.xlu1 %v1698_v23  ;;  %v3420_v23 = vpack.c.bf16 %v2277_v20, %v2275_v19 }
 0xae1   : > { %1941 = vmax.xlane.f32.xlu1 %v1940_v24 }
 0xb6a   : > { %v1700_v25 = vpop.xlane.xlu1 %1699 }
 0xb6b   : > { %3526 = vrcp.f32 %v1700_v25  ;;  %v2279_v25 = vld [vmem:[#allocation6 + $0x160] sm:$0xff] }
 0xb6e   : > { %v1942_v26 = vpop.xlane.xlu1 %1941 }
 0xb6f   : > { %v1943_v27 = vsub.f32 %v1939_v22, %v1942_v26  ;;  %v2282_v22 = vld [vmem:[#allocation6 + $0x178] sm:$0xff]  ;;  %v2281_v26 = vld [vmem:[#allocation6 + $0x170] sm:$0xff] }
 0xb71   : > { %v1944_v28 = vmul.f32 1.442695, %v1943_v27 }
 0xb72   : > { %v4016_v29 = vpop.f32.mrb[14].mxu0 }
 0xb73   : > { %3528 = vpow2.f32 %v1944_v28  ;;  %v3175_v30 = vpop.f32.mrb[15].mxu0  ;;  %v2526_v28 = vld [vmem:[#allocation6 + $0x188] sm:$0xff] }
 0xb74   : > { %v2528_v30 = vld [vmem:[#allocation6 + $0x198] sm:$0xff] }
 0xb75   : > { %v3527_v31 = vpop.eup %3526 }
 0xb76   : > { %v1702_v33 = vmul.f32 %v3527_v31, %v3525_v21  ;;  %v2683_v34 = vpop.f32.mrb[16].mxu0  ;;  %v2280_v21 = vld [vmem:[#allocation6 + $0x168] sm:$0xff] }
 0xb77   : > { %v2687_v18 = vmul.f32 0.17677669, %v2683_v34  ;;  %v3180_v6 = vpop.f32.mrb[17].mxu0  ;;  %v3422_v24 = vpack.c.bf16 %v2282_v22, %v2280_v21  ;;  %v3426_v34 = vpack.c.bf16 %v2528_v30, %v2526_v28 }
 0xb78   : > { %3144 = vmatmul.mubr.msk.f32.vlgmr.msra.gmra.mrb[16].mxu1 %vm947_vm2, %v1702_v33  ;;  %v3424_v33 = vpack.c.bf16 %v2281_v26, %v2279_v25  ;;  %v2527_v6 = vld [vmem:[#allocation6 + $0x190] sm:$0xff] }
 0xb79   : > { %v2688_v35 = vsel %vm947_vm2, %v2687_v18, -inf  ;;  %1854 = vmatprep.mubr.f32.mxu1 %v3647_v39  ;;  %3405 = vmatpush1.bf16.msra.mxu1 %v3404_v44  ;;  %v2775_v44 = vld [vmem:[#allocation6 + $0x1c0] sm:$0xff] }
 0xb7a   : > { %2689 = vmax.xlane.f32.xlu1 %v2688_v35  ;;  %3407 = vmatprep.subr.bf16.mxu1 %v3406_v45  ;;  %v2530_v35 = vld [vmem:[#allocation6 + $0x1a8] sm:$0xff]  ;;  %v2777_v45 = vld [vmem:[#allocation6 + $0x1d0] sm:$0xff] }
 0xb7d   : > { %v3529_v36 = vpop.eup %3528  ;;  %3409 = vmatpush1.bf16.msra.mxu1 %v3408_v50  ;;  %v3436_v50 = vpack.c.bf16 %v2777_v45, %v2775_v44 }
 0xb7e   : > { %v1946_v37 = vsel %vm947_vm2, %v3529_v36, 0.0  ;;  %3151 = vmatprep.subr.mxu1 %v3647_v39 }
 0xb7f   : > { %1947 = vadd.xlane.f32.xlu1 %v1946_v37 }
 0xc07   : > { %v2690_v51 = vpop.xlane.xlu1 %2689 }
 0xc08   : > { %v2691_v52 = vsub.f32 %v2687_v18, %v2690_v51  ;;  %v2525_v18 = vld [vmem:[#allocation6 + $0x180] sm:$0xff]  ;;  %v3438_v51 = vpack.c.bf16 %v2782_v47, %v2780_v46 }
 0xc09   : > { %v3428_v37 = vpack.c.bf16 %v2527_v6, %v2525_v18 }
 0xc0a   : > { %v2692_v54 = vmul.f32 1.442695, %v2691_v52  ;;  %v2779_v52 = vld [vmem:[#allocation6 + $0x1e0] sm:$0xff] }
 0xc0c   : > { %3530 = vpow2.f32 %v2692_v54  ;;  %v1948_v59 = vpop.xlane.xlu1 %1947  ;;  %v2781_v54 = vld [vmem:[#allocation6 + $0x1f0] sm:$0xff] }
 0xc0d   : > { %3532 = vrcp.f32 %v1948_v59  ;;  %v2861_v59 = vld [vmem:[%s4071_s7] sm:$0x3] }
 0xc0e   : > { %v2866_v60 = vrot.slane %v2861_v59, %v3862_v4 }
 0xc16   : > { %v3531_v55 = vpop.eup %3530 }
 0xc17   : > { %v2694_v58 = vsel %vm947_vm2, %v3531_v55, 0.0  ;;  %v3533_v3 = vpop.eup %3532 }
 0xc18   : > { %2695 = vadd.xlane.f32.xlu1 %v2694_v58  ;;  %v1950_v11 = vmul.f32 %v3533_v3, %v3529_v36  ;;  %v2532_v36 = vld [vmem:[#allocation6 + $0x1b8] sm:$0xff]  ;;  %v3539_v3 = vld [vmem:[%s3833_s28 + $0x8] sm:$0xff] }
 0xc19   : > { %v3430_v38 = vpack.c.bf16 %v2532_v36, %v2530_v35 }
 0xc4b   : > { %v1775_v5 = vpop.f32.mrb[16].mxu1 }
 0xc4c   : > { %v3145_v9 = vpop.f32.mrb[17].mxu1  ;;  %3052 = vmatmul.mubr.msk.f32.vlgmr.msra.gmra.mrb[8].mxu1 %vm869_vm1, %v1775_v5 }
 0xc4d   : > { %3152 = vmatpush3.msra.mxu1 %v3901_v0  ;;  %3153 = vmatprep.mubr.msk.f32.mxu1 %vm3648_vm0, %v3647_v39  ;;  %v3418_v0 = vpack.c.bf16 %v2278_v62, %v2276_v14 }
 0xc4e   : > { %3411 = vmatprep.subr.bf16.mxu1 %v3410_v63  ;;  %v3538_v63 = vld [vmem:[%s3833_s28] sm:$0xff] }
 0xc50   : > { %3154 = vmatmul.mubr.msk.f32.vlgmr.msra.gmra.mrb[18].mxu1 %vm947_vm2, %v1950_v11 }
 0xc51   : > { %3413 = vmatpush1.bf16.msra.mxu1 %v3412_v10  ;;  %2099 = vmatprep.mubr.f32.mxu1 %v3647_v39 }
 0xc52   : > { %3415 = vmatprep.subr.bf16.mxu1 %v3414_v56 }
 0xc55   : > { %3417 = vmatpush1.bf16.msra.mxu1 %v3416_v13 }
 0xc56   : > { %3419 = vmatprep.subr.bf16.mxu1 %v3418_v0 }
 0xca5   : > { %v2696_v15 = vpop.xlane.xlu1 %2695 }
 0xca6   : > { %3534 = vrcp.f32 %v2696_v15  ;;  %v2892_v15 = vld [vmem:[%s4072_s8] sm:$0x3] }
 0xca7   : > { %v2901_v19 = vrot.slane %v2892_v15, %v3865_v48 }
 0xcb0   : > { %v3535_v16 = vpop.eup %3534 }
 0xcb1   : > { %v2698_v17 = vmul.f32 %v3535_v16, %v3531_v55  ;;  %v2906_v16 = vld [vmem:[%s4073_s9] sm:$0x3] }
 0xcb2   : > { %v2911_v21 = vrot.slane %v2906_v16, %v3862_v4  ;;  %v2915_v22 = vrot.slane %v2906_v16, %v3865_v48 }
 0xcb3   : > { %3184 = vmatmul.mubr.msk.f32.vlgmr.msra.gmra.mrb[18].mxu0 %vm947_vm2, %v2698_v17  ;;  %v2897_v17 = vrot.slane %v2892_v15, %v3862_v4 }
 0xd23   : > { %v2020_v27 = vpop.f32.mrb[18].mxu1 }
 0xd24   : > { %v3155_v31 = vpop.f32.mrb[19].mxu1  ;;  %3056 = vmatmul.mubr.msk.f32.vlgmr.msra.gmra.mrb[8].mxu1 %vm869_vm1, %v2020_v27 }
 0xd25   : > { %3421 = vmatpush1.bf16.msra.mxu1 %v3420_v23  ;;  %2350 = vmatprep.mubr.f32.mxu1 %v3647_v39 }
 0xd26   : > { %3423 = vmatprep.subr.bf16.mxu1 %v3422_v24 }
 0xd29   : > { %3425 = vmatpush1.bf16.msra.mxu1 %v3424_v33 }
 0xd2a   : > { %3427 = vmatprep.subr.bf16.mxu1 %v3426_v34 }
 0xd2c   : > { %3060 = vmatmul.mubr.msk.f32.vlgmr.msra.gmra.mrb[8].mxu1 %vm869_vm1, %v3973_v32  ;;  %v3440_v32 = vpack.c.bf16 %v2781_v54, %v2779_v52 }
 0xd2d   : > { %3429 = vmatpush1.bf16.msra.mxu1 %v3428_v37  ;;  %2600 = vmatprep.mubr.f32.mxu1 %v3647_v39 }
 0xd2e   : > { %3431 = vmatprep.subr.bf16.mxu1 %v3430_v38 }
 0xd31   : > { %3433 = vmatpush1.bf16.msra.mxu1 %v3432_v53 }
 0xd32   : > { %3435 = vmatprep.subr.bf16.mxu1 %v3434_v43 }
 0xd34   : > { %3064 = vmatmul.mubr.msk.f32.vlgmr.msra.gmra.mrb[8].mxu1 %vm869_vm1, %v4016_v29  ;;  %v2870_v29 = vrot.slane %v2861_v59, %v3865_v48 }
 0xd35   : > { %3437 = vmatpush1.bf16.msra.mxu1 %v3436_v50  ;;  %2850 = vmatprep.mubr.f32.mxu1 %v3647_v39 }
 0xd36   : > { %3439 = vmatprep.subr.bf16.mxu1 %v3438_v51 }
 0xd39   : > { %3441 = vmatpush1.bf16.msra.mxu1 %v3440_v32 }
 0xd86   : > { %v2771_v55 = vpop.f32.mrb[18].mxu0 }
 0xd87   : > { %v3185_v58 = vpop.f32.mrb[19].mxu0  ;;  %3068 = vmatmul.mubr.msk.f32.vlgmr.msra.gmra.mrb[8].mxu1 %vm869_vm1, %v2771_v55 }
 0xe5a   : > { %v2852_v61 = vpop.f32.mrb[8].mxu1 }
 0xe5b   : > { %v2859_v1 = vadd.f32 %v3538_v63, %v2852_v61  ;;  %v2854_v2 = vpop.f32.mrb[9].mxu1 }
 0xe5c   : > { %v2860_v39 = vadd.f32 %v3539_v3, %v2854_v2 }
 0xe5d   : > { %v2873_v5 = vadd.f32 %v2866_v60, %v2859_v1 }
 0xe5e   : > { %v2874_v7 = vadd.f32 %v2870_v29, %v2860_v39 }
 0xe60   : > { %v2875_v8 = vadd.f32 %v2874_v7, %v2873_v5 }
 0xe62   : > { %2876 = vadd.xlane.f32.xlu1 %v2875_v8 }
 0xeef   : > { %v2877_v9 = vpop.xlane.xlu1 %2876 }
 0xef0   : > { %v2879_v10 = vmul.f32 0.00390625, %v2877_v9 }
 0xef2   : > { %v2880_v11 = vsub.f32 %v2873_v5, %v2879_v10  ;;  %v2881_v56 = vsub.f32 %v2874_v7, %v2879_v10 }
 0xef4   : > { %v2882_v57 = vmul.f32 %v2880_v11, %v2880_v11  ;;  %v2883_v12 = vmul.f32 %v2881_v56, %v2881_v56 }
 0xef6   : > { %v2884_v13 = vadd.f32 %v2883_v12, %v2882_v57 }
 0xef8   : > { %2885 = vadd.xlane.f32.xlu0 %v2884_v13 }
 0xf85   : > { %v2886_v14 = vpop.xlane.xlu0 %2885 }
 0xf86   : > { %v2887_v62 = vmul.f32 0.00390625, %v2886_v14 }
 0xf88   : > { %v2888_v0 = vadd.f32 1e-05, %v2887_v62 }
 0xf8a   : > { %3536 = vrsqrt.f32 %v2888_v0 }
 0xf94   : > { %v3537_v20 = vpop.eup %3536 }
 0xf95   : > { %v2890_v23 = vmul.f32 %v3537_v20, %v2880_v11  ;;  %v2891_v24 = vmul.f32 %v3537_v20, %v2881_v56 }
 0xf97   : > { %v2904_v25 = vmul.f32 %v2897_v17, %v2890_v23  ;;  %v2905_v26 = vmul.f32 %v2901_v19, %v2891_v24 }
 0xf99   : > { %v2918_v27 = vadd.f32 %v2911_v21, %v2904_v25  ;;  %v2919_v28 = vadd.f32 %v2915_v22, %v2905_v26 }
 0xf9b   : > { %2920 = vst [vmem:[%s423_s12] sm:$0xff] %v2918_v27  ;;  %2921 = vst [vmem:[%s423_s12 + $0x8] sm:$0xff] %v2919_v28 }
 0xf9c PF: > { %s22_s13 = sadd.s32 1, %s3638_s13  }
 0xf9d   : > { %p19_p13 = scmp.ge.s32.totalorder %s22_s13, 4  }
 0xf9f   :  { %21 = sbr.rel (!%p19_p13) target bundleno = 2 (0x2), region = 106 }
 0xfa6   :  { %2943 = vsyncpa [#allocation3], 1 }
 0xfa7   :  { %2945 = vsyncpa [#allocation3 + $0x1], 1 }
 0xfa8   :  { %2946 = vsyncpa [#allocation5], 1 }

</bundles_post_ra>
